<compile_context>
chip_gen: v6e
topology: v6e:2x2x1
jax: 0.10.0
libtpu: 0.0.40
codegen_flags: <defaults>
</compile_context>

<pallas_src>
import functools

import jax
import jax.numpy as jnp
from jax.experimental import pallas as pl
from jax.experimental.pallas import tpu as pltpu


def autopad(k, p=None, d=1):
    if d > 1:
        k = d * (k - 1) + 1
    if p is None:
        p = k // 2
    return p


def _round_up(x, m):
    return (x + m - 1) // m * m


def _conv_bn_act_kernel(x_ref, w_ref, b_ref, o_ref, *, K, s, Rt, Wo, C1, apply_act):
    """One grid step = all K*K taps for a (Rt x Wo) block of output rows.

    x_ref: (Hin_t, Win_t, C1)  bf16 halo tile of the padded NHWC input
    w_ref: (K*K, C1, C2p)      bf16 weights (BN scale already folded in)
    b_ref: (1, C2p)            f32 folded BN bias
    o_ref: (Rt*Wo, C2p)        output tile (lane-dense C2p)
    """
    acc = None
    for kh in range(K):
        for kw in range(K):
            if s == 1:
                lhs = x_ref[pl.ds(kh, Rt), pl.ds(kw, Wo), :]
            else:
                # stride > 1: contiguous slice, then reshape + phase-select (no strided loads)
                lhs = x_ref[pl.ds(kh, Rt * s), pl.ds(kw, Wo * s), :]
                lhs = lhs.reshape(Rt, s, Wo, s, C1)[:, 0, :, 0, :]
            lhs = lhs.reshape(Rt * Wo, C1)
            d = jnp.dot(lhs, w_ref[kh * K + kw], preferred_element_type=jnp.float32)
            acc = d if acc is None else acc + d
    y = acc + b_ref[...]
    if apply_act:
        y = y * jax.nn.sigmoid(y)  # SiLU; sigmoid goes to the EUP slot (free vs MXU/VALU)
    o_ref[...] = y.astype(o_ref.dtype)


def conv_bn_silu(x_nchw, weight, gamma, beta, running_mean, running_var, *,
                 stride=1, padding=None, eps=1e-5, act=True,
                 out_dtype=jnp.bfloat16, row_tile=None):
    N, C1, H, W = x_nchw.shape
    C2, C1w, K, K2 = weight.shape
    assert C1w == C1 and K2 == K, "groups=1 and square kernels only"
    s = int(stride)
    pad = autopad(K, padding)
    Ho = (H + 2 * pad - K) // s + 1
    Wo = (W + 2 * pad - K) // s + 1

    C2p = _round_up(C2, 128)                      # lane-dense output channels
    out_bytes = jnp.dtype(out_dtype).itemsize

    # ---- pick output-row tile against a VMEM budget (v7x: 64 MiB physical) ----
    def vmem_est(rt):
        hin, win = rt * s + K - 1, Wo * s + K - 1
        return (2 * hin * win * C1 * 2            # double-buffered halo tile (bf16)
                + K * K * C1 * C2p * 2            # resident weight (bf16)
                + 2 * rt * Wo * C2p * out_bytes   # double-buffered output tile
                + 2 * rt * Wo * C2p * 4)          # f32 accumulator temporaries

    if row_tile is None:
        Rt = max(1, min(Ho, 2048 // max(Wo, 1)))  # big tiles amortize ~0.35us/grid step
    else:
        Rt = max(1, min(int(row_tile), Ho))
    while Rt > 1 and vmem_est(Rt) > 40 * 2**20:
        Rt = max(1, Rt // 2)
    nrt = -(-Ho // Rt)
    Rt = -(-Ho // nrt)                            # rebalance -> minimal Ho padding
    Ho_pad = nrt * Rt

    Hin_t = Rt * s + K - 1
    Win_t = Wo * s + K - 1

    # ---- glue (plain JAX, XLA-fused): NCHW -> NHWC bf16, pad, per-tile halo slabs ----
    # NOTE: callers that already keep activations in NHWC can skip the transposes.
    x = jnp.transpose(x_nchw, (0, 2, 3, 1)).astype(jnp.bfloat16)
    pad_h_hi = Ho_pad * s + K - 1 - (H + pad)
    pad_w_hi = Win_t - (W + pad)
    x = jnp.pad(x, ((0, 0), (pad, pad_h_hi), (pad, pad_w_hi), (0, 0)))
    if nrt == 1:
        # fast path: no row-tile halo duplication needed, avoid the extra stack copy
        tiles = x[:, None, :Hin_t, :, :]          # (N, 1, Hin_t, Win_t, C1)
    else:
        tiles = jnp.stack(
            [x[:, r * Rt * s: r * Rt * s + Hin_t, :, :] for r in range(nrt)],
            axis=1)                               # (N, nrt, Hin_t, Win_t, C1)

    # ---- fold BN (running stats) into weight / bias; pad C2 -> C2p ----
    scale = (gamma / jnp.sqrt(running_var + eps)).astype(jnp.float32)       # (C2,)
    bias = (beta - running_mean * scale).astype(jnp.float32)                # (C2,)
    w = jnp.transpose(weight, (2, 3, 1, 0)).astype(jnp.float32) * scale     # (K,K,C1,C2)
    w = jnp.pad(w, ((0, 0), (0, 0), (0, 0), (0, C2p - C2)))
    w = w.reshape(K * K, C1, C2p).astype(jnp.bfloat16)
    bias = jnp.pad(bias, (0, C2p - C2)).reshape(1, C2p)

    kernel = functools.partial(_conv_bn_act_kernel, K=K, s=s, Rt=Rt, Wo=Wo,
                               C1=C1, apply_act=bool(act))

    flops = 2 * N * Ho_pad * Wo * K * K * C1 * C2p
    transc = (N * Ho_pad * Wo * C2p) if act else 0
    bytes_acc = (tiles.size * 2 + w.size * 2 + bias.size * 4
                 + N * nrt * Rt * Wo * C2p * out_bytes)

    out = pl.pallas_call(
        kernel,
        out_shape=jax.ShapeDtypeStruct((N * nrt, Rt * Wo, C2p), out_dtype),
        grid_spec=pltpu.PrefetchScalarGridSpec(
            num_scalar_prefetch=0,
            grid=(N, nrt),
            in_specs=[
                pl.BlockSpec((None, None, Hin_t, Win_t, C1),
                             lambda n, r: (n, r, 0, 0, 0)),     # halo tile
                pl.BlockSpec((K * K, C1, C2p),
                             lambda n, r: (0, 0, 0)),           # weight, stays resident
                pl.BlockSpec((1, C2p),
                             lambda n, r: (0, 0)),              # folded BN bias
            ],
            out_specs=pl.BlockSpec((None, Rt * Wo, C2p),
                                   lambda n, r: (n * nrt + r, 0, 0)),
        ),
        compiler_params=pltpu.CompilerParams(
            dimension_semantics=("parallel", "parallel"),
            vmem_limit_bytes=int(min(64 * 2**20, max(32 * 2**20, 2 * vmem_est(Rt)))),
        ),
        cost_estimate=pl.CostEstimate(flops=flops, transcendentals=transc,
                                      bytes_accessed=bytes_acc),
    )(tiles, w, bias)

    out = out.reshape(N, Ho_pad, Wo, C2p)[:, :Ho, :, :C2]
    return jnp.transpose(out, (0, 3, 1, 2))       # back to NCHW


def _reference(x_nchw, weight, gamma, beta, mean, var, *, stride, pad, eps):
    # Pure-JAX reference of Conv2d(bias=False)+BN(eval)+SiLU, using the same bf16
    # quantization of activations / folded weights as the kernel path.
    xq = jnp.transpose(x_nchw, (0, 2, 3, 1)).astype(jnp.bfloat16).astype(jnp.float32)
    scale = gamma / jnp.sqrt(var + eps)
    w = jnp.transpose(weight, (2, 3, 1, 0)) * scale
    wq = w.astype(jnp.bfloat16).astype(jnp.float32)
    bias = beta - mean * scale
    y = jax.lax.conv_general_dilated(
        xq, wq, window_strides=(stride, stride),
        padding=[(pad, pad), (pad, pad)],
        dimension_numbers=("NHWC", "HWIO", "NHWC")) + bias
    y = y * jax.nn.sigmoid(y)
    return jnp.transpose(y, (0, 3, 1, 2))


if __name__ == "__main__":
    # Conv(c1=4, c2=8, k=3, s=1) (autopad -> p=1), batch=2, spatial=16x16
    N, C1, H, W = 2, 4, 16, 16
    C2, K, S = 8, 3, 1
    pad = autopad(K)
    eps = 1e-5

    key = jax.random.PRNGKey(0)
    k_x, k_w, k_g, k_b, k_m, k_v = jax.random.split(key, 6)

    x = jax.random.normal(k_x, (N, C1, H, W), dtype=jnp.float32)
    weight = 0.1 * jax.random.normal(k_w, (C2, C1, K, K), dtype=jnp.float32)
    gamma = 1.0 + 0.1 * jax.random.normal(k_g, (C2,), dtype=jnp.float32)
    beta = 0.1 * jax.random.normal(k_b, (C2,), dtype=jnp.float32)
    running_mean = 0.1 * jax.random.normal(k_m, (C2,), dtype=jnp.float32)
    running_var = 0.5 + jax.random.uniform(k_v, (C2,), dtype=jnp.float32)

    out = conv_bn_silu(x, weight, gamma, beta, running_mean, running_var,
                       stride=S, padding=None, eps=eps)
    out = jax.block_until_ready(out)

    ref = _reference(x, weight, gamma, beta, running_mean, running_var,
                     stride=S, pad=pad, eps=eps)
    assert out.shape == (N, C2, H, W)
    err = float(jnp.max(jnp.abs(out.astype(jnp.float32) - ref)))
    assert err < 2e-2, f"mismatch vs reference, max abs err = {err}"

    print("KERNEL_OK")
</pallas_src>

<mosaic_0001>
module attributes {stable_mosaic.version = 11 : i64} {
  func.func @_conv_bn_act_kernel(%arg0: i32, %arg1: i32, %arg2: memref<1x1x18x18x4xbf16, #tpu.memory_space<vmem>>, %arg3: memref<9x4x128xbf16, #tpu.memory_space<vmem>>, %arg4: memref<1x128xf32, #tpu.memory_space<vmem>>, %arg5: memref<1x256x128xbf16, #tpu.memory_space<vmem>>) attributes {dimension_semantics = [#tpu.dimension_semantics<parallel>, #tpu.dimension_semantics<parallel>], iteration_bounds = array<i64: 2, 1>, scalar_prefetch = 0 : i64, scratch_operands = 0 : i64, tpu.core_type = #tpu.core_type<tc>, window_params = [{transform_indices = @transform_0, window_bounds = array<i64: 1, 1, 18, 18, 4>}, {pipeline_mode = #tpu.pipeline_mode<synchronous>, transform_indices = @transform_1, window_bounds = array<i64: 9, 4, 128>}, {pipeline_mode = #tpu.pipeline_mode<synchronous>, transform_indices = @transform_2, window_bounds = array<i64: 1, 128>}, {transform_indices = @transform_3, window_bounds = array<i64: 1, 256, 128>}]} {
    %c0 = arith.constant 0 : index
    %c0_0 = arith.constant 0 : index
    %c0_1 = arith.constant 0 : index
    %c0_2 = arith.constant 0 : index
    %c0_3 = arith.constant 0 : index
    %0 = vector.load %arg2[%c0, %c0_0, %c0_1, %c0_2, %c0_3] : memref<1x1x18x18x4xbf16, #tpu.memory_space<vmem>>, vector<1x1x16x16x4xbf16>
    %1 = vector.shape_cast %0 : vector<1x1x16x16x4xbf16> to vector<16x16x4xbf16>
    %2 = vector.shape_cast %1 : vector<16x16x4xbf16> to vector<256x4xbf16>
    %c0_4 = arith.constant 0 : index
    %c0_5 = arith.constant 0 : index
    %c0_6 = arith.constant 0 : index
    %3 = vector.load %arg3[%c0_4, %c0_5, %c0_6] : memref<9x4x128xbf16, #tpu.memory_space<vmem>>, vector<1x4x128xbf16>
    %4 = vector.shape_cast %3 : vector<1x4x128xbf16> to vector<4x128xbf16>
    %cst = arith.constant dense<0.000000e+00> : vector<256x128xf32>
    %5 = tpu.matmul %2, %4, %cst {dimension_numbers = #tpu.dot_dimension_numbers<[1], [0], [0], [1], [0, 0, 1, 1], [], []>} : vector<256x4xbf16>, vector<4x128xbf16>, vector<256x128xf32> -> vector<256x128xf32>
    %c0_7 = arith.constant 0 : index
    %c0_8 = arith.constant 0 : index
    %c0_9 = arith.constant 0 : index
    %c1 = arith.constant 1 : index
    %c0_10 = arith.constant 0 : index
    %6 = vector.load %arg2[%c0_7, %c0_8, %c0_9, %c1, %c0_10] : memref<1x1x18x18x4xbf16, #tpu.memory_space<vmem>>, vector<1x1x16x16x4xbf16>
    %7 = vector.shape_cast %6 : vector<1x1x16x16x4xbf16> to vector<16x16x4xbf16>
    %8 = vector.shape_cast %7 : vector<16x16x4xbf16> to vector<256x4xbf16>
    %c1_11 = arith.constant 1 : index
    %c0_12 = arith.constant 0 : index
    %c0_13 = arith.constant 0 : index
    %9 = vector.load %arg3[%c1_11, %c0_12, %c0_13] : memref<9x4x128xbf16, #tpu.memory_space<vmem>>, vector<1x4x128xbf16>
    %10 = vector.shape_cast %9 : vector<1x4x128xbf16> to vector<4x128xbf16>
    %cst_14 = arith.constant dense<0.000000e+00> : vector<256x128xf32>
    %11 = tpu.matmul %8, %10, %cst_14 {dimension_numbers = #tpu.dot_dimension_numbers<[1], [0], [0], [1], [0, 0, 1, 1], [], []>} : vector<256x4xbf16>, vector<4x128xbf16>, vector<256x128xf32> -> vector<256x128xf32>
    %12 = arith.addf %5, %11 : vector<256x128xf32>
    %c0_15 = arith.constant 0 : index
    %c0_16 = arith.constant 0 : index
    %c0_17 = arith.constant 0 : index
    %c2 = arith.constant 2 : index
    %c0_18 = arith.constant 0 : index
    %13 = vector.load %arg2[%c0_15, %c0_16, %c0_17, %c2, %c0_18] : memref<1x1x18x18x4xbf16, #tpu.memory_space<vmem>>, vector<1x1x16x16x4xbf16>
    %14 = vector.shape_cast %13 : vector<1x1x16x16x4xbf16> to vector<16x16x4xbf16>
    %15 = vector.shape_cast %14 : vector<16x16x4xbf16> to vector<256x4xbf16>
    %c2_19 = arith.constant 2 : index
    %c0_20 = arith.constant 0 : index
    %c0_21 = arith.constant 0 : index
    %16 = vector.load %arg3[%c2_19, %c0_20, %c0_21] : memref<9x4x128xbf16, #tpu.memory_space<vmem>>, vector<1x4x128xbf16>
    %17 = vector.shape_cast %16 : vector<1x4x128xbf16> to vector<4x128xbf16>
    %cst_22 = arith.constant dense<0.000000e+00> : vector<256x128xf32>
    %18 = tpu.matmul %15, %17, %cst_22 {dimension_numbers = #tpu.dot_dimension_numbers<[1], [0], [0], [1], [0, 0, 1, 1], [], []>} : vector<256x4xbf16>, vector<4x128xbf16>, vector<256x128xf32> -> vector<256x128xf32>
    %19 = arith.addf %12, %18 : vector<256x128xf32>
    %c0_23 = arith.constant 0 : index
    %c0_24 = arith.constant 0 : index
    %c1_25 = arith.constant 1 : index
    %c0_26 = arith.constant 0 : index
    %c0_27 = arith.constant 0 : index
    %20 = vector.load %arg2[%c0_23, %c0_24, %c1_25, %c0_26, %c0_27] : memref<1x1x18x18x4xbf16, #tpu.memory_space<vmem>>, vector<1x1x16x16x4xbf16>
    %21 = vector.shape_cast %20 : vector<1x1x16x16x4xbf16> to vector<16x16x4xbf16>
    %22 = vector.shape_cast %21 : vector<16x16x4xbf16> to vector<256x4xbf16>
    %c3 = arith.constant 3 : index
    %c0_28 = arith.constant 0 : index
    %c0_29 = arith.constant 0 : index
    %23 = vector.load %arg3[%c3, %c0_28, %c0_29] : memref<9x4x128xbf16, #tpu.memory_space<vmem>>, vector<1x4x128xbf16>
    %24 = vector.shape_cast %23 : vector<1x4x128xbf16> to vector<4x128xbf16>
    %cst_30 = arith.constant dense<0.000000e+00> : vector<256x128xf32>
    %25 = tpu.matmul %22, %24, %cst_30 {dimension_numbers = #tpu.dot_dimension_numbers<[1], [0], [0], [1], [0, 0, 1, 1], [], []>} : vector<256x4xbf16>, vector<4x128xbf16>, vector<256x128xf32> -> vector<256x128xf32>
    %26 = arith.addf %19, %25 : vector<256x128xf32>
    %c0_31 = arith.constant 0 : index
    %c0_32 = arith.constant 0 : index
    %c1_33 = arith.constant 1 : index
    %c1_34 = arith.constant 1 : index
    %c0_35 = arith.constant 0 : index
    %27 = vector.load %arg2[%c0_31, %c0_32, %c1_33, %c1_34, %c0_35] : memref<1x1x18x18x4xbf16, #tpu.memory_space<vmem>>, vector<1x1x16x16x4xbf16>
    %28 = vector.shape_cast %27 : vector<1x1x16x16x4xbf16> to vector<16x16x4xbf16>
    %29 = vector.shape_cast %28 : vector<16x16x4xbf16> to vector<256x4xbf16>
    %c4 = arith.constant 4 : index
    %c0_36 = arith.constant 0 : index
    %c0_37 = arith.constant 0 : index
    %30 = vector.load %arg3[%c4, %c0_36, %c0_37] : memref<9x4x128xbf16, #tpu.memory_space<vmem>>, vector<1x4x128xbf16>
    %31 = vector.shape_cast %30 : vector<1x4x128xbf16> to vector<4x128xbf16>
    %cst_38 = arith.constant dense<0.000000e+00> : vector<256x128xf32>
    %32 = tpu.matmul %29, %31, %cst_38 {dimension_numbers = #tpu.dot_dimension_numbers<[1], [0], [0], [1], [0, 0, 1, 1], [], []>} : vector<256x4xbf16>, vector<4x128xbf16>, vector<256x128xf32> -> vector<256x128xf32>
    %33 = arith.addf %26, %32 : vector<256x128xf32>
    %c0_39 = arith.constant 0 : index
    %c0_40 = arith.constant 0 : index
    %c1_41 = arith.constant 1 : index
    %c2_42 = arith.constant 2 : index
    %c0_43 = arith.constant 0 : index
    %34 = vector.load %arg2[%c0_39, %c0_40, %c1_41, %c2_42, %c0_43] : memref<1x1x18x18x4xbf16, #tpu.memory_space<vmem>>, vector<1x1x16x16x4xbf16>
    %35 = vector.shape_cast %34 : vector<1x1x16x16x4xbf16> to vector<16x16x4xbf16>
    %36 = vector.shape_cast %35 : vector<16x16x4xbf16> to vector<256x4xbf16>
    %c5 = arith.constant 5 : index
    %c0_44 = arith.constant 0 : index
    %c0_45 = arith.constant 0 : index
    %37 = vector.load %arg3[%c5, %c0_44, %c0_45] : memref<9x4x128xbf16, #tpu.memory_space<vmem>>, vector<1x4x128xbf16>
    %38 = vector.shape_cast %37 : vector<1x4x128xbf16> to vector<4x128xbf16>
    %cst_46 = arith.constant dense<0.000000e+00> : vector<256x128xf32>
    %39 = tpu.matmul %36, %38, %cst_46 {dimension_numbers = #tpu.dot_dimension_numbers<[1], [0], [0], [1], [0, 0, 1, 1], [], []>} : vector<256x4xbf16>, vector<4x128xbf16>, vector<256x128xf32> -> vector<256x128xf32>
    %40 = arith.addf %33, %39 : vector<256x128xf32>
    %c0_47 = arith.constant 0 : index
    %c0_48 = arith.constant 0 : index
    %c2_49 = arith.constant 2 : index
    %c0_50 = arith.constant 0 : index
    %c0_51 = arith.constant 0 : index
    %41 = vector.load %arg2[%c0_47, %c0_48, %c2_49, %c0_50, %c0_51] : memref<1x1x18x18x4xbf16, #tpu.memory_space<vmem>>, vector<1x1x16x16x4xbf16>
    %42 = vector.shape_cast %41 : vector<1x1x16x16x4xbf16> to vector<16x16x4xbf16>
    %43 = vector.shape_cast %42 : vector<16x16x4xbf16> to vector<256x4xbf16>
    %c6 = arith.constant 6 : index
    %c0_52 = arith.constant 0 : index
    %c0_53 = arith.constant 0 : index
    %44 = vector.load %arg3[%c6, %c0_52, %c0_53] : memref<9x4x128xbf16, #tpu.memory_space<vmem>>, vector<1x4x128xbf16>
    %45 = vector.shape_cast %44 : vector<1x4x128xbf16> to vector<4x128xbf16>
    %cst_54 = arith.constant dense<0.000000e+00> : vector<256x128xf32>
    %46 = tpu.matmul %43, %45, %cst_54 {dimension_numbers = #tpu.dot_dimension_numbers<[1], [0], [0], [1], [0, 0, 1, 1], [], []>} : vector<256x4xbf16>, vector<4x128xbf16>, vector<256x128xf32> -> vector<256x128xf32>
    %47 = arith.addf %40, %46 : vector<256x128xf32>
    %c0_55 = arith.constant 0 : index
    %c0_56 = arith.constant 0 : index
    %c2_57 = arith.constant 2 : index
    %c1_58 = arith.constant 1 : index
    %c0_59 = arith.constant 0 : index
    %48 = vector.load %arg2[%c0_55, %c0_56, %c2_57, %c1_58, %c0_59] : memref<1x1x18x18x4xbf16, #tpu.memory_space<vmem>>, vector<1x1x16x16x4xbf16>
    %49 = vector.shape_cast %48 : vector<1x1x16x16x4xbf16> to vector<16x16x4xbf16>
    %50 = vector.shape_cast %49 : vector<16x16x4xbf16> to vector<256x4xbf16>
    %c7 = arith.constant 7 : index
    %c0_60 = arith.constant 0 : index
    %c0_61 = arith.constant 0 : index
    %51 = vector.load %arg3[%c7, %c0_60, %c0_61] : memref<9x4x128xbf16, #tpu.memory_space<vmem>>, vector<1x4x128xbf16>
    %52 = vector.shape_cast %51 : vector<1x4x128xbf16> to vector<4x128xbf16>
    %cst_62 = arith.constant dense<0.000000e+00> : vector<256x128xf32>
    %53 = tpu.matmul %50, %52, %cst_62 {dimension_numbers = #tpu.dot_dimension_numbers<[1], [0], [0], [1], [0, 0, 1, 1], [], []>} : vector<256x4xbf16>, vector<4x128xbf16>, vector<256x128xf32> -> vector<256x128xf32>
    %54 = arith.addf %47, %53 : vector<256x128xf32>
    %c0_63 = arith.constant 0 : index
    %c0_64 = arith.constant 0 : index
    %c2_65 = arith.constant 2 : index
    %c2_66 = arith.constant 2 : index
    %c0_67 = arith.constant 0 : index
    %55 = vector.load %arg2[%c0_63, %c0_64, %c2_65, %c2_66, %c0_67] : memref<1x1x18x18x4xbf16, #tpu.memory_space<vmem>>, vector<1x1x16x16x4xbf16>
    %56 = vector.shape_cast %55 : vector<1x1x16x16x4xbf16> to vector<16x16x4xbf16>
    %57 = vector.shape_cast %56 : vector<16x16x4xbf16> to vector<256x4xbf16>
    %c8 = arith.constant 8 : index
    %c0_68 = arith.constant 0 : index
    %c0_69 = arith.constant 0 : index
    %58 = vector.load %arg3[%c8, %c0_68, %c0_69] : memref<9x4x128xbf16, #tpu.memory_space<vmem>>, vector<1x4x128xbf16>
    %59 = vector.shape_cast %58 : vector<1x4x128xbf16> to vector<4x128xbf16>
    %cst_70 = arith.constant dense<0.000000e+00> : vector<256x128xf32>
    %60 = tpu.matmul %57, %59, %cst_70 {dimension_numbers = #tpu.dot_dimension_numbers<[1], [0], [0], [1], [0, 0, 1, 1], [], []>} : vector<256x4xbf16>, vector<4x128xbf16>, vector<256x128xf32> -> vector<256x128xf32>
    %61 = arith.addf %54, %60 : vector<256x128xf32>
    %c0_71 = arith.constant 0 : index
    %c0_72 = arith.constant 0 : index
    %62 = vector.load %arg4[%c0_71, %c0_72] : memref<1x128xf32, #tpu.memory_space<vmem>>, vector<1x128xf32>
    %63 = vector.broadcast %62 : vector<1x128xf32> to vector<256x128xf32>
    %64 = arith.addf %61, %63 : vector<256x128xf32>
    %65 = arith.negf %64 : vector<256x128xf32>
    %66 = math.exp %65 : vector<256x128xf32>
    %cst_73 = arith.constant 1.000000e+00 : f32
    %67 = vector.broadcast %cst_73 : f32 to vector<256x128xf32>
    %68 = arith.addf %67, %66 : vector<256x128xf32>
    %69 = arith.divf %67, %68 : vector<256x128xf32>
    %70 = arith.mulf %64, %69 : vector<256x128xf32>
    %71 = arith.truncf %70 : vector<256x128xf32> to vector<256x128xbf16>
    %c0_74 = arith.constant 0 : index
    %c0_75 = arith.constant 0 : index
    %c0_76 = arith.constant 0 : index
    %72 = vector.load %arg5[%c0_74, %c0_75, %c0_76] : memref<1x256x128xbf16, #tpu.memory_space<vmem>>, vector<1x256x128xbf16>
    %73 = vector.shape_cast %72 : vector<1x256x128xbf16> to vector<256x128xbf16>
    %74 = vector.shape_cast %71 : vector<256x128xbf16> to vector<1x256x128xbf16>
    tpu.vector_store %arg5[%c0_74, %c0_75, %c0_76], %74 {strides = array<i32>} : memref<1x256x128xbf16, #tpu.memory_space<vmem>>, vector<1x256x128xbf16>,
    return
  }
  func.func @transform_0(%arg0: i32, %arg1: i32) -> (i32, i32, i32, i32, i32) {
    %c0_i32 = arith.constant 0 : i32
    %c0_i32_0 = arith.constant 0 : i32
    %c0_i32_1 = arith.constant 0 : i32
    %c0_i32_2 = arith.constant 0 : i32
    return %arg0, %arg1, %c0_i32, %c0_i32_0, %c0_i32_1 : i32, i32, i32, i32, i32
  }
  func.func @transform_1(%arg0: i32, %arg1: i32) -> (i32, i32, i32) {
    %c0_i32 = arith.constant 0 : i32
    %c0_i32_0 = arith.constant 0 : i32
    %c0_i32_1 = arith.constant 0 : i32
    %c0_i32_2 = arith.constant 0 : i32
    return %c0_i32, %c0_i32_0, %c0_i32_1 : i32, i32, i32
  }
  func.func @transform_2(%arg0: i32, %arg1: i32) -> (i32, i32) {
    %c0_i32 = arith.constant 0 : i32
    %c0_i32_0 = arith.constant 0 : i32
    %c0_i32_1 = arith.constant 0 : i32
    return %c0_i32, %c0_i32_0 : i32, i32
  }
  func.func @transform_3(%arg0: i32, %arg1: i32) -> (i32, i32, i32) {
    %c1_i32 = arith.constant 1 : i32
    %0 = arith.muli %arg0, %c1_i32 : i32
    %1 = arith.addi %0, %arg1 : i32
    %c0_i32 = arith.constant 0 : i32
    %c0_i32_0 = arith.constant 0 : i32
    %c0_i32_1 = arith.constant 0 : i32
    return %1, %c0_i32, %c0_i32_0 : i32, i32, i32
  }
}

</mosaic_0001>

<bundles_post_ra>
// kernel: tpu_custom_call.1
= control target key start
LH: loop header
LB: loop body
LE: loop exit
PB: predicated region body
PF: predicated region fallthrough
CT: control target
= control target key end

     0   :  { %8 = vsyncpa [#allocation3], 0  ;;  %s9650_s0 = inlined_call_operand.vmem [shape: bf16[2,1,18,18,4], index: 0, kind: input, shape index: {}]   ;;  %s9651_s1 = inlined_call_operand.vmem [shape: bf16[9,4,128], index: 1, kind: input, shape index: {}]   ;;  %s9652_s2 = inlined_call_operand.vmem [shape: f32[1,128], index: 2, kind: input, shape index: {}]   ;;  %s9653_s3 = inlined_call_operand.hbm [shape: bf16[2,256,128], index: 3, kind: output, shape index: {}]  }
   0x1   :  { %10 = vsyncpa [#allocation3 + $0x1], 0  ;;  %s6825_s12 = smov 0   ;;  %s6827_s13 = smov 0  }
   0x2   :  { %s6829_s14 = smov 0   ;;  %s6831_s15 = smov 0  }
   0x3   :  { %s6833_s16 = smov 0   ;;  %s6835_s17 = smov 0  }
   0x4 LB: > { %s5276_s18 = sadd.s32 4294967295, %s6800_s17   ;;  %s5277_s19 = sadd.s32 4294967294, %s6800_s17   ;;  %s6800_s17 = sphi %s6835_s17, %s16_s17   ;;  %s6796_s16 = sphi %s6833_s16, %s9872_s16   ;;  %s6792_s15 = sphi %s6831_s15, %s9871_s15   ;;  %s6788_s14 = sphi %s6829_s14, %s9870_s14   ;;  %s6784_s13 = sphi %s6827_s13, %s9869_s13   ;;  %s6780_s12 = sphi %s6825_s12, %s9868_s12  }
   0x5   : > { %s28_s20 = sadd.s32 1, %s6796_s16  ;;  %s107_s21 = sadd.s32 1, %s6788_s14 }
   0x6   : > { %p30_p0 = scmp.ge.s32.totalorder %s28_s20, 2  ;;  %p117_p1 = scmp.ne.s32.totalorder %s6788_s14, %s6784_s13 }
   0x7   : > { %p118_p2 = scmp.eq.s32.totalorder %s5276_s18, 1  ;;  %p123_p3 = scmp.ne.s32.totalorder %s6784_s13, %s6780_s12 }
   0x8   : > { %s9874_s20 = smov (%p30_p0, %s28_s20), 0  ;;  %p124_p5 = scmp.eq.s32.totalorder %s5277_s19, 1 }
   0x9   : > { %p6865_p4 = por %p118_p2, %p117_p1  ;;  %s104_s23 = ssub.s32 %s6796_s16, %s9874_s20 }
   0xa   : > { %p5280_p6 = scmp.ge.s32.totalorder %s6800_s17, 1  ;;  %p105_p7 = scmp.eq.s32.totalorder %s104_s23, 0 }
   0xb   : > { %p6872_p8 = por %p124_p5, %p123_p3  ;;  %p160_p9 = scmp.lt.s32.totalorder %s6800_s17, 3 }
   0xc   : > { %s6878_s25 = scalar_select %p105_p7, %s6788_s14, %s107_s21  }
   0xd   : > { %p161_p10 = pnand %p5280_p6, %p160_p9 }
   0xf   : > { %164 = sbr.rel (%p161_p10) target bundleno = 618 (0x26a), region = 32 }
  0x14   : > { %v5283_v0 = vld [vmem:[%s9651_s1 + $0x2] sm:$0x3]  ;;  %vm734_vm0 = vcmask 1041408   ;;  %p188_p11 = scmp.lt.s32.totalorder %s6792_s15, 1  ;;  %v231_v2 = vld [vmem:[%s9651_s1] sm:$0x3] }
  0x15   : > { %6479 = vmatprep.subr.msk.bf16.mxu1 %vm734_vm0, %v5283_v0  ;;  %6478 = vmatprep.subr.msk.bf16.mxu0 %vm734_vm0, %v5283_v0  ;;  %v736_v1 = vsel %vm734_vm0, %v5283_v0, 0  ;;  %v5364_v3 = vld [vmem:[%s9651_s1 + $0x4] sm:$0x3]  ;;  %vm248_vm1 = vsmask.f32 3328  ;;  %v6902_v4 = vsel %vm734_vm0, %v231_v2, 0 }
  0x16   : > { %6477 = vmatpush3.bf16.msra.mxu1 %v736_v1  ;;  %6171 = vmatpush3.bf16.msra.mxu0 %v736_v1  ;;  %s189_s30 = scalar_select %p188_p11, %s6792_s15, 1  ;;  %vm249_vm2 = vsmask.f32 7440  ;;  %vm685_vm3 = vcmask 31744   ;;  %v6928_v16 = vsel %vm734_vm0, %v5364_v3, 0  ;;  %vm1239_vm5 = vcmask 1042432  }
  0x17   : > { %6480 = vmatprep.subr.msk.bf16.mxu1 %vm734_vm0, %v231_v2  ;;  %6481 = vmatprep.subr.msk.bf16.mxu0 %vm734_vm0, %v5364_v3  ;;  %vm6943_vm4 = vmor %vm248_vm1, %vm249_vm2  ;;  %vm1240_vm6 = vcmask 1046532   ;;  %s185_s7 = sand.u32 1, %s6784_s13   ;;  %s5921_s10 = sshll.u32 %s6792_s15, 11 }
  0x18   : > { %s6488_s6 = smul.u32 216, %s189_s30  ;;  %vm7229_vm7 = vmor %vm1239_vm5, %vm1240_vm6  ;;  %s9473_s8 = sshll.u32 %s185_s7, 7 }
  0x19   : > { %s9597_s21 = scalar_lea.hbm %s9653_s3, %s5921_s10  ;;  %s9605_s15 = scalar_lea.sflag [#allocation3], %s185_s7 }
  0x1a   : > { %s6899_s9 = scalar_lea.vmem %s9650_s0, %s6488_s6  ;;  %s6802_s26 = smov [#allocation2]  }
  0x1b   : > { %v6905_v5 = vld [vmem:[%s6899_s9] sm:$0xf]  ;;  %v6908_v6 = vld [vmem:[%s6899_s9 + $0x4] sm:$0xf]  ;;  %v6911_v7 = vld [vmem:[%s6899_s9 + $0x8] sm:$0x1] }
  0x1c   : > { %v252_v8 = vshrl.u32 %v6905_v5, 16  ;;  %v255_v9 = vshll.u32 %v6905_v5, 16  ;;  %v261_v10 = vshll.u32 %v6908_v6, 16  ;;  %v265_v11 = vshrl.u32 %v6908_v6, 16  ;;  %v6918_v12 = vld [vmem:[%s6899_s9 + $0x60] sm:$0xf] }
  0x1d   : > { %v271_v13 = vshll.u32 %v6911_v7, 16  ;;  %v6922_v14 = vld [vmem:[%s6899_s9 + $0x64] sm:$0xf]  ;;  %v6925_v15 = vld [vmem:[%s6899_s9 + $0x68] sm:$0x1]  ;;  %v444_v22 = vshrl.u32 %v6918_v12, 16 }
  0x1e   : > { %v254_v17 = vrot.slane %v252_v8, 4  ;;  %v257_v18 = vrot.slane %v255_v9, 5  ;;  %v263_v19 = vrot.slane %v261_v10, 5  ;;  %v267_v20 = vrot.slane %v265_v11, 4  ;;  %v6936_v29 = vld [vmem:[%s6899_s9 + $0xc] sm:$0xf] }
  0x1f   : > { %v273_v21 = vrot.slane %v271_v13, 5  ;;  %v447_v23 = vshll.u32 %v6918_v12, 16  ;;  %v453_v24 = vshll.u32 %v6922_v14, 16  ;;  %v457_v27 = vshrl.u32 %v6922_v14, 16  ;;  %v6939_v30 = vld [vmem:[%s6899_s9 + $0x10] sm:$0xf] }
  0x20   : > { %v258_v25 = vor.u32 %v257_v18, %v254_v17  ;;  %v268_v26 = vor.u32 %v267_v20, %v263_v19  ;;  %v463_v28 = vshll.u32 %v6925_v15, 16  ;;  %v446_v33 = vrot.slane %v444_v22, 4  ;;  %v6949_v41 = vld [vmem:[%s6899_s9 + $0x14] sm:$0x1]  ;;  %v6960_v53 = vld [vmem:[%s6899_s9 + $0x6c] sm:$0xf] }
  0x21   : > { %v449_v34 = vrot.slane %v447_v23, 5  ;;  %v455_v35 = vrot.slane %v453_v24, 5  ;;  %v459_v38 = vrot.slane %v457_v27, 4  ;;  %v276_v42 = vshrl.u32 %v6936_v29, 16  ;;  %v6964_v58 = vld [vmem:[%s6899_s9 + $0x70] sm:$0xf] }
  0x22   : > { %v259_v36 = vrot.slane %v258_v25, 4  ;;  %v269_v37 = vrot.slane %v268_v26, 4  ;;  %v465_v39 = vrot.slane %v463_v28, 5  ;;  %v279_v43 = vshll.u32 %v6936_v29, 16  ;;  %v6972_v63 = vld [vmem:[%s6899_s9 + $0x74] sm:$0x1] }
  0x23   : > { %v450_v40 = vor.u32 %v449_v34, %v446_v33  ;;  %v285_v44 = vshll.u32 %v6939_v30, 16  ;;  %v460_v47 = vor.u32 %v459_v38, %v455_v35  ;;  %v289_v48 = vshrl.u32 %v6939_v30, 16  ;;  %v6978_v8 = vld [vmem:[%s6899_s9 + $0x18] sm:$0xf]  ;;  %v6991_v25 = vld [vmem:[%s6899_s9 + $0x20] sm:$0x1] }
  0x24   : > { %v264_v45 = vsel %vm6943_vm4, %v259_v36, %v263_v19  ;;  %v274_v46 = vsel %vm6943_vm4, %v269_v37, %v273_v21  ;;  %v278_v51 = vrot.slane %v276_v42, 4  ;;  %v281_v52 = vrot.slane %v279_v43, 5  ;;  %v6985_v21 = vld [vmem:[%s6899_s9 + $0x1c] sm:$0xf]  ;;  %s6728_s27 = sshll.u32 %s6802_s26, 4  ;;  %s6729_s27 = int_to_ptr.vmem [resolvable:$false] %s6728_s27 }
  0x25   : > { %v5284_v49 = vcombine.low %v264_v45, %v274_v46  ;;  %v451_v50 = vrot.slane %v450_v40, 4  ;;  %v461_v54 = vrot.slane %v460_v47, 4  ;;  %v287_v55 = vrot.slane %v285_v44, 5  ;;  %v7004_v40 = vld [vmem:[%s9651_s1 + $0x8] sm:$0x3]  ;;  %s6730_s28 = scalar_lea.vmem %s6729_s27, 4096 }
  0x26   : > { %v291_v56 = vrot.slane %v289_v48, 4  ;;  %v295_v57 = vshll.u32 %v6949_v41, 16  ;;  %v282_v60 = vor.u32 %v281_v52, %v278_v51  ;;  %v468_v3 = vshrl.u32 %v6960_v53, 16  ;;  %v7009_v46 = vld [vmem:[%s6899_s9 + $0x7c] sm:$0xf] }
  0x27   : > { %6172 = vmatprep.mubr.msk.bf16.mxu0 %vm685_vm3, %v5284_v49  ;;  %v456_v59 = vsel %vm6943_vm4, %v451_v50, %v455_v35  ;;  %v466_v0 = vsel %vm6943_vm4, %v461_v54, %v465_v39  ;;  %v471_v11 = vshll.u32 %v6960_v53, 16  ;;  %v477_v13 = vshll.u32 %v6964_v58, 16  ;;  %v6998_v35 = vld [vmem:[%s6899_s9 + $0x78] sm:$0xf] }
  0x28   : > { %v292_v1 = vor.u32 %v291_v56, %v287_v55  ;;  %v297_v2 = vrot.slane %v295_v57, 5  ;;  %v5292_v9 = vcombine.low %v456_v59, %v466_v0  ;;  %v283_v10 = vrot.slane %v282_v60, 4  ;;  %v7016_v56 = vld [vmem:[%s6899_s9 + $0x80] sm:$0x1] }
  0x29   : > { %v470_v18 = vrot.slane %v468_v3, 4  ;;  %v481_v19 = vshrl.u32 %v6964_v58, 16  ;;  %v487_v20 = vshll.u32 %v6972_v63, 16  ;;  %v473_v23 = vrot.slane %v471_v11, 5  ;;  %9691 = vst [vmem:[#allocation5_spill] sm:$0xff] %v7016_v56 }
  0x2a   : > { %v293_v17 = vrot.slane %v292_v1, 4  ;;  %6188 = vmatprep.mubr.msk.bf16.mxu1 %vm685_vm3, %v5292_v9  ;;  %v288_v22 = vsel %vm6943_vm4, %v283_v10, %v287_v55  ;;  %v479_v24 = vrot.slane %v477_v13, 5  ;;  %v300_v26 = vshrl.u32 %v6978_v8, 16  ;;  %v7022_v1 = vld [vmem:[%s6899_s9 + $0x24] sm:$0xf] }
  0x2b   : > { %v483_v28 = vrot.slane %v481_v19, 4  ;;  %v489_v33 = vrot.slane %v487_v20, 5  ;;  %v303_v34 = vshll.u32 %v6978_v8, 16  ;;  %v474_v37 = vor.u32 %v473_v23, %v470_v18  ;;  %v7030_v10 = vld [vmem:[%s6899_s9 + $0x28] sm:$0xf] }
  0x2c   : > { %v298_v27 = vsel %vm6943_vm4, %v293_v17, %v297_v2  ;;  %v302_v38 = vrot.slane %v300_v26, 4  ;;  %v309_v39 = vshll.u32 %v6985_v21, 16  ;;  %v313_v44 = vshrl.u32 %v6985_v21, 16  ;;  %v7036_v19 = vld [vmem:[%s9651_s1 + $0x6] sm:$0x3] }
  0x2d   : > { %v5285_v36 = vcombine.low %v288_v22, %v298_v27  ;;  %v484_v42 = vor.u32 %v483_v28, %v479_v24  ;;  %v305_v43 = vrot.slane %v303_v34, 5  ;;  %v319_v45 = vshll.u32 %v6991_v25, 16 }
  0x2e   : > { %v475_v47 = vrot.slane %v474_v37, 4  ;;  %v311_v48 = vrot.slane %v309_v39, 5  ;;  %v492_v49 = vshrl.u32 %v6998_v35, 16  ;;  %v495_v50 = vshll.u32 %v6998_v35, 16 }
  0x2f   : > { %6173 = vmatmul.mubr.msk.bf16.vlgmr.msra.gmra.mxu0 %vm685_vm3, %v5285_v36  ;;  %v485_v51 = vrot.slane %v484_v42, 4  ;;  %v306_v52 = vor.u32 %v305_v43, %v302_v38  ;;  %v315_v54 = vrot.slane %v313_v44, 4  ;;  %v321_v55 = vrot.slane %v319_v45, 5  ;;  %v7048_v36 = vld [vmem:[%s6899_s9 + $0x84] sm:$0xf] }
  0x30   : > { %6239 = vmatpush3.bf16.msra.mxu0 %v6928_v16  ;;  %v480_v57 = vsel %vm6943_vm4, %v475_v47, %v479_v24  ;;  %v494_v59 = vrot.slane %v492_v49, 4  ;;  %v497_v60 = vrot.slane %v495_v50, 5  ;;  %v501_v0 = vshll.u32 %v7009_v46, 16  ;;  %v7041_v24 = vld [vmem:[%s6899_s9 + $0x2c] sm:$0x1] }
  0x31   : > { %6483 = vmatprep.subr.msk.bf16.mxu0 %vm734_vm0, %v7004_v40  ;;  %v490_v16 = vsel %vm6943_vm4, %v485_v51, %v489_v33  ;;  %v307_v2 = vrot.slane %v306_v52, 4  ;;  %v316_v3 = vor.u32 %v315_v54, %v311_v48  ;;  %v505_v9 = vshrl.u32 %v7009_v46, 16  ;;  %v7055_v43 = vld [vmem:[%s6899_s9 + $0x88] sm:$0xf]  ;;  %v7063_v51 = vld [vmem:[%s6899_s9 + $0x8c] sm:$0x1] }
  0x32   : > { %v5293_v11 = vcombine.low %v480_v57, %v490_v16  ;;  %v498_v13 = vor.u32 %v497_v60, %v494_v59  ;;  %v503_v17 = vrot.slane %v501_v0, 5  ;;  %v511_v18 = vshll.u32 %v7016_v56, 16  ;;  %9692 = vst [vmem:[#allocation6_spill] sm:$0xff] %v7063_v51  ;;  %v7071_v60 = vld [vmem:[%s6899_s9 + $0x30] sm:$0xf] }
  0x33   : > { %v312_v20 = vsel %vm6943_vm4, %v307_v2, %v311_v48  ;;  %v317_v22 = vrot.slane %v316_v3, 4  ;;  %v507_v23 = vrot.slane %v505_v9, 4  ;;  %v324_v26 = vshrl.u32 %v7022_v1, 16  ;;  %v7076_v9 = vld [vmem:[%s6899_s9 + $0x34] sm:$0xf] }
  0x34   : > { %6189 = vmatmul.mubr.msk.bf16.vlgmr.msra.gmra.mxu1 %vm685_vm3, %v5293_v11  ;;  %v499_v27 = vrot.slane %v498_v13, 4  ;;  %v513_v28 = vrot.slane %v511_v18, 5  ;;  %v327_v33 = vshll.u32 %v7022_v1, 16  ;;  %v333_v34 = vshll.u32 %v7030_v10, 16 }
  0x35   : > { %6205 = vmatpush3.bf16.msra.mxu1 %v6902_v4  ;;  %v322_v37 = vsel %vm6943_vm4, %v317_v22, %v321_v55  ;;  %v508_v38 = vor.u32 %v507_v23, %v503_v17  ;;  %v326_v39 = vrot.slane %v324_v26, 4  ;;  %v337_v42 = vshrl.u32 %v7030_v10, 16 }
  0x36   : > { %v5286_v44 = vcombine.low %v312_v20, %v322_v37  ;;  %v504_v45 = vsel %vm6943_vm4, %v499_v27, %v503_v17  ;;  %v329_v47 = vrot.slane %v327_v33, 5  ;;  %v335_v48 = vrot.slane %v333_v34, 5  ;;  %6482 = vmatprep.subr.msk.bf16.mxu1 %vm734_vm0, %v7036_v19  ;;  %v7084_v33 = vld [vmem:[%s6899_s9 + $0x38] sm:$0x1] }
  0x37   : > { %v509_v4 = vrot.slane %v508_v38, 4  ;;  %v339_v49 = vrot.slane %v337_v42, 4  ;;  %v343_v50 = vshll.u32 %v7041_v24, 16  ;;  %v516_v52 = vshrl.u32 %v7048_v36, 16  ;;  %v7089_v38 = vld [vmem:[%s6899_s9 + $0x90] sm:$0xf] }
  0x38   : > { %6176 = vmatprep.mubr.msk.bf16.mxu0 %vm685_vm3, %v5286_v44  ;;  %v330_v54 = vor.u32 %v329_v47, %v326_v39  ;;  %v519_v55 = vshll.u32 %v7048_v36, 16  ;;  %v525_v57 = vshll.u32 %v7055_v43, 16  ;;  %v529_v59 = vshrl.u32 %v7055_v43, 16  ;;  %9693 = vst [vmem:[#allocation7_spill] sm:$0xff] %v7089_v38  ;;  %v7094_v47 = vld [vmem:[%s6899_s9 + $0x94] sm:$0xf] }
  0x39   : > { %v514_v0 = vsel %vm6943_vm4, %v509_v4, %v513_v28  ;;  %v340_v16 = vor.u32 %v339_v49, %v335_v48  ;;  %v345_v2 = vrot.slane %v343_v50, 5  ;;  %v518_v3 = vrot.slane %v516_v52, 4  ;;  %9694 = vst [vmem:[#allocation8_spill] sm:$0xff] %v7094_v47 }
  0x3a   : > { %v5294_v11 = vcombine.low %v504_v45, %v514_v0  ;;  %v331_v13 = vrot.slane %v330_v54, 4  ;;  %v521_v17 = vrot.slane %v519_v55, 5  ;;  %v527_v18 = vrot.slane %v525_v57, 5 }
  0x3b   : > { %v341_v20 = vrot.slane %v340_v16, 4  ;;  %v531_v22 = vrot.slane %v529_v59, 4  ;;  %v535_v23 = vshll.u32 %v7063_v51, 16  ;;  %v348_v26 = vshrl.u32 %v7071_v60, 16  ;;  %v7103_v16 = vld [vmem:[%s6899_s9 + $0x98] sm:$0x1] }
  0x3c   : > { %6192 = vmatprep.mubr.msk.bf16.mxu1 %vm685_vm3, %v5294_v11  ;;  %v336_v27 = vsel %vm6943_vm4, %v331_v13, %v335_v48  ;;  %v522_v28 = vor.u32 %v521_v17, %v518_v3  ;;  %v351_v34 = vshll.u32 %v7071_v60, 16  ;;  %v357_v37 = vshll.u32 %v7076_v9, 16  ;;  %9695 = vst [vmem:[#allocation9_spill] sm:$0xff] %v7103_v16  ;;  %v7108_v11 = vld [vmem:[%s6899_s9 + $0x3c] sm:$0xf] }
  0x3d   : > { %v346_v39 = vsel %vm6943_vm4, %v341_v20, %v345_v2  ;;  %v532_v42 = vor.u32 %v531_v22, %v527_v18  ;;  %v537_v44 = vrot.slane %v535_v23, 5  ;;  %v350_v45 = vrot.slane %v348_v26, 4  ;;  %v7113_v23 = vld [vmem:[%s6899_s9 + $0x40] sm:$0xf]  ;;  %v1192_v51 = vld [vmem:[%s6899_s9 + $0xc] sm:$0xe] }
  0x3e   : > { %v5287_v48 = vcombine.low %v336_v27, %v346_v39  ;;  %v523_v4 = vrot.slane %v522_v28, 4  ;;  %v353_v49 = vrot.slane %v351_v34, 5  ;;  %v359_v50 = vrot.slane %v357_v37, 5 }
  0x3f   : > { %v533_v52 = vrot.slane %v532_v42, 4  ;;  %v361_v54 = vshrl.u32 %v7076_v9, 16  ;;  %v367_v55 = vshll.u32 %v7084_v33, 16  ;;  %v540_v57 = vshrl.u32 %v7089_v38, 16 }
  0x40   : > { %6177 = vmatmul.mubr.msk.bf16.gmra.mxu0 %vm685_vm3, %v5287_v48  ;;  %v528_v59 = vsel %vm6943_vm4, %v523_v4, %v527_v18  ;;  %v354_v0 = vor.u32 %v353_v49, %v350_v45  ;;  %v543_v2 = vshll.u32 %v7089_v38, 16  ;;  %v549_v3 = vshll.u32 %v7094_v47, 16  ;;  %v7122_v48 = vld [vmem:[%s6899_s9 + $0x44] sm:$0x1] }
  0x41   : > { %v538_v13 = vsel %vm6943_vm4, %v533_v52, %v537_v44  ;;  %v363_v17 = vrot.slane %v361_v54, 4  ;;  %v369_v20 = vrot.slane %v367_v55, 5  ;;  %v542_v22 = vrot.slane %v540_v57, 4  ;;  %v7127_v52 = vld [vmem:[%s6899_s9 + $0x9c] sm:$0xf] }
  0x42   : > { %v5295_v18 = vcombine.low %v528_v59, %v538_v13  ;;  %v355_v26 = vrot.slane %v354_v0, 4  ;;  %v545_v27 = vrot.slane %v543_v2, 5  ;;  %v551_v28 = vrot.slane %v549_v3, 5  ;;  %9696 = vst [vmem:[#allocation10_spill] sm:$0xff] %v7127_v52  ;;  %v7131_v13 = vld [vmem:[%s6899_s9 + $0xa0] sm:$0xf] }
  0x43   : > { %v364_v34 = vor.u32 %v363_v17, %v359_v50  ;;  %v553_v37 = vshrl.u32 %v7094_v47, 16  ;;  %v559_v39 = vshll.u32 %v7103_v16, 16  ;;  %v372_v42 = vshrl.u32 %v7108_v11, 16  ;;  %9697 = vst [vmem:[#allocation11_spill] sm:$0xff] %v7131_v13 }
  0x44   : > { %6193 = vmatmul.mubr.msk.bf16.gmra.mxu1 %vm685_vm3, %v5295_v18  ;;  %v360_v44 = vsel %vm6943_vm4, %v355_v26, %v359_v50  ;;  %v546_v45 = vor.u32 %v545_v27, %v542_v22  ;;  %v375_v4 = vshll.u32 %v7108_v11, 16  ;;  %v381_v49 = vshll.u32 %v7113_v23, 16  ;;  %v7137_v26 = vld [vmem:[%s6899_s9 + $0xa4] sm:$0x1] }
  0x45   : > { %v365_v54 = vrot.slane %v364_v34, 4  ;;  %v555_v55 = vrot.slane %v553_v37, 4  ;;  %v561_v57 = vrot.slane %v559_v39, 5  ;;  %v374_v59 = vrot.slane %v372_v42, 4  ;;  %9698 = vst [vmem:[#allocation12_spill] sm:$0xff] %v7137_v26 }
  0x46   : > { %v547_v0 = vrot.slane %v546_v45, 4  ;;  %v377_v2 = vrot.slane %v375_v4, 5  ;;  %v383_v3 = vrot.slane %v381_v49, 5  ;;  %v385_v50 = vshrl.u32 %v7113_v23, 16  ;;  %v7141_v34 = vld [vmem:[%s6899_s9 + $0x48] sm:$0xf] }
  0x47   : > { %v370_v17 = vsel %vm6943_vm4, %v365_v54, %v369_v20  ;;  %v556_v22 = vor.u32 %v555_v55, %v551_v28  ;;  %v391_v18 = vshll.u32 %v7122_v48, 16  ;;  %v564_v27 = vshrl.u32 %v7127_v52, 16 }
  0x48   : > { %v5288_v37 = vcombine.low %v360_v44, %v370_v17  ;;  %v552_v39 = vsel %vm6943_vm4, %v547_v0, %v551_v28  ;;  %v378_v42 = vor.u32 %v377_v2, %v374_v59  ;;  %v387_v45 = vrot.slane %v385_v50, 4  ;;  %v7150_v17 = vld [vmem:[%s6899_s9 + $0x4c] sm:$0xf]  ;;  %v7156_v2 = vld [vmem:[%s6899_s9 + $0x50] sm:$0x1] }
  0x49   : > { %v557_v4 = vrot.slane %v556_v22, 4  ;;  %v393_v49 = vrot.slane %v391_v18, 5  ;;  %v566_v20 = vrot.slane %v564_v27, 4  ;;  %v567_v54 = vshll.u32 %v7127_v52, 16 }
  0x4a   : > { %6180 = vmatprep.mubr.msk.bf16.mxu0 %vm685_vm3, %v5288_v37  ;;  %v379_v55 = vrot.slane %v378_v42, 4  ;;  %v388_v62 = vor.u32 %v387_v45, %v383_v3  ;;  %v573_v32 = vshll.u32 %v7131_v13, 16  ;;  %v577_v44 = vshrl.u32 %v7131_v13, 16  ;;  %v7162_v42 = vld [vmem:[%s6899_s9 + $0xa8] sm:$0xf] }
  0x4b   : > { %v562_v28 = vsel %vm6943_vm4, %v557_v4, %v561_v57  ;;  %v569_v59 = vrot.slane %v567_v54, 5  ;;  %v583_v0 = vshll.u32 %v7137_v26, 16  ;;  %v396_v50 = vshrl.u32 %v7141_v34, 16  ;;  %9699 = vst [vmem:[#allocation13_spill] sm:$0xff] %v7162_v42 }
  0x4c   : > { %v5296_v22 = vcombine.low %v552_v39, %v562_v28  ;;  %v384_v18 = vsel %vm6943_vm4, %v379_v55, %v383_v3  ;;  %v389_v27 = vrot.slane %v388_v62, 4  ;;  %v575_v37 = vrot.slane %v573_v32, 5 }
  0x4d   : > { %v570_v45 = vor.u32 %v569_v59, %v566_v20  ;;  %v579_v61 = vrot.slane %v577_v44, 4  ;;  %v585_v57 = vrot.slane %v583_v0, 5  ;;  %v398_v4 = vrot.slane %v396_v50, 4  ;;  %v7172_v44 = vld [vmem:[%s6899_s9 + $0xac] sm:$0xf] }
  0x4e   : > { %6196 = vmatprep.mubr.msk.bf16.mxu1 %vm685_vm3, %v5296_v22  ;;  %v394_v54 = vsel %vm6943_vm4, %v389_v27, %v393_v49  ;;  %v399_v39 = vshll.u32 %v7141_v34, 16  ;;  %v405_v28 = vshll.u32 %v7150_v17, 16  ;;  %v409_v62 = vshrl.u32 %v7150_v17, 16  ;;  %9700 = vst [vmem:[#allocation14_spill] sm:$0xff] %v7172_v44  ;;  %v7175_v22 = vld [vmem:[%s6899_s9 + $0xb0] sm:$0x1] }
  0x4f   : > { %v5289_v3 = vcombine.low %v384_v18, %v394_v54  ;;  %v571_v32 = vrot.slane %v570_v45, 4  ;;  %v580_v55 = vor.u32 %v579_v61, %v575_v37  ;;  %v415_v20 = vshll.u32 %v7156_v2, 16  ;;  %9701 = vst [vmem:[#allocation15_spill] sm:$0xff] %v7175_v22 }
  0x50   : > { %v401_v59 = vrot.slane %v399_v39, 5  ;;  %v407_v0 = vrot.slane %v405_v28, 5  ;;  %v411_v50 = vrot.slane %v409_v62, 4  ;;  %v588_v49 = vshrl.u32 %v7162_v42, 16  ;;  %v7184_v62 = vld [vmem:[%s6899_s9 + $0x54] sm:$0xf] }
  0x51   : > { %6181 = vmatmul.mubr.msk.bf16.gmra.mxu0 %vm685_vm3, %v5289_v3  ;;  %v576_v18 = vsel %vm6943_vm4, %v571_v32, %v575_v37  ;;  %v581_v27 = vrot.slane %v580_v55, 4  ;;  %v417_v61 = vrot.slane %v415_v20, 5  ;;  %v591_v45 = vshll.u32 %v7162_v42, 16  ;;  %v7191_v55 = vld [vmem:[%s6899_s9 + $0x58] sm:$0xf] }
  0x52   : > { %v402_v54 = vor.u32 %v401_v59, %v398_v4  ;;  %v412_v56 = vor.u32 %v411_v50, %v407_v0  ;;  %v590_v39 = vrot.slane %v588_v49, 4  ;;  %v597_v28 = vshll.u32 %v7172_v44, 16  ;;  %v7194_v49 = vld [vmem:[%s6899_s9 + $0x5c] sm:$0x1] }
  0x53   : > { %v586_v3 = vsel %vm6943_vm4, %v581_v27, %v585_v57  ;;  %v593_v26 = vrot.slane %v591_v45, 5  ;;  %v601_v37 = vshrl.u32 %v7172_v44, 16  ;;  %v607_v32 = vshll.u32 %v7175_v22, 16  ;;  %v1191_v22 = vld [vmem:[%s6899_s9] sm:$0xe] }
  0x54   : > { %v5297_v4 = vcombine.low %v576_v18, %v586_v3  ;;  %v403_v20 = vrot.slane %v402_v54, 4  ;;  %v413_v59 = vrot.slane %v412_v56, 4  ;;  %v599_v50 = vrot.slane %v597_v28, 5  ;;  %v7205_v54 = vld [vmem:[%s6899_s9 + $0xb4] sm:$0xf] }
  0x55   : > { %v594_v42 = vor.u32 %v593_v26, %v590_v39  ;;  %v603_v52 = vrot.slane %v601_v37, 4  ;;  %v609_v13 = vrot.slane %v607_v32, 5  ;;  %v420_v57 = vshrl.u32 %v7184_v62, 16  ;;  %9702 = vst [vmem:[#allocation16_spill] sm:$0xff] %v7205_v54  ;;  %v7208_v37 = vld [vmem:[%s6899_s9 + $0xb8] sm:$0xf] }
  0x56   : > { %6197 = vmatmul.mubr.msk.bf16.gmra.mxu1 %vm685_vm3, %v5297_v4  ;;  %v408_v27 = vsel %vm6943_vm4, %v403_v20, %v407_v0  ;;  %v418_v18 = vsel %vm6943_vm4, %v413_v59, %v417_v61  ;;  %v423_v56 = vshll.u32 %v7184_v62, 16  ;;  %v429_v45 = vshll.u32 %v7191_v55, 16  ;;  %v7213_v61 = vld [vmem:[%s6899_s9 + $0xbc] sm:$0x1] }
  0x57   : > { %v5290_v26 = vcombine.low %v408_v27, %v418_v18  ;;  %v595_v39 = vrot.slane %v594_v42, 4  ;;  %v604_v28 = vor.u32 %v603_v52, %v599_v50  ;;  %v422_v3 = vrot.slane %v420_v57, 4 }
  0x58   : > { %v425_v32 = vrot.slane %v423_v56, 5  ;;  %v431_v4 = vrot.slane %v429_v45, 5  ;;  %v433_v0 = vshrl.u32 %v7191_v55, 16  ;;  %v439_v20 = vshll.u32 %v7194_v49, 16 }
  0x59   : > { %6184 = vmatprep.mubr.msk.bf16.mxu0 %vm685_vm3, %v5290_v26  ;;  %v600_v59 = vsel %vm6943_vm4, %v595_v39, %v599_v50  ;;  %v605_v27 = vrot.slane %v604_v28, 4  ;;  %v612_v52 = vshrl.u32 %v7205_v54, 16  ;;  %v615_v42 = vshll.u32 %v7205_v54, 16 }
  0x5a   : > { %v426_v57 = vor.u32 %v425_v32, %v422_v3  ;;  %v435_v18 = vrot.slane %v433_v0, 4  ;;  %v441_v56 = vrot.slane %v439_v20, 5  ;;  %v621_v45 = vshll.u32 %v7208_v37, 16 }
  0x5b   : > { %v610_v44 = vsel %vm6943_vm4, %v605_v27, %v609_v13  ;;  %v614_v16 = vrot.slane %v612_v52, 4  ;;  %v617_v26 = vrot.slane %v615_v42, 5  ;;  %v625_v38 = vshrl.u32 %v7208_v37, 16 }
  0x5c   : > { %v5298_v50 = vcombine.low %v600_v59, %v610_v44  ;;  %v427_v39 = vrot.slane %v426_v57, 4  ;;  %v436_v28 = vor.u32 %v435_v18, %v431_v4  ;;  %v623_v47 = vrot.slane %v621_v45, 5  ;;  %v1193_v57 = vld [vmem:[%s6899_s9 + $0x18] sm:$0xe] }
  0x5d   : > { %v618_v54 = vor.u32 %v617_v26, %v614_v16  ;;  %v627_v3 = vrot.slane %v625_v38, 4  ;;  %v631_v32 = vshll.u32 %v7213_v61, 16  ;;  %v5348_v13 = vrot.slane %v1191_v22, 9 }
  0x5e   : > { %6200 = vmatprep.mubr.msk.bf16.mxu1 %vm685_vm3, %v5298_v50  ;;  %v432_v44 = vsel %vm6943_vm4, %v427_v39, %v431_v4  ;;  %v437_v20 = vrot.slane %v436_v28, 4  ;;  %v1244_v59 = vrot.slane %v6908_v6, 5  ;;  %v5317_v38 = vcombine.low %v6936_v29, %v6939_v30 }
  0x5f   : > { %v619_v16 = vrot.slane %v618_v54, 4  ;;  %v628_v27 = vor.u32 %v627_v3, %v623_v47  ;;  %v633_v52 = vrot.slane %v631_v32, 5  ;;  %v5349_v42 = vrot.slane %v1192_v51, 9 }
  0x60   : > { %v442_v18 = vsel %vm6943_vm4, %v437_v20, %v441_v56  ;;  %v1245_v22 = vsel %vm7229_vm7, %v5348_v13, %v1244_v59  ;;  %v1246_v45 = vrot.slane %v1244_v59, 4  ;;  %v9705_v4 = vrot.slane %v6939_v30, 5 }
  0x61   : > { %v5291_v50 = vcombine.low %v432_v44, %v442_v18  ;;  %v624_v54 = vsel %vm6943_vm4, %v619_v16, %v623_v47  ;;  %v629_v39 = vrot.slane %v628_v27, 4  ;;  %v5316_v51 = vcombine.low %v6905_v5, %v6908_v6  ;;  %v1194_v27 = vld [vmem:[%s6899_s9 + $0x24] sm:$0xe] }
  0x62   : > { %v1253_v26 = vrot.slane %v9705_v4, 4  ;;  %v9706_v28 = vrot.slane %v6911_v7, 5  ;;  %v9707_v3 = vmov %v9705_v4  ;;  %v5318_v13 = vcombine.low %v6978_v8, %v6985_v21  ;;  %v1196_v4 = vld [vmem:[%s6899_s9 + $0x3c] sm:$0xe] }
  0x63   : > { %v1252_v32 = vsel %vm7229_vm7, %v5349_v42, %v9707_v3  ;;  %v5350_v44 = vrot.slane %v1193_v57, 9  ;;  %6185 = vmatmul.mubr.msk.bf16.gmra.mxu0 %vm685_vm3, %v5291_v50  ;;  %v634_v47 = vsel %vm6943_vm4, %v629_v39, %v633_v52  ;;  %v9708_v6 = vrot.slane %v6949_v41, 5  ;;  %v1195_v42 = vld [vmem:[%s6899_s9 + $0x30] sm:$0xe]  ;;  %v1197_v39 = vld [vmem:[%s6899_s9 + $0x48] sm:$0xe] }
  0x64   : > { %v1248_v56 = vsel %vm7229_vm7, %v1246_v45, %v9706_v28  ;;  %v1258_v20 = vrot.slane %v6985_v21, 5  ;;  %v5299_v59 = vcombine.low %v624_v54, %v634_v47  ;;  %v1261_v16 = vrot.slane %v6991_v25, 5  ;;  %v1198_v47 = vld [vmem:[%s6899_s9 + $0x54] sm:$0xe]  ;;  %v7524_v21 = vld [vmem:[%s6899_s9 + $0x2c] sm:$0x1] }
  0x65   : > { %v5365_v5 = vcombine.low %v1245_v22, %v1248_v56  ;;  %v1255_v7 = vsel %vm7229_vm7, %v1253_v26, %v9708_v6  ;;  %v1812_v52 = vsel %vm734_vm0, %v7036_v19, 0  ;;  %v1265_v18 = vrot.slane %v7030_v10, 5 }
  0x66   : > { %v1259_v41 = vsel %vm7229_vm7, %v5350_v44, %v1258_v20  ;;  %v1260_v57 = vrot.slane %v1258_v20, 4  ;;  %6201 = vmatmul.mubr.msk.bf16.gmra.mxu1 %vm685_vm3, %v5299_v59  ;;  %v5366_v22 = vcombine.low %v1252_v32, %v1255_v7  ;;  %v2538_v25 = vsel %vm734_vm0, %v7004_v40, 0 }
  0x67   : > { %6240 = vmatprep.mubr.msk.bf16.mxu0 %vm685_vm3, %v5365_v5  ;;  %v1272_v45 = vrot.slane %v7076_v9, 5  ;;  %6206 = vmatprep.mubr.msk.bf16.mxu1 %vm685_vm3, %v5316_v51  ;;  %v5351_v26 = vrot.slane %v1194_v27, 9  ;;  %v1268_v50 = vrot.slane %v7041_v24, 5  ;;  %v5352_v54 = vrot.slane %v1195_v42, 9  ;;  %v7296_v24 = vld [vmem:[%s9651_s1 + $0xc] sm:$0x3] }
  0x68   : > { %v1262_v19 = vsel %vm7229_vm7, %v1260_v57, %v1261_v16  ;;  %v1267_v56 = vrot.slane %v1265_v18, 4  ;;  %v1275_v32 = vrot.slane %v7084_v33, 5  ;;  %v5353_v44 = vrot.slane %v1196_v4, 9 }
  0x69   : > { %v5367_v28 = vcombine.low %v1259_v41, %v1262_v19  ;;  %v1274_v3 = vrot.slane %v1272_v45, 4  ;;  %v1279_v40 = vrot.slane %v7113_v23, 5  ;;  %v1303_v5 = vrot.slane %v6925_v15, 5 }
  0x6a   : > { %v1282_v51 = vrot.slane %v7122_v48, 5  ;;  %v5354_v6 = vrot.slane %v1197_v39, 9  ;;  %v1286_v7 = vrot.slane %v7150_v17, 5  ;;  %v5319_v33 = vcombine.low %v7022_v1, %v7030_v10  ;;  %v1199_v1 = vld [vmem:[%s6899_s9 + $0x60] sm:$0xe] }
  0x6b   : > { %6241 = vmatmul.mubr.msk.bf16.vlgmr.msra.gmra.mxu0 %vm685_vm3, %v5366_v22  ;;  %v1266_v20 = vsel %vm7229_vm7, %v5351_v26, %v1265_v18  ;;  %v1281_v59 = vrot.slane %v1279_v40, 4  ;;  %v1289_v16 = vrot.slane %v7156_v2, 5  ;;  %v1269_v48 = vsel %vm7229_vm7, %v1267_v56, %v1268_v50  ;;  %v7324_v22 = vld [vmem:[%s9651_s1 + $0xa] sm:$0x3]  ;;  %v7349_v50 = vld [vmem:[%s6899_s9 + $0x6c] sm:$0xe] }
  0x6c   : > { %6307 = vmatpush3.bf16.msra.mxu0 %v2538_v25  ;;  %6244 = vmatprep.mubr.msk.bf16.mxu0 %vm685_vm3, %v5367_v28  ;;  %v1273_v27 = vsel %vm7229_vm7, %v5352_v54, %v1272_v45  ;;  %v1276_v42 = vsel %vm7229_vm7, %v1274_v3, %v1275_v32  ;;  %v1288_v41 = vrot.slane %v1286_v7, 4  ;;  %v7314_v10 = vsel %vm7229_vm7, %v5353_v44, %v1279_v40  ;;  %v1202_v39 = vld [vmem:[%s6899_s9 + $0x84] sm:$0xe]  ;;  %v7378_v44 = vld [vmem:[%s6899_s9 + $0x78] sm:$0xe] }
  0x6d   : > { %v7318_v2 = vsel %vm7229_vm7, %v5354_v6, %v1286_v7  ;;  %v5355_v57 = vrot.slane %v1198_v47, 9  ;;  %v1293_v18 = vrot.slane %v7191_v55, 5  ;;  %6485 = vmatprep.subr.msk.bf16.mxu0 %vm734_vm0, %v7296_v24  ;;  %v7334_v25 = vsel %vm7229_vm7, %v1281_v59, %v1282_v51  ;;  %v1203_v40 = vld [vmem:[%s6899_s9 + $0x90] sm:$0xe] }
  0x6e   : > { %6207 = vmatmul.mubr.msk.bf16.vlgmr.msra.gmra.mxu1 %vm685_vm3, %v5317_v38  ;;  %v7338_v45 = vsel %vm7229_vm7, %v1288_v41, %v1289_v16  ;;  %v1296_v4 = vrot.slane %v7194_v49, 5  ;;  %v1300_v19 = vrot.slane %v6922_v14, 5  ;;  %v5368_v29 = vcombine.low %v1266_v20, %v1269_v48  ;;  %v9709_v48 = vld [vmem:[#allocation6_spill] sm:$0xff] }
  0x6f   : > { %6273 = vmatpush3.bf16.msra.mxu1 %v1812_v52  ;;  %6210 = vmatprep.mubr.msk.bf16.mxu1 %vm685_vm3, %v5318_v13  ;;  %v5320_v30 = vcombine.low %v7071_v60, %v7076_v9  ;;  %v1295_v38 = vrot.slane %v1293_v18, 4  ;;  %v5356_v26 = vrot.slane %v1199_v1, 9  ;;  %v5369_v49 = vcombine.low %v1273_v27, %v1276_v42  ;;  %v1204_v42 = vld [vmem:[%s6899_s9 + $0x9c] sm:$0xe] }
  0x70   : > { %v5321_v52 = vcombine.low %v7108_v11, %v7113_v23  ;;  %v5322_v8 = vcombine.low %v7141_v34, %v7150_v17  ;;  %6484 = vmatprep.subr.msk.bf16.mxu1 %vm734_vm0, %v7324_v22  ;;  %v5370_v60 = vcombine.low %v7314_v10, %v7334_v25  ;;  %v5371_v9 = vcombine.low %v7318_v2, %v7338_v45  ;;  %v9710_v10 = vld [vmem:[#allocation8_spill] sm:$0xff]  ;;  %v9711_v2 = vld [vmem:[#allocation7_spill] sm:$0xff] }
  0x71   : > { %v1302_v54 = vrot.slane %v1300_v19, 4  ;;  %v7368_v28 = vsel %vm7229_vm7, %v5355_v57, %v1293_v18  ;;  %v7372_v56 = vsel %vm7229_vm7, %v1295_v38, %v1296_v4  ;;  %v5357_v32 = vrot.slane %v7349_v50, 9  ;;  %v1205_v18 = vld [vmem:[%s6899_s9 + $0xa8] sm:$0xe]  ;;  %v9713_v38 = vld [vmem:[#allocation11_spill] sm:$0xff] }
  0x72   : > { %v7384_v47 = vsel %vm7229_vm7, %v5356_v26, %v1300_v19  ;;  %v1307_v51 = vrot.slane %v6964_v58, 5  ;;  %v1310_v6 = vrot.slane %v6972_v63, 5  ;;  %v5359_v59 = vrot.slane %v1202_v39, 9  ;;  %v9712_v19 = vld [vmem:[#allocation9_spill] sm:$0xff]  ;;  %v9714_v26 = vld [vmem:[#allocation10_spill] sm:$0xff] }
  0x73   : > { %6245 = vmatmul.mubr.msk.bf16.gmra.mxu0 %vm685_vm3, %v5368_v29  ;;  %v1321_v16 = vrot.slane %v7055_v43, 5  ;;  %v1324_v27 = vrot.slane %v9709_v48, 5  ;;  %v5372_v41 = vcombine.low %v7368_v28, %v7372_v56  ;;  %v7402_v63 = vsel %vm7229_vm7, %v1302_v54, %v1303_v5  ;;  %v9716_v48 = vld [vmem:[#allocation14_spill] sm:$0xff] }
  0x74   : > { %6248 = vmatprep.mubr.msk.bf16.mxu0 %vm685_vm3, %v5369_v49  ;;  %v5358_v1 = vrot.slane %v7378_v44, 9  ;;  %v5360_v4 = vrot.slane %v1203_v40, 9  ;;  %v1328_v15 = vrot.slane %v9710_v10, 5  ;;  %v1309_v5 = vrot.slane %v1307_v51, 4  ;;  %v5462_v57 = vld [vmem:[%s6899_s9 + $0xc] sm:$0xf] }
  0x75   : > { %v7411_v25 = vsel %vm7229_vm7, %v5359_v59, %v1321_v16  ;;  %v1323_v45 = vrot.slane %v1321_v16, 4  ;;  %v1331_v29 = vrot.slane %v9712_v19, 5  ;;  %v5361_v49 = vrot.slane %v1204_v42, 9  ;;  %v9715_v59 = vld [vmem:[#allocation12_spill] sm:$0xff]  ;;  %v9717_v42 = vld [vmem:[#allocation13_spill] sm:$0xff] }
  0x76   : > { %6211 = vmatmul.mubr.msk.bf16.gmra.mxu1 %vm685_vm3, %v5319_v33  ;;  %v1314_v33 = vrot.slane %v7009_v46, 5  ;;  %v7425_v39 = vsel %vm7229_vm7, %v5360_v4, %v1328_v15  ;;  %v1330_v44 = vrot.slane %v1328_v15, 4  ;;  %v1335_v40 = vrot.slane %v9713_v38, 5  ;;  %v9718_v15 = vld [vmem:[#allocation15_spill] sm:$0xff] }
  0x77   : > { %6214 = vmatprep.mubr.msk.bf16.mxu1 %vm685_vm3, %v5320_v30  ;;  %v7421_v54 = vsel %vm7229_vm7, %v1323_v45, %v1324_v27  ;;  %v1338_v16 = vrot.slane %v9715_v59, 5  ;;  %v5362_v45 = vrot.slane %v1205_v18, 9  ;;  %v1342_v4 = vrot.slane %v9716_v48, 5 }
  0x78   : > { %v7435_v27 = vsel %vm7229_vm7, %v1330_v44, %v1331_v29  ;;  %v1345_v50 = vrot.slane %v9718_v15, 5  ;;  %v7445_v19 = vsel %vm7229_vm7, %v5361_v49, %v1335_v40  ;;  %v1337_v7 = vrot.slane %v1335_v40, 4  ;;  %v9719_v29 = vld [vmem:[#allocation16_spill] sm:$0xff]  ;;  %v9720_v15 = vld [vmem:[#allocation5_spill] sm:$0xff]  ;;  %v7460_v49 = vld [vmem:[%s6899_s9 + $0x10] sm:$0xf] }
  0x79   : > { %v7452_v18 = vsel %vm7229_vm7, %v5357_v32, %v1307_v51  ;;  %v7457_v59 = vsel %vm7229_vm7, %v5362_v45, %v1342_v4  ;;  %v1344_v30 = vrot.slane %v1342_v4, 4  ;;  %v5465_v40 = vld [vmem:[%s6899_s9 + $0x18] sm:$0xf]  ;;  %v1316_v20 = vrot.slane %v1314_v33, 4 }
  0x7a   : > { %v2056_v44 = vshrl.u32 %v5462_v57, 16  ;;  %v2059_v32 = vshll.u32 %v5462_v57, 16  ;;  %v5373_v51 = vcombine.low %v7384_v47, %v7402_v63  ;;  %v7475_v45 = vsel %vm7229_vm7, %v1309_v5, %v1310_v6  ;;  %v1206_v57 = vld [vmem:[%s6899_s9 + $0xb4] sm:$0xe]  ;;  %v7496_v47 = vld [vmem:[%s6899_s9 + $0x14] sm:$0x1] }
  0x7b   : > { %6249 = vmatmul.mubr.msk.bf16.gmra.mxu0 %vm685_vm3, %v5370_v60  ;;  %v1317_v60 = vrot.slane %v9720_v15, 5  ;;  %v7490_v11 = vsel %vm7229_vm7, %v5358_v1, %v1314_v33  ;;  %v2065_v6 = vshll.u32 %v7460_v49, 16  ;;  %v5466_v63 = vld [vmem:[%s6899_s9 + $0x1c] sm:$0xf]  ;;  %v2069_v17 = vshrl.u32 %v7460_v49, 16 }
  0x7c   : > { %6252 = vmatprep.mubr.msk.bf16.mxu0 %vm685_vm3, %v5371_v9  ;;  %v7465_v9 = vsel %vm7229_vm7, %v1337_v7, %v1338_v16  ;;  %v7481_v7 = vsel %vm7229_vm7, %v1344_v30, %v1345_v50  ;;  %v2058_v5 = vrot.slane %v2056_v44, 4  ;;  %v2061_v34 = vrot.slane %v2059_v32, 5  ;;  %v5468_v15 = vld [vmem:[%s6899_s9 + $0x24] sm:$0xf]  ;;  %v7509_v44 = vld [vmem:[%s6899_s9 + $0x28] sm:$0xf] }
  0x7d   : > { %v2080_v50 = vshrl.u32 %v5465_v40, 16  ;;  %v1318_v1 = vsel %vm7229_vm7, %v1316_v20, %v1317_v60  ;;  %v5363_v33 = vrot.slane %v1206_v57, 9  ;;  %v7504_v30 = vrot.slane %v2065_v6, 5 }
  0x7e   : > { %6215 = vmatmul.mubr.msk.bf16.gmra.mxu1 %vm685_vm3, %v5321_v52  ;;  %v1349_v52 = vrot.slane %v7208_v37, 5  ;;  %v2083_v16 = vshll.u32 %v5465_v40, 16  ;;  %v1352_v23 = vrot.slane %v7213_v61, 5  ;;  %v2071_v4 = vrot.slane %v2069_v17, 4 }
  0x7f   : > { %6218 = vmatprep.mubr.msk.bf16.mxu1 %vm685_vm3, %v5322_v8  ;;  %v5467_v8 = vld [vmem:[%s6899_s9 + $0x20] sm:$0x1]  ;;  %v2082_v3 = vrot.slane %v2080_v50, 4  ;;  %v2089_v13 = vshll.u32 %v5466_v63, 16  ;;  %v2075_v20 = vshll.u32 %v7496_v47, 16  ;;  %v2093_v57 = vshrl.u32 %v5466_v63, 16 }
  0x80   : > { %v1351_v32 = vrot.slane %v1349_v52, 4  ;;  %v2085_v60 = vrot.slane %v2083_v16, 5  ;;  %v5374_v61 = vcombine.low %v7452_v18, %v7475_v45  ;;  %v5375_v40 = vcombine.low %v7490_v11, %v1318_v1 }
  0x81   : > { %v2062_v6 = vor.u32 %v2061_v34, %v2058_v5  ;;  %v7520_v17 = vrot.slane %v2089_v13, 5  ;;  %v2072_v28 = vor.u32 %v2071_v4, %v7504_v30  ;;  %v2099_v50 = vshll.u32 %v5467_v8, 16  ;;  %v7547_v5 = vld [vmem:[%s6899_s9 + $0x34] sm:$0xf] }
  0x82   : > { %v2086_v56 = vor.u32 %v2085_v60, %v2082_v3  ;;  %v7532_v18 = vsel %vm7229_vm7, %v5363_v33, %v1349_v52  ;;  %v2104_v13 = vshrl.u32 %v5468_v15, 16  ;;  %v2107_v45 = vshll.u32 %v5468_v15, 16  ;;  %v5471_v52 = vld [vmem:[%s6899_s9 + $0x30] sm:$0xf] }
  0x83   : > { %6253 = vmatmul.mubr.msk.bf16.gmra.mxu0 %vm685_vm3, %v5372_v41  ;;  %v2095_v41 = vrot.slane %v2093_v57, 4  ;;  %v2113_v11 = vshll.u32 %v7509_v44, 16  ;;  %v9722_v3 = vcombine.low %v6918_v12, %v6922_v14  ;;  %v7541_v4 = vsel %vm7229_vm7, %v1351_v32, %v1352_v23 }
  0x84   : > { %6256 = vmatprep.mubr.msk.bf16.mxu0 %vm685_vm3, %v5373_v51  ;;  %v9721_v51 = vcombine.low %v7184_v62, %v7191_v55  ;;  %v2077_v62 = vrot.slane %v2075_v20, 5  ;;  %v2117_v63 = vshrl.u32 %v7509_v44, 16  ;;  %v2063_v34 = vrot.slane %v2062_v6, 4 }
  0x85   : > { %v2096_v55 = vor.u32 %v2095_v41, %v7520_v17  ;;  %v2106_v8 = vrot.slane %v2104_v13, 4  ;;  %v2109_v1 = vrot.slane %v2107_v45, 5  ;;  %v7549_v33 = vrot.slane %v2113_v11, 5  ;;  %v7555_v41 = vld [vmem:[%s6899_s9 + $0x38] sm:$0x1] }
  0x86   : > { %6219 = vmatmul.mubr.msk.bf16.gmra.mxu1 %vm685_vm3, %v9721_v51  ;;  %v2073_v12 = vrot.slane %v2072_v28, 4  ;;  %v2087_v14 = vrot.slane %v2086_v56, 4  ;;  %v2101_v16 = vrot.slane %v2099_v50, 5  ;;  %v2119_v23 = vrot.slane %v2117_v63, 4  ;;  %v5474_v13 = vld [vmem:[%s6899_s9 + $0x3c] sm:$0xf] }
  0x87   : > { %6222 = vmatprep.mubr.msk.bf16.mxu1 %vm685_vm3, %v9722_v3  ;;  %v2097_v15 = vrot.slane %v2096_v55, 4  ;;  %v2123_v32 = vshll.u32 %v7524_v21, 16  ;;  %v2128_v20 = vshrl.u32 %v5471_v52, 16  ;;  %v2131_v60 = vshll.u32 %v5471_v52, 16 }
  0x88   : > { %v2110_v57 = vor.u32 %v2109_v1, %v2106_v8  ;;  %v2120_v6 = vor.u32 %v2119_v23, %v7549_v33  ;;  %v2137_v28 = vshll.u32 %v7547_v5, 16  ;;  %v2141_v56 = vshrl.u32 %v7547_v5, 16  ;;  %v5477_v8 = vld [vmem:[%s6899_s9 + $0x48] sm:$0xf]  ;;  %v7582_v1 = vld [vmem:[%s6899_s9 + $0x4c] sm:$0xf] }
  0x89   : > { %v2130_v50 = vrot.slane %v2128_v20, 4  ;;  %v2133_v51 = vrot.slane %v2131_v60, 5  ;;  %v9723_v3 = vcombine.low %v6960_v53, %v6964_v58  ;;  %v5380_v55 = vcombine.low %v7532_v18, %v7541_v4 }
  0x8a   : > { %v7561_v45 = vrot.slane %v2137_v28, 5  ;;  %v2143_v11 = vrot.slane %v2141_v56, 4  ;;  %v2078_v63 = vsel %vm6943_vm4, %v2073_v12, %v2077_v62  ;;  %v2092_v52 = vsel %vm6943_vm4, %v2087_v14, %v7520_v17 }
  0x8b   : > { %6257 = vmatmul.mubr.msk.bf16.gmra.mxu0 %vm685_vm3, %v5374_v61  ;;  %v7564_v61 = vld [vmem:[%s6899_s9 + $0x40] sm:$0xf]  ;;  %v9724_v53 = vcombine.low %v6998_v35, %v7009_v46  ;;  %v2102_v58 = vsel %vm6943_vm4, %v2097_v15, %v2101_v16  ;;  %v2111_v23 = vrot.slane %v2110_v57, 4  ;;  %v2134_v20 = vor.u32 %v2133_v51, %v2130_v50  ;;  %v7616_v50 = vld [vmem:[%s6899_s9 + $0x44] sm:$0x1] }
  0x8c   : > { %6260 = vmatprep.mubr.msk.bf16.mxu0 %vm685_vm3, %v5375_v40  ;;  %v2068_v40 = vsel %vm6943_vm4, %v2063_v34, %v7504_v30  ;;  %v2121_v30 = vrot.slane %v2120_v6, 4  ;;  %v2125_v34 = vrot.slane %v2123_v32, 5  ;;  %v2147_v62 = vshll.u32 %v7555_v41, 16  ;;  %v5480_v51 = vld [vmem:[%s6899_s9 + $0x54] sm:$0xf] }
  0x8d   : > { %v2152_v12 = vshrl.u32 %v5474_v13, 16  ;;  %v2155_v17 = vshll.u32 %v5474_v13, 16  ;;  %v7593_v14 = vsel %vm734_vm0, %v7324_v22, 0  ;;  %v2144_v35 = vor.u32 %v2143_v11, %v7561_v45 }
  0x8e   : > { %6223 = vmatmul.mubr.msk.bf16.gmra.mxu1 %vm685_vm3, %v9723_v3  ;;  %v2161_v46 = vshll.u32 %v7564_v61, 16  ;;  %v2165_v16 = vshrl.u32 %v7564_v61, 16  ;;  %v7598_v15 = vcombine.low %v2068_v40, %v2078_v63  ;;  %v7602_v32 = vsel %vm734_vm0, %v7296_v24, 0  ;;  %v7625_v40 = vld [vmem:[%s6899_s9 + $0x58] sm:$0xf] }
  0x8f   : > { %6226 = vmatprep.mubr.msk.bf16.mxu1 %vm685_vm3, %v9724_v53  ;;  %v2176_v60 = vshrl.u32 %v5477_v8, 16  ;;  %v2179_v57 = vshll.u32 %v5477_v8, 16  ;;  %v9725_v6 = vcombine.low %v7411_v25, %v7421_v54  ;;  %v7608_v22 = vcombine.low %v2092_v52, %v2102_v58  ;;  %v7630_v8 = vld [vmem:[%s6899_s9 + $0x50] sm:$0x1] }
  0x90   : > { %v2116_v28 = vsel %vm6943_vm4, %v2111_v23, %v7549_v33  ;;  %v2126_v56 = vsel %vm6943_vm4, %v2121_v30, %v2125_v34  ;;  %v2185_v24 = vshll.u32 %v7582_v1, 16  ;;  %v9726_v25 = vcombine.low %v7425_v39, %v7435_v27  ;;  %v5483_v34 = vld [vmem:[%s6899_s9 + $0x60] sm:$0xf] }
  0x91   : > { %v2135_v54 = vrot.slane %v2134_v20, 4  ;;  %v2149_v13 = vrot.slane %v2147_v62, 5  ;;  %v2154_v11 = vrot.slane %v2152_v12, 4  ;;  %v2157_v3 = vrot.slane %v2155_v17, 5 }
  0x92   : > { %v2145_v33 = vrot.slane %v2144_v35, 4  ;;  %v7627_v63 = vrot.slane %v2161_v46, 5  ;;  %v2167_v52 = vrot.slane %v2165_v16, 4  ;;  %v2189_v53 = vshrl.u32 %v7582_v1, 16  ;;  %v7647_v35 = vld [vmem:[%s6899_s9 + $0x5c] sm:$0x1] }
  0x93   : > { %6261 = vmatmul.mubr.msk.bf16.gmra.mxu0 %vm685_vm3, %v9725_v6  ;;  %v9727_v39 = vcombine.low %v7048_v36, %v7055_v43  ;;  %v2178_v27 = vrot.slane %v2176_v60, 4  ;;  %v2181_v58 = vrot.slane %v2179_v57, 5  ;;  %v2200_v23 = vshrl.u32 %v5480_v51, 16 }
  0x94   : > { %6264 = vmatprep.mubr.msk.bf16.mxu0 %vm685_vm3, %v9726_v25  ;;  %v2203_v30 = vshll.u32 %v5480_v51, 16  ;;  %v9728_v20 = vcombine.low %v9711_v2, %v9710_v10  ;;  %v7642_v62 = vcombine.low %v2116_v28, %v2126_v56  ;;  %v7644_v12 = vrot.slane %v2185_v24, 5  ;;  %v7660_v28 = vld [vmem:[%s6899_s9 + $0x64] sm:$0xf] }
  0x95   : > { %v2191_v17 = vrot.slane %v2189_v53, 4  ;;  %v2209_v36 = vshll.u32 %v7625_v40, 16  ;;  %v2171_v43 = vshll.u32 %v7616_v50, 16  ;;  %v2202_v46 = vrot.slane %v2200_v23, 4 }
  0x96   : > { %6227 = vmatmul.mubr.msk.bf16.gmra.mxu1 %vm685_vm3, %v9727_v39  ;;  %v2205_v16 = vrot.slane %v2203_v30, 5  ;;  %v2213_v60 = vshrl.u32 %v7625_v40, 16  ;;  %v2140_v10 = vsel %vm6943_vm4, %v2135_v54, %v7561_v45  ;;  %v2150_v2 = vsel %vm6943_vm4, %v2145_v33, %v2149_v13  ;;  %v7682_v30 = vld [vmem:[%s6899_s9 + $0x68] sm:$0x1] }
  0x97   : > { %6230 = vmatprep.mubr.msk.bf16.mxu1 %vm685_vm3, %v9728_v20  ;;  %v2158_v57 = vor.u32 %v2157_v3, %v2154_v11  ;;  %v7657_v6 = vrot.slane %v2209_v36, 5  ;;  %v2168_v56 = vor.u32 %v2167_v52, %v7627_v63  ;;  %v2182_v24 = vor.u32 %v2181_v58, %v2178_v27  ;;  %v5486_v3 = vld [vmem:[%s6899_s9 + $0x6c] sm:$0xf]  ;;  %v7679_v27 = vld [vmem:[%s6899_s9 + $0x70] sm:$0xf] }
  0x98   : > { %v2195_v51 = vshll.u32 %v7630_v8, 16  ;;  %v2215_v25 = vrot.slane %v2213_v60, 4  ;;  %v9729_v53 = vcombine.low %v7445_v19, %v7465_v9  ;;  %v2192_v45 = vor.u32 %v2191_v17, %v7644_v12 }
  0x99   : > { %v2206_v54 = vor.u32 %v2205_v16, %v2202_v46  ;;  %v2224_v13 = vshrl.u32 %v5483_v34, 16  ;;  %v2227_v11 = vshll.u32 %v5483_v34, 16  ;;  %v9730_v33 = vcombine.low %v7457_v59, %v7481_v7  ;;  %v5489_v16 = vld [vmem:[%s6899_s9 + $0x78] sm:$0xf] }
  0x9a   : > { %v2216_v52 = vor.u32 %v2215_v25, %v7657_v6  ;;  %v2219_v39 = vshll.u32 %v7647_v35, 16  ;;  %v2233_v19 = vshll.u32 %v7660_v28, 16  ;;  %v2237_v9 = vshrl.u32 %v7660_v28, 16 }
  0x9b   : > { %6265 = vmatmul.mubr.msk.bf16.gmra.mxu0 %vm685_vm3, %v9729_v53  ;;  %v2159_v58 = vrot.slane %v2158_v57, 4  ;;  %v2173_v23 = vrot.slane %v2171_v43, 5  ;;  %v2226_v34 = vrot.slane %v2224_v13, 4  ;;  %v2229_v20 = vrot.slane %v2227_v11, 5 }
  0x9c   : > { %6268 = vmatprep.mubr.msk.bf16.mxu0 %vm685_vm3, %v9730_v33  ;;  %v9731_v59 = vcombine.low %v9714_v26, %v9713_v38  ;;  %v7688_v7 = vcombine.low %v2140_v10, %v2150_v2  ;;  %v2169_v17 = vrot.slane %v2168_v56, 4  ;;  %v2183_v36 = vrot.slane %v2182_v24, 4  ;;  %v7698_v2 = vld [vmem:[%s6899_s9 + $0x7c] sm:$0xf] }
  0x9d   : > { %v7690_v46 = vrot.slane %v2233_v19, 5  ;;  %v9732_v43 = vcombine.low %v9717_v42, %v9716_v48  ;;  %v2193_v60 = vrot.slane %v2192_v45, 4  ;;  %v2197_v57 = vrot.slane %v2195_v51, 5  ;;  %9733 = vst [vmem:[#allocation6_spill] sm:$0xff] %v7698_v2  ;;  %v5492_v19 = vld [vmem:[%s6899_s9 + $0x84] sm:$0xf] }
  0x9e   : > { %6231 = vmatmul.mubr.msk.bf16.gmra.mxu1 %vm685_vm3, %v9731_v59  ;;  %v2207_v25 = vrot.slane %v2206_v54, 4  ;;  %v2239_v38 = vrot.slane %v2237_v9, 4  ;;  %v2217_v26 = vrot.slane %v2216_v52, 4  ;;  %v2221_v53 = vrot.slane %v2219_v39, 5 }
  0x9f   : > { %6234 = vmatprep.mubr.msk.bf16.mxu1 %vm685_vm3, %v9732_v43  ;;  %v2230_v13 = vor.u32 %v2229_v20, %v2226_v34  ;;  %v2248_v10 = vshrl.u32 %v5486_v3, 16  ;;  %v2164_v56 = vsel %vm6943_vm4, %v2159_v58, %v7627_v63  ;;  %v2251_v24 = vshll.u32 %v5486_v3, 16  ;;  %v6562_v63 = vld [vmem:[%s6899_s9 + $0xc] sm:$0xff]   ;;  %v7732_v34 = vld [vmem:[%s6899_s9 + $0x88] sm:$0xf] }
  0xa0   : > { %v2257_v48 = vshll.u32 %v7679_v27, 16  ;;  %v2261_v42 = vshrl.u32 %v7679_v27, 16  ;;  %v2174_v51 = vsel %vm6943_vm4, %v2169_v17, %v2173_v23  ;;  %v2188_v45 = vsel %vm6943_vm4, %v2183_v36, %v7644_v12  ;;  %9734 = vst [vmem:[#allocation8_spill] sm:$0xff] %v7732_v34  ;;  %v7741_v36 = vld [vmem:[%s6899_s9 + $0x74] sm:$0x1] }
  0xa1   : > { %v2240_v54 = vor.u32 %v2239_v38, %v7690_v46  ;;  %v2243_v11 = vshll.u32 %v7682_v30, 16  ;;  %v2198_v3 = vsel %vm6943_vm4, %v2193_v60, %v2197_v57  ;;  %v2212_v33 = vsel %vm6943_vm4, %v2207_v25, %v7657_v6  ;;  %9736 = vst [vmem:[#allocation7_spill] sm:$0xff] %v7741_v36  ;;  %v7751_v38 = vld [vmem:[%s6899_s9 + $0x80] sm:$0x1] }
  0xa2   : > { %v2272_v52 = vshrl.u32 %v5489_v16, 16  ;;  %v2275_v12 = vshll.u32 %v5489_v16, 16  ;;  %v2222_v18 = vsel %vm6943_vm4, %v2217_v26, %v2221_v53  ;;  %v2231_v4 = vrot.slane %v2230_v13, 4  ;;  %9737 = vst [vmem:[#allocation9_spill] sm:$0xff] %v7751_v38  ;;  %v7754_v26 = vld [vmem:[%s6899_s9 + $0x8c] sm:$0x1] }
  0xa3   : > { %6269 = vmatmul.mubr.msk.bf16.gmra.mxu0 %vm685_vm3, %v5380_v55  ;;  %v2250_v55 = vrot.slane %v2248_v10, 4  ;;  %v2281_v39 = vshll.u32 %v7698_v2, 16  ;;  %v2253_v9 = vrot.slane %v2251_v24, 5  ;;  %v7728_v58 = vrot.slane %v2257_v48, 5  ;;  %9738 = vst [vmem:[#allocation11_spill] sm:$0xff] %v7754_v26  ;;  %v6563_v10 = vld [vmem:[%s6899_s9 + $0x18] sm:$0xff]  }
  0xa4   : > { %6308 = vmatprep.mubr.msk.bf16.mxu0 %vm685_vm3, %v7598_v15  ;;  %v2263_v23 = vrot.slane %v2261_v42, 4  ;;  %v2285_v6 = vshrl.u32 %v7698_v2, 16  ;;  %v9735_v15 = vcombine.low %v9719_v29, %v7208_v37  ;;  %v7738_v20 = vcombine.low %v2164_v56, %v2174_v51  ;;  %v5495_v51 = vld [vmem:[%s6899_s9 + $0x90] sm:$0xf] }
  0xa5   : > { %v2241_v59 = vrot.slane %v2240_v54, 4  ;;  %v2245_v17 = vrot.slane %v2243_v11, 5  ;;  %v2274_v16 = vrot.slane %v2272_v52, 4  ;;  %v2277_v43 = vrot.slane %v2275_v12, 5 }
  0xa6   : > { %6235 = vmatmul.mubr.msk.bf16.gmra.mxu1 %vm685_vm3, %v9735_v15  ;;  %v7744_v60 = vrot.slane %v2281_v39, 5  ;;  %v2287_v57 = vrot.slane %v2285_v6, 4  ;;  %v2296_v25 = vshrl.u32 %v5492_v19, 16  ;;  %v7746_v37 = vcombine.low %v2188_v45, %v2198_v3  ;;  %v7765_v45 = vld [vmem:[%s6899_s9 + $0x94] sm:$0xf] }
  0xa7   : > { %6274 = vmatprep.mubr.msk.bf16.mxu1 %vm685_vm3, %v6562_v63  ;;  %v7748_v29 = vcombine.low %v2212_v33, %v2222_v18  ;;  %v2299_v53 = vshll.u32 %v5492_v19, 16  ;;  %v2305_v13 = vshll.u32 %v7732_v34, 16  ;;  %v2236_v56 = vsel %vm6943_vm4, %v2231_v4, %v7690_v46  ;;  %9739 = vst [vmem:[#allocation10_spill] sm:$0xff] %v7765_v45  ;;  %v7773_v33 = vld [vmem:[%s9651_s1 + $0x10] sm:$0x3]  ;;  %v6564_v46 = vld [vmem:[%s6899_s9 + $0x24] sm:$0xff]  }
  0xa8   : > { %v2254_v24 = vor.u32 %v2253_v9, %v2250_v55  ;;  %v2264_v48 = vor.u32 %v2263_v23, %v7728_v58  ;;  %v2267_v42 = vshll.u32 %v7741_v36, 16  ;;  %v2298_v54 = vrot.slane %v2296_v25, 4  ;;  %9740 = vst [vmem:[#allocation12_spill] sm:$0xff] %v7773_v33 }
  0xa9   : > { %v2301_v11 = vrot.slane %v2299_v53, 5  ;;  %v7767_v63 = vrot.slane %v2305_v13, 5  ;;  %v2309_v3 = vshrl.u32 %v7732_v34, 16  ;;  %v2246_v52 = vsel %vm6943_vm4, %v2241_v59, %v2245_v17 }
  0xaa   : > { %v2278_v12 = vor.u32 %v2277_v43, %v2274_v16  ;;  %v2288_v18 = vor.u32 %v2287_v57, %v7744_v60  ;;  %v2291_v4 = vshll.u32 %v7751_v38, 16  ;;  %v2320_v19 = vshrl.u32 %v5495_v51, 16  ;;  %v7807_v57 = vld [vmem:[%s6899_s9 + $0xa0] sm:$0xf] }
  0xab   : > { %6309 = vmatmul.mubr.msk.bf16.vlgmr.msra.gmra.mxu0 %vm685_vm3, %v7608_v22  ;;  %v2302_v55 = vor.u32 %v2301_v11, %v2298_v54  ;;  %v2311_v39 = vrot.slane %v2309_v3, 4  ;;  %v2323_v9 = vshll.u32 %v5495_v51, 16  ;;  %v5498_v22 = vld [vmem:[%s6899_s9 + $0x9c] sm:$0xf]  ;;  %v7786_v23 = vrot.slane %v2254_v24, 4  ;;  %9742 = vst [vmem:[#allocation13_spill] sm:$0xff] %v7807_v57 }
  0xac   : > { %6375 = vmatpush3.bf16.msra.mxu0 %v7602_v32  ;;  %6312 = vmatprep.mubr.msk.bf16.mxu0 %vm685_vm3, %v7642_v62  ;;  %v7788_v6 = vrot.slane %v2267_v42, 5  ;;  %v2315_v15 = vshll.u32 %v7754_v26, 16  ;;  %v2329_v59 = vshll.u32 %v7765_v45, 16  ;;  %v7795_v32 = vld [vmem:[%s9651_s1 + $0xe] sm:$0x3]  ;;  %v7800_v62 = vcombine.low %v2236_v56, %v2246_v52 }
  0xad   : > { %9741 = vst [vmem:[#allocation14_spill] sm:$0xff] %v7795_v32  ;;  %6487 = vmatprep.subr.msk.bf16.mxu0 %vm734_vm0, %v7773_v33  ;;  %v7802_v17 = vrot.slane %v2264_v48, 4  ;;  %v2312_v16 = vor.u32 %v2311_v39, %v7767_v63  ;;  %v2333_v43 = vshrl.u32 %v7765_v45, 16  ;;  %v7811_v25 = vrot.slane %v2278_v12, 4  ;;  %v7820_v56 = vld [vmem:[%s6899_s9 + $0x98] sm:$0x1] }
  0xae   : > { %6275 = vmatmul.mubr.msk.bf16.vlgmr.msra.gmra.mxu1 %vm685_vm3, %v6563_v10  ;;  %v7813_v53 = vrot.slane %v2288_v18, 4  ;;  %v7815_v13 = vrot.slane %v2291_v4, 5  ;;  %v7817_v10 = vrot.slane %v2302_v55, 4  ;;  %9743 = vst [vmem:[#allocation15_spill] sm:$0xff] %v7820_v56  ;;  %v2322_v24 = vrot.slane %v2320_v19, 4  ;;  %v6566_v19 = vld [vmem:[%s6899_s9 + $0x3c] sm:$0xff]  }
  0xaf   : > { %6341 = vmatpush3.bf16.msra.mxu1 %v7593_v14  ;;  %6278 = vmatprep.mubr.msk.bf16.mxu1 %vm685_vm3, %v6564_v46  ;;  %v2325_v48 = vrot.slane %v2323_v9, 5  ;;  %v2344_v42 = vshrl.u32 %v5498_v22, 16  ;;  %v2347_v51 = vshll.u32 %v5498_v22, 16  ;;  %v6565_v14 = vld [vmem:[%s6899_s9 + $0x30] sm:$0xff]   ;;  %v7829_v11 = vrot.slane %v2315_v15, 5 }
  0xb0   : > { %6486 = vmatprep.subr.msk.bf16.mxu1 %vm734_vm0, %v7795_v32  ;;  %v7831_v3 = vrot.slane %v2329_v59, 5  ;;  %v2353_v46 = vshll.u32 %v7807_v57, 16  ;;  %v5501_v52 = vld [vmem:[%s6899_s9 + $0xa8] sm:$0xf]  ;;  %v7835_v12 = vrot.slane %v2312_v16, 4  ;;  %v2335_v18 = vrot.slane %v2333_v43, 4 }
  0xb1   : > { %v2339_v4 = vshll.u32 %v7820_v56, 16  ;;  %v2357_v55 = vshrl.u32 %v7807_v57, 16  ;;  %v7840_v39 = vld [vmem:[%s6899_s9 + $0xac] sm:$0xf]  ;;  %v2326_v59 = vor.u32 %v2325_v48, %v2322_v24  ;;  %v7864_v16 = vld [vmem:[%s6899_s9 + $0xa4] sm:$0x1] }
  0xb2   : > { %9744 = vst [vmem:[#allocation16_spill] sm:$0xff] %v7840_v39  ;;  %9745 = vst [vmem:[#allocation5_spill] sm:$0xff] %v7864_v16  ;;  %v2346_v43 = vrot.slane %v2344_v42, 4  ;;  %v2349_v22 = vrot.slane %v2347_v51, 5  ;;  %v2368_v54 = vshrl.u32 %v5501_v52, 16  ;;  %v7866_v9 = vrot.slane %v2353_v46, 5 }
  0xb3   : > { %6313 = vmatmul.mubr.msk.bf16.gmra.mxu0 %vm685_vm3, %v7688_v7  ;;  %v2359_v32 = vrot.slane %v2357_v55, 4  ;;  %v2371_v15 = vshll.u32 %v5501_v52, 16  ;;  %v2377_v33 = vshll.u32 %v7840_v39, 16  ;;  %v5504_v57 = vld [vmem:[%s6899_s9 + $0xb4] sm:$0xf]  ;;  %v2336_v24 = vor.u32 %v2335_v18, %v7831_v3 }
  0xb4   : > { %6316 = vmatprep.mubr.msk.bf16.mxu0 %vm685_vm3, %v7738_v20  ;;  %v2318_v20 = vsel %vm6943_vm4, %v7835_v12, %v7829_v11  ;;  %v7876_v48 = vrot.slane %v2339_v4, 5  ;;  %v7879_v42 = vld [vmem:[%s6899_s9 + $0xb0] sm:$0x1]  ;;  %v2370_v51 = vrot.slane %v2368_v54, 4  ;;  %v7882_v46 = vld [vmem:[%s6899_s9 + $0xb8] sm:$0xf]  ;;  %v2350_v18 = vor.u32 %v2349_v22, %v2346_v43 }
  0xb5   : > { %9746 = vst [vmem:[#allocation17_spill] sm:$0xff] %v7879_v42  ;;  %9747 = vst [vmem:[#allocation18_spill] sm:$0xff] %v7882_v46  ;;  %v2373_v52 = vrot.slane %v2371_v15, 5  ;;  %v7886_v55 = vrot.slane %v2377_v33, 5  ;;  %v2381_v11 = vshrl.u32 %v7840_v39, 16  ;;  %v7889_v12 = vrot.slane %v2326_v59, 4 }
  0xb6   : > { %6279 = vmatmul.mubr.msk.bf16.gmra.mxu1 %vm685_vm3, %v6565_v14  ;;  %v2363_v14 = vshll.u32 %v7864_v16, 16  ;;  %v7892_v4 = vld [vmem:[%s6899_s9 + $0xbc] sm:$0x1]  ;;  %v2392_v54 = vshrl.u32 %v5504_v57, 16  ;;  %v2395_v7 = vshll.u32 %v5504_v57, 16  ;;  %v2360_v56 = vor.u32 %v2359_v32, %v7866_v9  ;;  %v6567_v16 = vld [vmem:[%s6899_s9 + $0x48] sm:$0xff]  }
  0xb7   : > { %6282 = vmatprep.mubr.msk.bf16.mxu1 %vm685_vm3, %v6566_v19  ;;  %v2383_v45 = vrot.slane %v2381_v11, 4  ;;  %v2387_v19 = vshll.u32 %v7879_v42, 16  ;;  %v2401_v15 = vshll.u32 %v7882_v46, 16  ;;  %v5507_v33 = vld [vmem:[%s6899_s9 + $0xc0] sm:$0xf]  ;;  %v2374_v26 = vor.u32 %v2373_v52, %v2370_v51  ;;  %v6568_v57 = vld [vmem:[%s6899_s9 + $0x54] sm:$0xff]  }
  0xb8   : > { %v2394_v39 = vrot.slane %v2392_v54, 4  ;;  %v2397_v34 = vrot.slane %v2395_v7, 5  ;;  %v2405_v59 = vshrl.u32 %v7882_v46, 16  ;;  %v7901_v22 = vld [vmem:[%s6899_s9 + $0xc4] sm:$0xf]  ;;  %v2337_v43 = vrot.slane %v2336_v24, 4 }
  0xb9   : > { %v2365_v32 = vrot.slane %v2363_v14, 5  ;;  %v2384_v11 = vor.u32 %v2383_v45, %v7886_v55  ;;  %v2403_v42 = vrot.slane %v2401_v15, 5  ;;  %v2411_v7 = vshll.u32 %v7892_v4, 16  ;;  %v7913_v45 = vld [vmem:[%s6899_s9 + $0xc8] sm:$0x1] }
  0xba   : > { %v2398_v51 = vor.u32 %v2397_v34, %v2394_v39  ;;  %v2407_v52 = vrot.slane %v2405_v59, 4  ;;  %v2416_v54 = vshrl.u32 %v5507_v33, 16  ;;  %v2351_v46 = vrot.slane %v2350_v18, 4 }
  0xbb   : > { %6317 = vmatmul.mubr.msk.bf16.gmra.mxu0 %vm685_vm3, %v7746_v37  ;;  %v2361_v38 = vrot.slane %v2360_v56, 4  ;;  %v2419_v2 = vshll.u32 %v5507_v33, 16  ;;  %v2425_v37 = vshll.u32 %v7901_v22, 16  ;;  %v2375_v24 = vrot.slane %v2374_v26, 4 }
  0xbc   : > { %6320 = vmatprep.mubr.msk.bf16.mxu0 %vm685_vm3, %v7748_v29  ;;  %v2389_v14 = vrot.slane %v2387_v19, 5  ;;  %v2408_v36 = vor.u32 %v2407_v52, %v2403_v42  ;;  %v2418_v15 = vrot.slane %v2416_v54, 4  ;;  %v2385_v34 = vrot.slane %v2384_v11, 4 }
  0xbd   : > { %v2421_v29 = vrot.slane %v2419_v2, 5  ;;  %v7916_v39 = vrot.slane %v2425_v37, 5  ;;  %v2429_v56 = vshrl.u32 %v7901_v22, 16  ;;  %v9748_v26 = vsel %vm6943_vm4, %v7802_v17, %v7788_v6 }
  0xbe   : > { %6283 = vmatmul.mubr.msk.bf16.gmra.mxu1 %vm685_vm3, %v6567_v16  ;;  %v9749_v16 = vsel %vm6943_vm4, %v7786_v23, %v7728_v58  ;;  %v2399_v19 = vrot.slane %v2398_v51, 4  ;;  %v2409_v33 = vrot.slane %v2408_v36, 4  ;;  %v2413_v2 = vrot.slane %v2411_v7, 5  ;;  %v6569_v23 = vld [vmem:[%s6899_s9 + $0x60] sm:$0xff]  }
  0xbf   : > { %6286 = vmatprep.mubr.msk.bf16.mxu1 %vm685_vm3, %v6568_v57  ;;  %v5519_v18 = vcombine.low %v9749_v16, %v9748_v26  ;;  %v9750_v59 = vsel %vm6943_vm4, %v7813_v53, %v7815_v13  ;;  %v9751_v6 = vsel %vm6943_vm4, %v7811_v25, %v7744_v60  ;;  %v2422_v57 = vor.u32 %v2421_v29, %v2418_v15  ;;  %v5545_v13 = vld [vmem:[%s6899_s9 + $0x24] sm:$0xe]  ;;  %v5548_v26 = vld [vmem:[%s6899_s9 + $0x48] sm:$0xe] }
  0xc0   : > { %v5520_v17 = vcombine.low %v9751_v6, %v9750_v59  ;;  %v2431_v11 = vrot.slane %v2429_v56, 4  ;;  %v2435_v58 = vshll.u32 %v7913_v45, 16  ;;  %v9752_v36 = vsel %vm6943_vm4, %v7817_v10, %v7767_v63  ;;  %v6570_v63 = vld [vmem:[%s6899_s9 + $0x6c] sm:$0xff]   ;;  %v5549_v6 = vld [vmem:[%s6899_s9 + $0x54] sm:$0xe] }
  0xc1   : > { %v5521_v51 = vcombine.low %v9752_v36, %v2318_v20  ;;  %v2332_v53 = vsel %vm6943_vm4, %v7889_v12, %v7831_v3  ;;  %v2342_v60 = vsel %vm6943_vm4, %v2337_v43, %v7876_v48  ;;  %v2356_v25 = vsel %vm6943_vm4, %v2351_v46, %v7866_v9  ;;  %v7969_v12 = vld [vmem:[%s6899_s9 + $0xc] sm:$0xe] }
  0xc2   : > { %v2366_v10 = vsel %vm6943_vm4, %v2361_v38, %v2365_v32  ;;  %v2380_v3 = vsel %vm6943_vm4, %v2375_v24, %v7886_v55  ;;  %v2390_v20 = vsel %vm6943_vm4, %v2385_v34, %v2389_v14  ;;  %v2432_v48 = vor.u32 %v2431_v11, %v7916_v39  ;;  %v5546_v55 = vld [vmem:[%s6899_s9 + $0x30] sm:$0xe]  ;;  %v5547_v14 = vld [vmem:[%s6899_s9 + $0x3c] sm:$0xe] }
  0xc3   : > { %6321 = vmatmul.mubr.msk.bf16.gmra.mxu0 %vm685_vm3, %v7800_v62  ;;  %v2404_v62 = vsel %vm6943_vm4, %v2399_v19, %v2403_v42  ;;  %v2414_v38 = vsel %vm6943_vm4, %v2409_v33, %v2413_v2  ;;  %v7976_v9 = vrot.slane %v2422_v57, 4  ;;  %v2799_v46 = vrot.slane %v7460_v49, 5  ;;  %v6571_v57 = vld [vmem:[%s6899_s9 + $0x78] sm:$0xff]  }
  0xc4   : > { %6324 = vmatprep.mubr.msk.bf16.mxu0 %vm685_vm3, %v5519_v18  ;;  %v7980_v43 = vcombine.low %v2332_v53, %v2342_v60  ;;  %v7982_v32 = vrot.slane %v2432_v48, 4  ;;  %v7984_v52 = vrot.slane %v2435_v58, 5  ;;  %v5561_v7 = vrot.slane %v5545_v13, 9  ;;  %v6572_v53 = vld [vmem:[%s6899_s9 + $0x84] sm:$0xff]   ;;  %v5550_v13 = vld [vmem:[%s6899_s9 + $0x60] sm:$0xe] }
  0xc5   : > { %v7987_v54 = vcombine.low %v2356_v25, %v2366_v10  ;;  %v7989_v42 = vcombine.low %v2380_v3, %v2390_v20  ;;  %v5559_v37 = vrot.slane %v7969_v12, 9  ;;  %v2813_v24 = vrot.slane %v7509_v44, 5  ;;  %v6578_v49 = vld [vmem:[%s6899_s9 + $0x18] sm:$0xff]  }
  0xc6   : > { %6287 = vmatmul.mubr.msk.bf16.gmra.mxu1 %vm685_vm3, %v6569_v23  ;;  %v7995_v15 = vcombine.low %v2404_v62, %v2414_v38  ;;  %v2802_v34 = vrot.slane %v7496_v47, 5  ;;  %v2816_v29 = vrot.slane %v7524_v21, 5  ;;  %v5562_v56 = vrot.slane %v5546_v55, 9  ;;  %v5552_v55 = vld [vmem:[%s6899_s9 + $0x78] sm:$0xe] }
  0xc7   : > { %6290 = vmatprep.mubr.msk.bf16.mxu1 %vm685_vm3, %v6570_v63  ;;  %v2428_v16 = vsel %vm6943_vm4, %v7976_v9, %v7916_v39  ;;  %v8006_v44 = vrot.slane %v2799_v46, 4  ;;  %v8010_v18 = vsel %vm7229_vm7, %v5561_v7, %v2813_v24  ;;  %v2815_v19 = vrot.slane %v2813_v24, 4 }
  0xc8   : > { %v2438_v21 = vsel %vm6943_vm4, %v7982_v32, %v7984_v52  ;;  %v2820_v33 = vrot.slane %v7547_v5, 5  ;;  %v2823_v2 = vrot.slane %v7555_v41, 5  ;;  %v5563_v59 = vrot.slane %v5547_v14, 9  ;;  %v6577_v52 = vld [vmem:[%s6899_s9 + $0xc0] sm:$0xff]  }
  0xc9   : > { %v8022_v11 = vsel %vm7229_vm7, %v2815_v19, %v2816_v29  ;;  %v2827_v58 = vrot.slane %v7564_v61, 5  ;;  %v2830_v23 = vrot.slane %v7616_v50, 5  ;;  %v5564_v36 = vrot.slane %v5548_v26, 9  ;;  %v5553_v19 = vld [vmem:[%s6899_s9 + $0x84] sm:$0xe] }
  0xca   : > { %v5578_v5 = vcombine.low %v8010_v18, %v8022_v11  ;;  %v8032_v41 = vsel %vm7229_vm7, %v5562_v56, %v2820_v33  ;;  %v2822_v60 = vrot.slane %v2820_v33, 4  ;;  %v2834_v25 = vrot.slane %v7582_v1, 5 }
  0xcb   : > { %6325 = vmatmul.mubr.msk.bf16.gmra.mxu0 %vm685_vm3, %v5520_v17  ;;  %v8039_v61 = vsel %vm7229_vm7, %v5563_v59, %v2827_v58  ;;  %v2829_v50 = vrot.slane %v2827_v58, 4  ;;  %v2837_v17 = vrot.slane %v7630_v8, 5  ;;  %v5565_v63 = vrot.slane %v5549_v6, 9  ;;  %v9753_v59 = vld [vmem:[#allocation7_spill] sm:$0xff] }
  0xcc   : > { %6328 = vmatprep.mubr.msk.bf16.mxu0 %vm685_vm3, %v5521_v51  ;;  %v8044_v10 = vsel %vm7229_vm7, %v2822_v60, %v2823_v2  ;;  %v8048_v3 = vsel %vm7229_vm7, %v5564_v36, %v2834_v25  ;;  %v2836_v1 = vrot.slane %v2834_v25, 4  ;;  %v2841_v20 = vrot.slane %v7625_v40, 5  ;;  %v5551_v51 = vld [vmem:[%s6899_s9 + $0x6c] sm:$0xe]  ;;  %v6573_v58 = vld [vmem:[%s6899_s9 + $0x90] sm:$0xff]  }
  0xcd   : > { %v5579_v48 = vcombine.low %v8032_v41, %v8044_v10  ;;  %v8057_v8 = vsel %vm7229_vm7, %v2829_v50, %v2830_v23  ;;  %v2844_v62 = vrot.slane %v7647_v35, 5  ;;  %v5566_v38 = vrot.slane %v5550_v13, 9  ;;  %v9754_v36 = vld [vmem:[#allocation6_spill] sm:$0xff]  ;;  %v5554_v60 = vld [vmem:[%s6899_s9 + $0x90] sm:$0xe]  ;;  %v9755_v50 = vld [vmem:[#allocation9_spill] sm:$0xff] }
  0xce   : > { %6291 = vmatmul.mubr.msk.bf16.gmra.mxu1 %vm685_vm3, %v6571_v57  ;;  %v5580_v40 = vcombine.low %v8039_v61, %v8057_v8  ;;  %v8066_v7 = vsel %vm7229_vm7, %v2836_v1, %v2837_v17  ;;  %v8070_v24 = vsel %vm7229_vm7, %v5565_v63, %v2841_v20  ;;  %v2843_v14 = vrot.slane %v2841_v20, 4 }
  0xcf   : > { %6294 = vmatprep.mubr.msk.bf16.mxu1 %vm685_vm3, %v6572_v53  ;;  %v5581_v35 = vcombine.low %v8048_v3, %v8066_v7  ;;  %v2848_v29 = vrot.slane %v7660_v28, 5  ;;  %v2851_v56 = vrot.slane %v7682_v30, 5  ;;  %v5567_v26 = vrot.slane %v5551_v51, 9  ;;  %v9756_v51 = vld [vmem:[#allocation8_spill] sm:$0xff]  ;;  %v5685_v3 = vld [vmem:[%s6899_s9 + $0x48] sm:$0xf] }
  0xd0   : > { %v8079_v33 = vsel %vm7229_vm7, %v2843_v14, %v2844_v62  ;;  %v2855_v2 = vrot.slane %v7679_v27, 5  ;;  %v2858_v6 = vrot.slane %v9753_v59, 5  ;;  %v5568_v57 = vrot.slane %v5552_v55, 9  ;;  %v6574_v27 = vld [vmem:[%s6899_s9 + $0x9c] sm:$0xff]   ;;  %v9764_v55 = vld [vmem:[#allocation18_spill] sm:$0xff] }
  0xd1   : > { %v5582_v23 = vcombine.low %v8070_v24, %v8079_v33  ;;  %v8088_v28 = vsel %vm7229_vm7, %v5566_v38, %v2848_v29  ;;  %v2850_v30 = vrot.slane %v2848_v29, 4  ;;  %v2862_v53 = vrot.slane %v9754_v36, 5  ;;  %v5555_v38 = vld [vmem:[%s6899_s9 + $0x9c] sm:$0xe]  ;;  %v9759_v36 = vld [vmem:[#allocation15_spill] sm:$0xff] }
  0xd2   : > { %v8097_v25 = vsel %vm7229_vm7, %v5567_v26, %v2855_v2  ;;  %v2857_v13 = vrot.slane %v2855_v2, 4  ;;  %v2865_v17 = vrot.slane %v9755_v50, 5  ;;  %v5569_v63 = vrot.slane %v5553_v19, 9  ;;  %v5556_v26 = vld [vmem:[%s6899_s9 + $0xa8] sm:$0xe] }
  0xd3   : > { %6329 = vmatmul.mubr.msk.bf16.gmra.mxu0 %vm685_vm3, %v7980_v43  ;;  %v8104_v1 = vsel %vm7229_vm7, %v2850_v30, %v2851_v56  ;;  %v8108_v43 = vsel %vm7229_vm7, %v5568_v57, %v2862_v53  ;;  %v2864_v20 = vrot.slane %v2862_v53, 4  ;;  %v2869_v62 = vrot.slane %v9756_v51, 5  ;;  %v5558_v57 = vld [vmem:[%s6899_s9 + $0xc0] sm:$0xe]  ;;  %v6575_v19 = vld [vmem:[%s6899_s9 + $0xa8] sm:$0xff]  }
  0xd4   : > { %6332 = vmatprep.mubr.msk.bf16.mxu0 %vm685_vm3, %v7987_v54  ;;  %v8116_v14 = vsel %vm7229_vm7, %v2857_v13, %v2858_v6  ;;  %v9757_v54 = vld [vmem:[#allocation11_spill] sm:$0xff]  ;;  %v5570_v56 = vrot.slane %v5554_v60, 9  ;;  %v2879_v53 = vrot.slane %v9759_v36, 5  ;;  %v5571_v60 = vrot.slane %v5555_v38, 9  ;;  %v9762_v38 = vld [vmem:[#allocation16_spill] sm:$0xff] }
  0xd5   : > { %v2872_v29 = vrot.slane %v9757_v54, 5  ;;  %v8125_v2 = vsel %vm7229_vm7, %v2864_v20, %v2865_v17  ;;  %v8129_v59 = vsel %vm7229_vm7, %v5569_v63, %v2869_v62  ;;  %v2871_v6 = vrot.slane %v2869_v62, 4  ;;  %v5557_v13 = vld [vmem:[%s6899_s9 + $0xb4] sm:$0xe]  ;;  %v9760_v17 = vld [vmem:[#allocation13_spill] sm:$0xff] }
  0xd6   : > { %6295 = vmatmul.mubr.msk.bf16.gmra.mxu1 %vm685_vm3, %v6573_v58  ;;  %v9758_v58 = vld [vmem:[#allocation10_spill] sm:$0xff]  ;;  %v2883_v63 = vrot.slane %v9760_v17, 5  ;;  %v9761_v20 = vld [vmem:[#allocation5_spill] sm:$0xff]  ;;  %v5572_v62 = vrot.slane %v5556_v26, 9  ;;  %v2890_v36 = vrot.slane %v9762_v38, 5  ;;  %v5573_v26 = vrot.slane %v5557_v13, 9 }
  0xd7   : > { %6298 = vmatprep.mubr.msk.bf16.mxu1 %vm685_vm3, %v6574_v27  ;;  %v2876_v30 = vrot.slane %v9758_v58, 5  ;;  %v8139_v50 = vsel %vm7229_vm7, %v2871_v6, %v2872_v29  ;;  %v2886_v51 = vrot.slane %v9761_v20, 5  ;;  %v9763_v17 = vld [vmem:[#allocation17_spill] sm:$0xff]  ;;  %v6576_v27 = vld [vmem:[%s6899_s9 + $0xb4] sm:$0xff]   ;;  %v2803_v39 = vsel %vm7229_vm7, %v8006_v44, %v2802_v34  ;;  %v8356_v7 = vld [vmem:[%s6899_s9 + $0x4c] sm:$0xf] }
  0xd8   : > { %v8154_v29 = vsel %vm7229_vm7, %v5571_v60, %v2883_v63  ;;  %v2885_v6 = vrot.slane %v2883_v63, 4  ;;  %v2893_v20 = vrot.slane %v9763_v17, 5  ;;  %v2892_v38 = vrot.slane %v2890_v36, 4  ;;  %v6723_v44 = vld [vmem:[%s6899_s9 + $0x20] sm:$0x1] }
  0xd9   : > { %v8147_v54 = vsel %vm7229_vm7, %v5570_v56, %v2876_v30  ;;  %v2878_v58 = vrot.slane %v2876_v30, 4  ;;  %v8166_v30 = vsel %vm7229_vm7, %v5572_v62, %v2890_v36  ;;  %v2897_v60 = vrot.slane %v9764_v55, 5 }
  0xda   : > { %v5574_v63 = vrot.slane %v5558_v57, 9  ;;  %v8182_v55 = vsel %vm7229_vm7, %v2892_v38, %v2893_v20  ;;  %v2904_v57 = vrot.slane %v7901_v22, 5  ;;  %v2800_v22 = vsel %vm7229_vm7, %v5559_v37, %v2799_v46  ;;  %v6580_v38 = vld [vmem:[%s6899_s9 + $0x30] sm:$0xff]  }
  0xdb   : > { %6333 = vmatmul.mubr.msk.bf16.gmra.mxu0 %vm685_vm3, %v7989_v42  ;;  %v8162_v56 = vsel %vm7229_vm7, %v2878_v58, %v2879_v53  ;;  %v8175_v42 = vsel %vm7229_vm7, %v2885_v6, %v2886_v51  ;;  %v2900_v53 = vrot.slane %v7892_v4, 5  ;;  %v2899_v58 = vrot.slane %v2897_v60, 4 }
  0xdc   : > { %6336 = vmatprep.mubr.msk.bf16.mxu0 %vm685_vm3, %v7995_v15  ;;  %v8186_v15 = vsel %vm7229_vm7, %v5573_v26, %v2897_v60  ;;  %v2907_v51 = vrot.slane %v7913_v45, 5  ;;  %v5544_v45 = vld [vmem:[%s6899_s9 + $0x18] sm:$0xe]  ;;  %v8226_v9 = vsel %vm7229_vm7, %v5574_v63, %v2904_v57  ;;  %v2906_v46 = vrot.slane %v2904_v57, 4  ;;  %v6579_v26 = vld [vmem:[%s6899_s9 + $0x24] sm:$0xff]  }
  0xdd   : > { %v8214_v32 = vsel %vm7229_vm7, %v2899_v58, %v2900_v53  ;;  %v5560_v37 = vrot.slane %v5544_v45, 9  ;;  %v5576_v34 = vcombine.low %v2800_v22, %v2803_v39  ;;  %v9765_v60 = vld [vmem:[#allocation12_spill] sm:$0xff] }
  0xde   : > { %6299 = vmatmul.mubr.msk.bf16.gmra.mxu1 %vm685_vm3, %v6575_v19  ;;  %v5526_v19 = vcombine.low %v2428_v16, %v2438_v21  ;;  %v8231_v47 = vsel %vm7229_vm7, %v2906_v46, %v2907_v51  ;;  %v2809_v21 = vrot.slane %v6723_v44, 5  ;;  %v4563_v53 = vsel %vm734_vm0, %v9765_v60, 0  ;;  %v5673_v63 = vld [vmem:[%s6899_s9 + $0x18] sm:$0xf]  ;;  %v5674_v57 = vld [vmem:[%s6899_s9 + $0x1c] sm:$0xf] }
  0xdf   : > { %6302 = vmatprep.mubr.msk.bf16.mxu1 %vm685_vm3, %v6576_v27  ;;  %v6722_v27 = vld [vmem:[%s6899_s9 + $0x1c] sm:$0xf]  ;;  %v5676_v51 = vld [vmem:[%s6899_s9 + $0x24] sm:$0xf]  ;;  %v3611_v45 = vshrl.u32 %v5673_v63, 16  ;;  %v3620_v39 = vshll.u32 %v5674_v57, 16 }
  0xe0   : > { %v2806_v36 = vrot.slane %v6722_v27, 5  ;;  %v3614_v27 = vshll.u32 %v5673_v63, 16  ;;  %v3635_v46 = vshrl.u32 %v5676_v51, 16  ;;  %v6582_v44 = vld [vmem:[%s6899_s9 + $0x48] sm:$0xff]   ;;  %v5754_v60 = vld [vmem:[%s6899_s9 + $0x18] sm:$0xe] }
  0xe1   : > { %v8272_v63 = vld [vmem:[%s6899_s9 + $0x2c] sm:$0x1] }
  0xe2   : > { %v2808_v16 = vrot.slane %v2806_v36, 4  ;;  %v2807_v17 = vsel %vm7229_vm7, %v5560_v37, %v2806_v36  ;;  %v8256_v36 = vld [vmem:[%s6899_s9 + $0x28] sm:$0xf]  ;;  %v6581_v37 = vld [vmem:[%s6899_s9 + $0x3c] sm:$0xff]   ;;  %v3637_v18 = vrot.slane %v3635_v46, 4 }
  0xe3   : > { %6337 = vmatmul.mubr.msk.bf16.gmra.mxu0 %vm685_vm3, %v5526_v19  ;;  %v9766_v19 = vld [vmem:[#allocation14_spill] sm:$0xff] }
  0xe4   : > { %6376 = vmatprep.mubr.msk.bf16.mxu0 %vm685_vm3, %v6578_v49  ;;  %v2810_v20 = vsel %vm7229_vm7, %v2808_v16, %v2809_v21  ;;  %v4093_v22 = vsel %vm734_vm0, %v9766_v19, 0  ;;  %v3624_v49 = vshrl.u32 %v5674_v57, 16  ;;  %v3648_v16 = vshrl.u32 %v8256_v36, 16  ;;  %v5675_v21 = vld [vmem:[%s6899_s9 + $0x20] sm:$0x1] }
  0xe5   : > { %v5577_v58 = vcombine.low %v2807_v17, %v2810_v20  ;;  %v3613_v17 = vrot.slane %v3611_v45, 4  ;;  %v3616_v20 = vrot.slane %v3614_v27, 5  ;;  %v5679_v19 = vld [vmem:[%s6899_s9 + $0x30] sm:$0xf]  ;;  %v3630_v45 = vshll.u32 %v5675_v21, 16 }
  0xe6   : > { %6303 = vmatmul.mubr.msk.bf16.gmra.mxu1 %vm685_vm3, %v6577_v52  ;;  %v3638_v52 = vshll.u32 %v5676_v51, 16  ;;  %v3650_v51 = vrot.slane %v3648_v16, 4  ;;  %v5770_v27 = vrot.slane %v5754_v60, 9  ;;  %v4357_v46 = vrot.slane %v5675_v21, 5  ;;  %v5755_v16 = vld [vmem:[%s6899_s9 + $0x24] sm:$0xe] }
  0xe7   : > { %6342 = vmatprep.mubr.msk.bf16.mxu1 %vm685_vm3, %v5576_v34  ;;  %v3644_v34 = vshll.u32 %v8256_v36, 16  ;;  %v6583_v21 = vld [vmem:[%s6899_s9 + $0x54] sm:$0xff]   ;;  %v3662_v10 = vshll.u32 %v5679_v19, 16  ;;  %v6584_v60 = vld [vmem:[%s6899_s9 + $0x60] sm:$0xff]  }
  0xe8   : > { %v3640_v11 = vrot.slane %v3638_v52, 5  ;;  %v3654_v52 = vshll.u32 %v8272_v63, 16 }
  0xeb   : > { %6377 = vmatmul.mubr.msk.bf16.vlgmr.msra.gmra.mxu0 %vm685_vm3, %v6579_v26  ;;  %v8268_v26 = vrot.slane %v3620_v39, 5 }
  0xec   : > { %6443 = vmatpush3.bf16.msra.mxu0 %v4563_v53  ;;  %6380 = vmatprep.mubr.msk.bf16.mxu0 %vm685_vm3, %v6580_v38  ;;  %v3626_v38 = vrot.slane %v3624_v49, 4  ;;  %v4354_v53 = vrot.slane %v5674_v57, 5  ;;  %v8282_v57 = vld [vmem:[%s6899_s9 + $0x34] sm:$0xf] }
  0xee   : > { %6343 = vmatmul.mubr.msk.bf16.vlgmr.msra.gmra.mxu1 %vm685_vm3, %v5577_v58  ;;  %v8277_v58 = vrot.slane %v3644_v34, 5  ;;  %v3627_v39 = vor.u32 %v3626_v38, %v8268_v26  ;;  %v4356_v49 = vrot.slane %v4354_v53, 4  ;;  %v3641_v34 = vor.u32 %v3640_v11, %v3637_v18 }
  0xef   : > { %6409 = vmatpush3.bf16.msra.mxu1 %v4093_v22  ;;  %6346 = vmatprep.mubr.msk.bf16.mxu1 %vm685_vm3, %v5578_v5  ;;  %v8275_v5 = vpop.f32.mrf.mxu0  ;;  %v3617_v22 = vor.u32 %v3616_v20, %v3613_v17  ;;  %v3659_v17 = vshrl.u32 %v5679_v19, 16  ;;  %v3672_v38 = vshrl.u32 %v8282_v57, 16  ;;  %v8307_v61 = vsel %vm7229_vm7, %v5770_v27, %v4354_v53  ;;  %v5682_v19 = vld [vmem:[%s6899_s9 + $0x3c] sm:$0xf] }
  0xf0   : > { %v3651_v41 = vor.u32 %v3650_v51, %v8277_v58  ;;  %v3628_v8 = vrot.slane %v3627_v39, 4  ;;  %v3656_v11 = vrot.slane %v3654_v52, 5  ;;  %v5771_v51 = vrot.slane %v5755_v16, 9  ;;  %v8321_v39 = vld [vmem:[%s6899_s9 + $0x38] sm:$0x1] }
  0xf1   : > { %v8299_v20 = vpop.f32.mrf.mxu0  ;;  %v3618_v18 = vrot.slane %v3617_v22, 4  ;;  %v3642_v12 = vrot.slane %v3641_v34, 4  ;;  %v4364_v22 = vrot.slane %v8272_v63, 5  ;;  %v3674_v52 = vrot.slane %v3672_v38, 4 }
  0xf2   : > { %v3652_v27 = vrot.slane %v3651_v41, 4  ;;  %v3683_v34 = vshrl.u32 %v5682_v19, 16  ;;  %v3686_v16 = vshll.u32 %v5682_v19, 16  ;;  %v8334_v41 = vld [vmem:[%s6899_s9 + $0x40] sm:$0xf] }
  0xf3   : > { %6381 = vmatmul.mubr.msk.bf16.gmra.mxu0 %vm685_vm3, %v6581_v37  ;;  %v8318_v53 = vpop.f32.mrf.mxu0  ;;  %v3623_v63 = vsel %vm6943_vm4, %v3618_v18, %v8268_v26  ;;  %v3647_v26 = vsel %vm6943_vm4, %v3642_v12, %v8277_v58  ;;  %v5756_v18 = vld [vmem:[%s6899_s9 + $0x30] sm:$0xe]  ;;  %v3692_v24 = vshll.u32 %v8334_v41, 16  ;;  %v3696_v33 = vshrl.u32 %v8334_v41, 16 }
  0xf4   : > { %6384 = vmatprep.mubr.msk.bf16.mxu0 %vm685_vm3, %v6582_v44  ;;  %v8290_v37 = vpop.f32.mrf.mxu1  ;;  %v4361_v44 = vrot.slane %v8256_v36, 5  ;;  %v3632_v36 = vrot.slane %v3630_v45, 5  ;;  %v3661_v45 = vrot.slane %v3659_v17, 4  ;;  %v3657_v58 = vsel %vm6943_vm4, %v3652_v27, %v3656_v11 }
  0xf5   : > { %9767 = vst [vmem:[#allocation7_spill] sm:$0xff] %v8290_v37  ;;  %v8363_v12 = vpop.f32.mrf.mxu0  ;;  %v3688_v19 = vrot.slane %v3686_v16, 5  ;;  %v3720_v11 = vshrl.u32 %v8356_v7, 16 }
  0xf6   : > { %6347 = vmatmul.mubr.msk.bf16.gmra.mxu1 %vm685_vm3, %v5579_v48  ;;  %v3668_v48 = vshll.u32 %v8282_v57, 16  ;;  %v8314_v6 = vpop.f32.mrf.mxu1  ;;  %v4363_v4 = vrot.slane %v4361_v44, 4  ;;  %v3633_v17 = vsel %vm6943_vm4, %v3628_v8, %v3632_v36  ;;  %v4368_v36 = vrot.slane %v8282_v57, 5  ;;  %v6586_v8 = vld [vmem:[%s6899_s9 + $0x78] sm:$0xff]  }
  0xf7   : > { %6350 = vmatprep.mubr.msk.bf16.mxu1 %vm685_vm3, %v5580_v40  ;;  %v8311_v40 = vsel %vm7229_vm7, %v4356_v49, %v4357_v46  ;;  %9768 = vst [vmem:[#allocation6_spill] sm:$0xff] %v8314_v6  ;;  %v3664_v49 = vrot.slane %v3662_v10, 5  ;;  %v8377_v27 = vcombine.low %v3623_v63, %v3633_v17  ;;  %v8379_v57 = vcombine.low %v3647_v26, %v3657_v58  ;;  %v8393_v17 = vld [vmem:[%s6899_s9 + $0x58] sm:$0xf]  ;;  %v8399_v58 = vld [vmem:[%s6899_s9 + $0x44] sm:$0x1] }
  0xf8   : > { %v8323_v46 = vrot.slane %v3668_v48, 5  ;;  %v8340_v10 = vpop.f32.mrf.mxu1  ;;  %v8347_v48 = vsel %vm7229_vm7, %v5771_v51, %v4361_v44  ;;  %v8351_v38 = vsel %vm7229_vm7, %v4363_v4, %v4364_v22  ;;  %v3685_v51 = vrot.slane %v3683_v34, 4  ;;  %v5688_v34 = vld [vmem:[%s6899_s9 + $0x54] sm:$0xf] }
  0xf9   : > { %9769 = vst [vmem:[#allocation9_spill] sm:$0xff] %v8340_v10  ;;  %v3665_v44 = vor.u32 %v3664_v49, %v3661_v45  ;;  %v3710_v22 = vshll.u32 %v5685_v3, 16  ;;  %v4370_v13 = vrot.slane %v4368_v36, 4  ;;  %v4371_v63 = vrot.slane %v8321_v39, 5  ;;  %v5757_v49 = vld [vmem:[%s6899_s9 + $0x3c] sm:$0xe] }
  0xfa   : > { %v3675_v4 = vor.u32 %v3674_v52, %v8323_v46  ;;  %v8375_v45 = vpop.f32.mrf.mxu1  ;;  %v5772_v52 = vrot.slane %v5756_v18, 9  ;;  %v3689_v18 = vor.u32 %v3688_v19, %v3685_v51  ;;  %v9772_v6 = vcombine.low %v8088_v28, %v8104_v1 }
  0xfb   : > { %6385 = vmatmul.mubr.msk.bf16.gmra.mxu0 %vm685_vm3, %v6583_v21  ;;  %v3716_v21 = vshll.u32 %v8356_v7, 16  ;;  %9770 = vst [vmem:[#allocation8_spill] sm:$0xff] %v8375_v45  ;;  %v3712_v45 = vrot.slane %v3710_v22, 5  ;;  %v3731_v51 = vshrl.u32 %v5688_v34, 16  ;;  %v3734_v19 = vshll.u32 %v5688_v34, 16 }
  0xfc   : > { %6388 = vmatprep.mubr.msk.bf16.mxu0 %vm685_vm3, %v6584_v60  ;;  %v3678_v60 = vshll.u32 %v8321_v39, 16  ;;  %v8396_v26 = vrot.slane %v3675_v4, 4  ;;  %v3722_v39 = vrot.slane %v3720_v11, 4  ;;  %v8434_v22 = vsel %vm7229_vm7, %v4370_v13, %v4371_v63 }
  0xfd   : > { %v8404_v10 = vrot.slane %v3716_v21, 5  ;;  %v9774_v21 = vcombine.low %v8097_v25, %v8116_v14  ;;  %v4375_v25 = vrot.slane %v8334_v41, 5  ;;  %v6588_v14 = vld [vmem:[%s6899_s9 + $0x90] sm:$0xff]   ;;  %v5773_v1 = vrot.slane %v5757_v49, 9  ;;  %v5691_v41 = vld [vmem:[%s6899_s9 + $0x60] sm:$0xf] }
  0xfe   : > { %6351 = vmatmul.mubr.msk.bf16.gmra.mxu1 %vm685_vm3, %v5581_v35  ;;  %v6585_v35 = vld [vmem:[%s6899_s9 + $0x6c] sm:$0xff]   ;;  %v8389_v62 = vrot.slane %v3678_v60, 5  ;;  %v3733_v37 = vrot.slane %v3731_v51, 4 }
  0xff   : > { %6354 = vmatprep.mubr.msk.bf16.mxu1 %vm685_vm3, %v5582_v23  ;;  %v3707_v23 = vshrl.u32 %v5685_v3, 16  ;;  %v8387_v3 = vrot.slane %v3665_v44, 4  ;;  %v3698_v44 = vrot.slane %v3696_v33, 4  ;;  %v3744_v33 = vshrl.u32 %v8393_v17, 16 }
 0x100   : > { %v8385_v16 = vpop.f32.mrf.mxu0  ;;  %v3723_v13 = vor.u32 %v3722_v39, %v8404_v10  ;;  %v4382_v39 = vrot.slane %v8356_v7, 5  ;;  %v9778_v7 = vcombine.low %v8108_v43, %v8125_v2  ;;  %v9780_v43 = vcombine.low %v8129_v59, %v8139_v50  ;;  %v6589_v2 = vld [vmem:[%s6899_s9 + $0x9c] sm:$0xff]  }
 0x101   : > { %9771 = vst [vmem:[#allocation11_spill] sm:$0xff] %v8385_v16  ;;  %v3709_v60 = vrot.slane %v3707_v23, 4  ;;  %v6587_v23 = vld [vmem:[%s6899_s9 + $0x84] sm:$0xff]   ;;  %v8461_v16 = vld [vmem:[%s6899_s9 + $0x5c] sm:$0x1]  ;;  %v4389_v59 = vrot.slane %v8393_v17, 5 }
 0x102   : > { %v8422_v28 = vpop.f32.mrf.mxu0 }
 0x103   : > { %6389 = vmatmul.mubr.msk.bf16.gmra.mxu0 %vm685_vm3, %v6585_v35  ;;  %v8401_v35 = vrot.slane %v3692_v24, 5  ;;  %v3740_v24 = vshll.u32 %v8393_v17, 16  ;;  %9775 = vst [vmem:[#allocation15_spill] sm:$0xff] %v8422_v28  ;;  %v3736_v28 = vrot.slane %v3734_v19, 5 }
 0x104   : > { %6392 = vmatprep.mubr.msk.bf16.mxu0 %vm685_vm3, %v6586_v8  ;;  %v8410_v4 = vpop.f32.mrf.mxu1  ;;  %v8413_v8 = vld [vmem:[%s6899_s9 + $0x50] sm:$0x1]  ;;  %v8454_v49 = vpop.f32.mrf.mxu0 }
 0x105   : > { %9773 = vst [vmem:[#allocation10_spill] sm:$0xff] %v8410_v4  ;;  %v3699_v34 = vor.u32 %v3698_v44, %v8401_v35  ;;  %v8444_v4 = vrot.slane %v3689_v18, 4  ;;  %v8451_v11 = vrot.slane %v3740_v24, 5  ;;  %v3746_v44 = vrot.slane %v3744_v33, 4  ;;  %9777 = vst [vmem:[#allocation5_spill] sm:$0xff] %v8454_v49 }
 0x106   : > { %6355 = vmatmul.mubr.msk.bf16.gmra.mxu1 %vm685_vm3, %v9772_v6  ;;  %v8430_v6 = vsel %vm7229_vm7, %v5772_v52, %v4368_v36  ;;  %v3713_v36 = vor.u32 %v3712_v45, %v3709_v60  ;;  %v3726_v52 = vshll.u32 %v8413_v8, 16  ;;  %v8449_v63 = vpop.f32.mrf.mxu1  ;;  %v4377_v18 = vrot.slane %v4375_v25, 4  ;;  %v5758_v24 = vld [vmem:[%s6899_s9 + $0x48] sm:$0xe] }
 0x107   : > { %6358 = vmatprep.mubr.msk.bf16.mxu1 %vm685_vm3, %v9774_v21  ;;  %v3702_v21 = vshll.u32 %v8399_v58, 16  ;;  %9776 = vst [vmem:[#allocation13_spill] sm:$0xff] %v8449_v63  ;;  %v4378_v60 = vrot.slane %v8399_v58, 5  ;;  %v3700_v51 = vrot.slane %v3699_v34, 4  ;;  %v3755_v33 = vshrl.u32 %v5691_v41, 16 }
 0x108   : > { %v8467_v63 = vsel %vm7229_vm7, %v5773_v1, %v4375_v25  ;;  %v3714_v45 = vrot.slane %v3713_v36, 4  ;;  %v3724_v49 = vrot.slane %v3723_v13, 4  ;;  %v3728_v58 = vrot.slane %v3726_v52, 5  ;;  %v8482_v36 = vld [vmem:[%s6899_s9 + $0x64] sm:$0xf]  ;;  %v8489_v13 = vpop.f32.mrf.mxu0 }
 0x109   : > { %v3704_v19 = vrot.slane %v3702_v21, 5  ;;  %v3695_v34 = vsel %vm6943_vm4, %v8444_v4, %v8401_v35  ;;  %v3737_v21 = vor.u32 %v3736_v28, %v3733_v37  ;;  %v3747_v1 = vor.u32 %v3746_v44, %v8451_v11  ;;  %9781 = vst [vmem:[#allocation17_spill] sm:$0xff] %v8489_v13  ;;  %v5759_v28 = vld [vmem:[%s6899_s9 + $0x54] sm:$0xe]  ;;  %v6593_v13 = vld [vmem:[%s6899_s9 + $0xcc] sm:$0xff]  }
 0x10a   : > { %v3750_v25 = vshll.u32 %v8461_v16, 16  ;;  %v8493_v52 = vsel %vm7229_vm7, %v4377_v18, %v4378_v60  ;;  %v5774_v35 = vrot.slane %v5758_v24, 9  ;;  %v4384_v37 = vrot.slane %v4382_v39, 4 }
 0x10b   : > { %6393 = vmatmul.mubr.msk.bf16.gmra.mxu0 %vm685_vm3, %v6587_v23  ;;  %v3758_v23 = vshll.u32 %v5691_v41, 16  ;;  %v4385_v4 = vrot.slane %v8413_v8, 5  ;;  %v6590_v41 = vld [vmem:[%s6899_s9 + $0xa8] sm:$0xff]   ;;  %v3705_v44 = vsel %vm6943_vm4, %v3700_v51, %v3704_v19  ;;  %v3757_v50 = vrot.slane %v3755_v33, 4 }
 0x10c   : > { %6396 = vmatprep.mubr.msk.bf16.mxu0 %vm685_vm3, %v6588_v14  ;;  %v8473_v14 = vpop.f32.mrf.mxu1  ;;  %v3729_v18 = vsel %vm6943_vm4, %v3724_v49, %v3728_v58  ;;  %v3764_v60 = vshll.u32 %v8482_v36, 16  ;;  %v3768_v8 = vshrl.u32 %v8482_v36, 16  ;;  %v3748_v51 = vrot.slane %v3747_v1, 4  ;;  %v8511_v33 = vld [vmem:[%s6899_s9 + $0x68] sm:$0x1] }
 0x10d   : > { %9779 = vst [vmem:[#allocation16_spill] sm:$0xff] %v8473_v14  ;;  %v3738_v14 = vrot.slane %v3737_v21, 4  ;;  %v3752_v17 = vrot.slane %v3750_v25, 5  ;;  %v5775_v19 = vrot.slane %v5759_v28, 9  ;;  %v9784_v49 = vsel %vm6943_vm4, %v8396_v26, %v8389_v62  ;;  %v5694_v25 = vld [vmem:[%s6899_s9 + $0x6c] sm:$0xf] }
 0x10e   : > { %6359 = vmatmul.mubr.msk.bf16.gmra.mxu1 %vm685_vm3, %v9778_v7  ;;  %v3760_v7 = vrot.slane %v3758_v23, 5  ;;  %v8508_v24 = vpop.f32.mrf.mxu1  ;;  %v8532_v21 = vsel %vm7229_vm7, %v5774_v35, %v4382_v39  ;;  %v8536_v1 = vsel %vm7229_vm7, %v4384_v37, %v4385_v4  ;;  %v8539_v62 = vcombine.low %v3695_v34, %v3705_v44  ;;  %v5760_v4 = vld [vmem:[%s6899_s9 + $0x60] sm:$0xe]  ;;  %v5700_v44 = vld [vmem:[%s6899_s9 + $0x84] sm:$0xf] }
 0x10f   : > { %6362 = vmatprep.mubr.msk.bf16.mxu1 %vm685_vm3, %v9780_v43  ;;  %v3719_v43 = vsel %vm6943_vm4, %v3714_v45, %v8404_v10  ;;  %9782 = vst [vmem:[#allocation18_spill] sm:$0xff] %v8508_v24  ;;  %v9785_v45 = vsel %vm6943_vm4, %v8387_v3, %v8323_v46  ;;  %v4391_v46 = vrot.slane %v4389_v59, 4  ;;  %v4392_v3 = vrot.slane %v8461_v16, 5 }
 0x110   : > { %v8526_v23 = vcombine.low %v9785_v45, %v9784_v49  ;;  %9786 = vst [vmem:[#allocation14_spill] sm:$0xff] %v8539_v62  ;;  %v3761_v26 = vor.u32 %v3760_v7, %v3757_v50  ;;  %v8546_v28 = vcombine.low %v3719_v43, %v3729_v18  ;;  %v8548_v39 = vrot.slane %v3764_v60, 5 }
 0x111   : > { %v8514_v10 = vpop.f32.mrf.mxu0  ;;  %v8550_v35 = vrot.slane %v3768_v8, 4  ;;  %v3774_v37 = vshll.u32 %v8511_v33, 16  ;;  %v9788_v34 = vcombine.low %v8147_v54, %v8162_v56  ;;  %v3743_v50 = vsel %vm6943_vm4, %v3738_v14, %v8451_v11  ;;  %v5697_v54 = vld [vmem:[%s6899_s9 + $0x78] sm:$0xf] }
 0x112   : > { %9783 = vst [vmem:[#allocation12_spill] sm:$0xff] %v8514_v10  ;;  %9787 = vst [vmem:[#allocation19_spill] sm:$0xff] %v8546_v28  ;;  %v3753_v7 = vsel %vm6943_vm4, %v3748_v51, %v3752_v17  ;;  %v8570_v43 = vsel %vm7229_vm7, %v5775_v19, %v4389_v59  ;;  %v9790_v56 = vcombine.low %v8154_v29, %v8175_v42  ;;  %v3779_v60 = vshrl.u32 %v5694_v25, 16  ;;  %v8582_v51 = vld [vmem:[%s6899_s9 + $0x7c] sm:$0xf]  ;;  %v6592_v59 = vld [vmem:[%s6899_s9 + $0xc0] sm:$0xff]  }
 0x113   : > { %6397 = vmatmul.mubr.msk.bf16.gmra.mxu0 %vm685_vm3, %v6589_v2  ;;  %v8544_v2 = vld [vmem:[%s6899_s9 + $0x70] sm:$0xf]  ;;  %v8577_v18 = vpop.f32.mrf.mxu0  ;;  %v3782_v8 = vshll.u32 %v5694_v25, 16  ;;  %v8587_v17 = vsel %vm7229_vm7, %v4391_v46, %v4392_v3  ;;  %v8589_v29 = vrot.slane %v3761_v26, 4  ;;  %v5776_v42 = vrot.slane %v5760_v4, 9 }
 0x114   : > { %6400 = vmatprep.mubr.msk.bf16.mxu0 %vm685_vm3, %v6590_v41  ;;  %v6591_v41 = vld [vmem:[%s6899_s9 + $0xb4] sm:$0xff]   ;;  %9791 = vst [vmem:[#allocation21_spill] sm:$0xff] %v8577_v18  ;;  %v3788_v11 = vshll.u32 %v8544_v2, 16  ;;  %v3792_v14 = vshrl.u32 %v8544_v2, 16  ;;  %v4396_v19 = vrot.slane %v8482_v36, 5  ;;  %v8592_v49 = vcombine.low %v3743_v50, %v3753_v7 }
 0x115   : > { %v3771_v45 = vor.u32 %v8550_v35, %v8548_v39  ;;  %v8596_v25 = vrot.slane %v3774_v37, 5  ;;  %v3803_v46 = vshrl.u32 %v5697_v54, 16  ;;  %v3806_v3 = vshll.u32 %v5697_v54, 16  ;;  %v8608_v4 = vld [vmem:[%s6899_s9 + $0x88] sm:$0xf]  ;;  %v8611_v35 = vpop.f32.mrf.mxu0 }
 0x116   : > { %6363 = vmatmul.mubr.msk.bf16.gmra.mxu1 %vm685_vm3, %v9788_v34  ;;  %v8558_v16 = vpop.f32.mrf.mxu1  ;;  %9792 = vst [vmem:[#allocation22_spill] sm:$0xff] %v8592_v49  ;;  %v4399_v34 = vrot.slane %v8511_v33, 5  ;;  %v3812_v36 = vshll.u32 %v8582_v51, 16  ;;  %v3816_v26 = vshrl.u32 %v8582_v51, 16  ;;  %9794 = vst [vmem:[#allocation24_spill] sm:$0xff] %v8611_v35  ;;  %v3781_v33 = vrot.slane %v3779_v60, 4 }
 0x117   : > { %9789 = vst [vmem:[#allocation20_spill] sm:$0xff] %v8558_v16  ;;  %6366 = vmatprep.mubr.msk.bf16.mxu1 %vm685_vm3, %v9790_v56  ;;  %v8600_v56 = vld [vmem:[%s6899_s9 + $0x74] sm:$0x1]  ;;  %v3784_v37 = vrot.slane %v3782_v8, 5  ;;  %v8613_v50 = vrot.slane %v3788_v11, 5  ;;  %v3794_v7 = vrot.slane %v3792_v14, 4  ;;  %v9795_v54 = vcombine.low %v8166_v30, %v8182_v55  ;;  %v8641_v49 = vpop.f32.mrf.mxu0 }
 0x118   : > { %v8603_v58 = vpop.f32.mrf.mxu1  ;;  %v4398_v16 = vrot.slane %v4396_v19, 4  ;;  %v8626_v60 = vld [vmem:[%s6899_s9 + $0x80] sm:$0x1]  ;;  %v8629_v8 = vld [vmem:[%s6899_s9 + $0x6c] sm:$0xe]  ;;  %v3827_v11 = vshrl.u32 %v5700_v44, 16 }
 0x119   : > { %9793 = vst [vmem:[#allocation23_spill] sm:$0xff] %v8603_v58  ;;  %v8622_v58 = vsel %vm7229_vm7, %v5776_v42, %v4396_v19  ;;  %v3830_v14 = vshll.u32 %v5700_v44, 16  ;;  %v3840_v24 = vshrl.u32 %v8608_v4, 16  ;;  %v3805_v19 = vrot.slane %v3803_v46, 4  ;;  %9797 = vst [vmem:[#allocation26_spill] sm:$0xff] %v8641_v49 }
 0x11a   : > { %v8637_v42 = vpop.f32.mrf.mxu1  ;;  %v3808_v35 = vrot.slane %v3806_v3, 5  ;;  %v8639_v18 = vrot.slane %v3812_v36, 5  ;;  %v3818_v10 = vrot.slane %v3816_v26, 4  ;;  %v9798_v44 = vcombine.low %v8186_v15, %v8214_v32  ;;  %v8660_v32 = vld [vmem:[%s6899_s9 + $0x8c] sm:$0x1] }
 0x11b   : > { %6401 = vmatmul.mubr.msk.bf16.gmra.mxu0 %vm685_vm3, %v6591_v41  ;;  %v3798_v41 = vshll.u32 %v8600_v56, 16  ;;  %9796 = vst [vmem:[#allocation25_spill] sm:$0xff] %v8637_v42  ;;  %v3785_v30 = vor.u32 %v3784_v37, %v3781_v33  ;;  %v3795_v55 = vor.u32 %v3794_v7, %v8613_v50  ;;  %v3822_v46 = vshll.u32 %v8626_v60, 16  ;;  %v5762_v33 = vld [vmem:[%s6899_s9 + $0x78] sm:$0xe] }
 0x11c   : > { %6404 = vmatprep.mubr.msk.bf16.mxu0 %vm685_vm3, %v6592_v59  ;;  %v3836_v59 = vshll.u32 %v8608_v4, 16  ;;  %v8651_v3 = vrot.slane %v3771_v45, 4  ;;  %v8655_v36 = vsel %vm7229_vm7, %v4398_v16, %v4399_v34  ;;  %v5777_v26 = vrot.slane %v8629_v8, 9  ;;  %v8665_v42 = vpop.f32.mrf.mxu1  ;;  %v5703_v8 = vld [vmem:[%s6899_s9 + $0x90] sm:$0xf] }
 0x11d   : > { %v4410_v15 = vrot.slane %v8582_v51, 5  ;;  %v3829_v37 = vrot.slane %v3827_v11, 4  ;;  %v3832_v7 = vrot.slane %v3830_v14, 5  ;;  %9799 = vst [vmem:[#allocation27_spill] sm:$0xff] %v8665_v42  ;;  %v3800_v45 = vrot.slane %v3798_v41, 5 }
 0x11e   : > { %6367 = vmatmul.mubr.msk.bf16.gmra.mxu1 %vm685_vm3, %v9795_v54  ;;  %v4403_v54 = vrot.slane %v8544_v2, 5  ;;  %v8663_v2 = vrot.slane %v3836_v59, 5  ;;  %v4406_v49 = vrot.slane %v8600_v56, 5  ;;  %v3809_v16 = vor.u32 %v3808_v35, %v3805_v19  ;;  %v8674_v59 = vld [vmem:[%s6899_s9 + $0x94] sm:$0xf] }
 0x11f   : > { %6370 = vmatprep.mubr.msk.bf16.mxu1 %vm685_vm3, %v9798_v44  ;;  %v3842_v44 = vrot.slane %v3840_v24, 4  ;;  %v3819_v34 = vor.u32 %v3818_v10, %v8639_v18  ;;  %v3786_v51 = vrot.slane %v3785_v30, 4  ;;  %v3796_v11 = vrot.slane %v3795_v55, 4 }
 0x120   : > { %v4405_v62 = vrot.slane %v4403_v54, 4  ;;  %v3824_v14 = vrot.slane %v3822_v46, 5  ;;  %v9800_v24 = vcombine.low %v8307_v61, %v8311_v40  ;;  %v5778_v56 = vrot.slane %v5762_v33, 9 }
 0x121   : > { %v4412_v35 = vrot.slane %v4410_v15, 4  ;;  %v4413_v10 = vrot.slane %v8626_v60, 5  ;;  %v3846_v41 = vshll.u32 %v8660_v32, 16  ;;  %v3843_v30 = vor.u32 %v3842_v44, %v8663_v2 }
 0x122   : > { %v3851_v55 = vshrl.u32 %v5703_v8, 16  ;;  %v3854_v46 = vshll.u32 %v5703_v8, 16  ;;  %v9802_v61 = vcombine.low %v8226_v9, %v8231_v47  ;;  %v3810_v40 = vrot.slane %v3809_v16, 4 }
 0x123   : > { %v8670_v28 = vpop.f32.mrf.mxu0  ;;  %6405 = vmatmul.mubr.msk.bf16.gmra.mxu0 %vm685_vm3, %v6593_v13  ;;  %v3833_v13 = vor.u32 %v3832_v7, %v3829_v37  ;;  %v3820_v33 = vrot.slane %v3819_v34, 4  ;;  %v3860_v60 = vshll.u32 %v8674_v59, 16  ;;  %v3777_v37 = vsel %vm6943_vm4, %v8651_v3, %v8596_v25 }
 0x124   : > { %6444 = vmatprep.mubr.msk.bf16.mxu0 %vm685_vm3, %v9800_v24  ;;  %v3864_v24 = vshrl.u32 %v8674_v59, 16  ;;  %v3791_v9 = vsel %vm6943_vm4, %v3786_v51, %v8613_v50  ;;  %v8706_v47 = vsel %vm7229_vm7, %v5777_v26, %v4403_v54  ;;  %v8710_v7 = vsel %vm7229_vm7, %v4405_v62, %v4406_v49  ;;  %v5763_v54 = vld [vmem:[%s6899_s9 + $0x84] sm:$0xe]  ;;  %v9841_v31 = vld [vmem:[#allocation27_spill] sm:$0xff] }
 0x125   : > { %v8682_v19 = vpop.f32.mrf.mxu0  ;;  %v8718_v25 = vsel %vm7229_vm7, %v5778_v56, %v4410_v15  ;;  %v8722_v50 = vsel %vm7229_vm7, %v4412_v35, %v4413_v10  ;;  %v3848_v3 = vrot.slane %v3846_v41, 5  ;;  %v3834_v62 = vrot.slane %v3833_v13, 4  ;;  %v8746_v13 = vld [vmem:[%s6899_s9 + $0x98] sm:$0x1] }
 0x126   : > { %9801 = vst [vmem:[#allocation28_spill] sm:$0xff] %v8682_v19  ;;  %v8685_v42 = vpop.f32.mrf.mxu1  ;;  %6371 = vmatmul.mubr.msk.bf16.gmra.mxu1 %vm685_vm3, %v9802_v61  ;;  %v3844_v49 = vrot.slane %v3843_v30, 4  ;;  %v3853_v16 = vrot.slane %v3851_v55, 4  ;;  %v3856_v34 = vrot.slane %v3854_v46, 5  ;;  %v3815_v15 = vsel %vm6943_vm4, %v3810_v40, %v8639_v18  ;;  %v5706_v30 = vld [vmem:[%s6899_s9 + $0x9c] sm:$0xf] }
 0x127   : > { %v8693_v19 = vpop.f32.mrf.mxu0  ;;  %6410 = vmatprep.mubr.msk.bf16.mxu1 %vm685_vm3, %v8377_v27  ;;  %v3801_v27 = vsel %vm6943_vm4, %v3796_v11, %v3800_v45  ;;  %v3825_v45 = vsel %vm6943_vm4, %v3820_v33, %v3824_v14  ;;  %v8734_v51 = vrot.slane %v3860_v60, 5  ;;  %v3866_v11 = vrot.slane %v3864_v24, 4  ;;  %v8777_v24 = vld [vmem:[%s6899_s9 + $0xa0] sm:$0xf] }
 0x128   : > { %v8712_v44 = vpop.f32.mrf.mxu1  ;;  %v9803_v35 = vcombine.low %v8347_v48, %v8351_v38  ;;  %v5792_v10 = vcombine.low %v8570_v43, %v8587_v17  ;;  %v5793_v41 = vcombine.low %v8622_v58, %v8655_v36  ;;  %v5779_v18 = vrot.slane %v5763_v54, 9 }
 0x129   : > { %v8725_v26 = vpop.f32.mrf.mxu0  ;;  %v4417_v14 = vrot.slane %v8608_v4, 5  ;;  %v9804_v48 = vcombine.low %v8430_v6, %v8434_v22  ;;  %v9805_v38 = vsel %vm6943_vm4, %v8589_v29, %v8548_v39  ;;  %v8762_v61 = vcombine.low %v3791_v9, %v3801_v27  ;;  %v5764_v29 = vld [vmem:[%s6899_s9 + $0x90] sm:$0xe]  ;;  %v9812_v4 = vld [vmem:[#allocation5_spill] sm:$0xff] }
 0x12a   : > { %v8727_v8 = vpop.f32.mrf.mxu1  ;;  %v8760_v46 = vcombine.low %v9805_v38, %v3777_v37  ;;  %v8768_v60 = vcombine.low %v3815_v15, %v3825_v45  ;;  %v3839_v6 = vsel %vm6943_vm4, %v3834_v62, %v8663_v2  ;;  %v3849_v22 = vsel %vm6943_vm4, %v3844_v49, %v3848_v3 }
 0x12b   : > { %v6242_v56 = vpop.f32.mrf.mxu0  ;;  %6445 = vmatmul.mubr.msk.bf16.vlgmr.msra.gmra.mxu0 %vm685_vm3, %v9803_v35  ;;  %v3857_v39 = vor.u32 %v3856_v34, %v3853_v16  ;;  %v3867_v9 = vor.u32 %v3866_v11, %v8734_v51  ;;  %v3870_v27 = vshll.u32 %v8746_v13, 16  ;;  %v3875_v54 = vshrl.u32 %v5706_v30, 16 }
 0x12c   : > { %v8749_v55 = vpop.f32.mrf.mxu1  ;;  %6448 = vmatprep.mubr.msk.bf16.mxu0 %vm685_vm3, %v9804_v48  ;;  %v3878_v15 = vshll.u32 %v5706_v30, 16  ;;  %v8788_v3 = vsel %vm7229_vm7, %v5779_v18, %v4417_v14  ;;  %v4419_v62 = vrot.slane %v4417_v14, 4  ;;  %v4420_v49 = vrot.slane %v8660_v32, 5 }
 0x12d   : > { %v1489_v33 = vpop.f32.mrf.mxu0  ;;  %v5780_v16 = vrot.slane %v5764_v29, 9  ;;  %v4424_v34 = vrot.slane %v8674_v59, 5  ;;  %v3884_v11 = vshll.u32 %v8777_v24, 16  ;;  %v3888_v35 = vshrl.u32 %v8777_v24, 16 }
 0x12e   : > { %v6208_v37 = vpop.f32.mrf.mxu1  ;;  %6411 = vmatmul.mubr.msk.bf16.vlgmr.msra.gmra.mxu1 %vm685_vm3, %v8379_v57  ;;  %v8797_v48 = vcombine.low %v3839_v6, %v3849_v22  ;;  %v8799_v18 = vrot.slane %v3857_v39, 4  ;;  %v3868_v32 = vrot.slane %v3867_v9, 4  ;;  %v3872_v38 = vrot.slane %v3870_v27, 5  ;;  %v5709_v22 = vld [vmem:[%s6899_s9 + $0xa8] sm:$0xf] }
 0x12f   : > { %v1073_v45 = vadd.f32 %v6208_v37, %v8275_v5  ;;  %v6243_v2 = vpop.f32.mrf.mxu0  ;;  %6414 = vmatprep.mubr.msk.bf16.mxu1 %vm685_vm3, %v8526_v23  ;;  %v3877_v29 = vrot.slane %v3875_v54, 4  ;;  %v3880_v59 = vrot.slane %v3878_v15, 5  ;;  %v4427_v6 = vrot.slane %v8746_v13, 5  ;;  %v8825_v27 = vld [vmem:[%s6899_s9 + $0xac] sm:$0xf] }
 0x130   : > { %v1064_v57 = vpop.f32.mrf.mxu1  ;;  %v3890_v9 = vrot.slane %v3888_v35, 4  ;;  %v9809_v35 = vld [vmem:[#allocation11_spill] sm:$0xff] }
 0x131   : > { %v8794_v5 = vadd.f32 %v6242_v56, %v1073_v45  ;;  %v1065_v23 = vadd.f32 %v1064_v57, %v8299_v20  ;;  %v1492_v30 = vpop.f32.mrf.mxu0  ;;  %v9806_v45 = vcombine.low %v8467_v63, %v8493_v52  ;;  %v8810_v20 = vsel %vm7229_vm7, %v4419_v62, %v4420_v49  ;;  %v5765_v62 = vld [vmem:[%s6899_s9 + $0x9c] sm:$0xe] }
 0x132   : > { %v6209_v14 = vpop.f32.mrf.mxu1  ;;  %v4426_v63 = vrot.slane %v4424_v34, 4  ;;  %v8822_v52 = vrot.slane %v3884_v11, 5  ;;  %v4431_v49 = vrot.slane %v8777_v24, 5  ;;  %v3908_v24 = vshll.u32 %v8825_v27, 16 }
 0x133   : > { %v8801_v37 = vadd.f32 %v1489_v33, %v1065_v23  ;;  %v1076_v40 = vadd.f32 %v6209_v14, %v8318_v53  ;;  %v6246_v56 = vpop.f32.mrf.mxu0  ;;  %6449 = vmatmul.mubr.msk.bf16.gmra.mxu0 %vm685_vm3, %v9806_v45  ;;  %v9807_v33 = vcombine.low %v8532_v21, %v8536_v1  ;;  %v8820_v53 = vsel %vm7229_vm7, %v5780_v16, %v4424_v34  ;;  %v5708_v1 = vld [vmem:[%s6899_s9 + $0xa4] sm:$0x1]  ;;  %v9808_v16 = vld [vmem:[#allocation14_spill] sm:$0xff] }
 0x134   : > { %v1067_v39 = vpop.f32.mrf.mxu1  ;;  %v3863_v21 = vsel %vm6943_vm4, %v8799_v18, %v8734_v51  ;;  %v3899_v34 = vshrl.u32 %v5709_v22, 16  ;;  %v9810_v51 = vld [vmem:[#allocation19_spill] sm:$0xff]  ;;  %v3912_v18 = vshrl.u32 %v8825_v27, 16 }
 0x135   : > { %6452 = vmatprep.mubr.msk.bf16.mxu0 %vm685_vm3, %v9807_v33  ;;  %v8827_v54 = vadd.f32 %v6243_v2, %v1076_v40  ;;  %v1068_v13 = vadd.f32 %v1067_v39, %v8363_v12  ;;  %v1505_v15 = vpop.f32.mrf.mxu0  ;;  %v3873_v40 = vsel %vm6943_vm4, %v3868_v32, %v3872_v38  ;;  %v3881_v2 = vor.u32 %v3880_v59, %v3877_v29  ;;  %v9811_v59 = vld [vmem:[#allocation15_spill] sm:$0xff] }
 0x136   : > { %v6212_v57 = vpop.f32.mrf.mxu1  ;;  %6415 = vmatmul.mubr.msk.bf16.gmra.mxu1 %vm685_vm3, %v9808_v16  ;;  %v3902_v12 = vshll.u32 %v5709_v22, 16  ;;  %v8850_v39 = vsel %vm7229_vm7, %v4426_v63, %v4427_v6  ;;  %v3891_v32 = vor.u32 %v3890_v9, %v8822_v52  ;;  %v3894_v38 = vshll.u32 %v5708_v1, 16 }
 0x137   : > { %v8841_v11 = vadd.f32 %v1492_v30, %v1068_v13  ;;  %v1089_v23 = vadd.f32 %v6212_v57, %v9809_v35  ;;  %v6247_v14 = vpop.f32.mrf.mxu0  ;;  %6418 = vmatprep.mubr.msk.bf16.mxu1 %vm685_vm3, %v9810_v51  ;;  %v5781_v30 = vrot.slane %v5765_v62, 9  ;;  %v4433_v13 = vrot.slane %v4431_v49, 4 }
 0x138   : > { %v1080_v45 = vpop.f32.mrf.mxu1  ;;  %v4434_v57 = vrot.slane %v5708_v1, 5  ;;  %v8858_v51 = vrot.slane %v3881_v2, 4  ;;  %v3901_v6 = vrot.slane %v3899_v34, 4  ;;  %v3904_v63 = vrot.slane %v3902_v12, 5  ;;  %v8868_v1 = vld [vmem:[%s6899_s9 + $0xb0] sm:$0x1] }
 0x139   : > { %v8853_v29 = vadd.f32 %v6246_v56, %v1089_v23  ;;  %v1081_v22 = vadd.f32 %v1080_v45, %v9811_v59  ;;  %v1508_v33 = vpop.f32.mrf.mxu0  ;;  %v8870_v23 = vrot.slane %v3908_v24, 5  ;;  %v3914_v2 = vrot.slane %v3912_v18, 4  ;;  %v9813_v12 = vld [vmem:[#allocation17_spill] sm:$0xff] }
 0x13a   : > { %v6213_v16 = vpop.f32.mrf.mxu1  ;;  %v8880_v43 = vrot.slane %v3891_v32, 4  ;;  %v8882_v17 = vrot.slane %v3894_v38, 5  ;;  %v8890_v58 = vsel %vm7229_vm7, %v5781_v30, %v4431_v49  ;;  %v8894_v36 = vsel %vm7229_vm7, %v4433_v13, %v4434_v57  ;;  %v8906_v30 = vld [vmem:[%s6899_s9 + $0xb8] sm:$0xf] }
 0x13b   : > { %v8860_v9 = vadd.f32 %v1505_v15, %v1081_v22  ;;  %v1092_v62 = vadd.f32 %v6213_v16, %v9812_v4  ;;  %v6250_v56 = vpop.f32.mrf.mxu0  ;;  %6453 = vmatmul.mubr.msk.bf16.gmra.mxu0 %vm685_vm3, %v5792_v10  ;;  %v8876_v15 = vcombine.low %v3863_v21, %v3873_v40  ;;  %v5766_v10 = vld [vmem:[%s6899_s9 + $0xa8] sm:$0xe]  ;;  %v3905_v32 = vor.u32 %v3904_v63, %v3901_v6  ;;  %v9815_v22 = vld [vmem:[#allocation12_spill] sm:$0xff] }
 0x13c   : > { %v1083_v45 = vpop.f32.mrf.mxu1  ;;  %6456 = vmatprep.mubr.msk.bf16.mxu0 %vm685_vm3, %v5793_v41  ;;  %v5712_v41 = vld [vmem:[%s6899_s9 + $0xb4] sm:$0xf]  ;;  %v9814_v40 = vld [vmem:[#allocation22_spill] sm:$0xff]  ;;  %v3918_v38 = vshll.u32 %v8868_v1, 16  ;;  %v4438_v49 = vrot.slane %v8825_v27, 5  ;;  %v3915_v16 = vor.u32 %v3914_v2, %v8870_v23  ;;  %v3897_v27 = vsel %vm6943_vm4, %v8880_v43, %v8882_v17 }
 0x13d   : > { %v8885_v34 = vadd.f32 %v6247_v14, %v1092_v62  ;;  %v1084_v24 = vadd.f32 %v1083_v45, %v9813_v12  ;;  %v1521_v18 = vpop.f32.mrf.mxu0  ;;  %v5782_v62 = vrot.slane %v5766_v10, 9  ;;  %v3923_v6 = vshrl.u32 %v5712_v41, 16 }
 0x13e   : > { %v6216_v21 = vpop.f32.mrf.mxu1  ;;  %6419 = vmatmul.mubr.msk.bf16.gmra.mxu1 %vm685_vm3, %v9814_v40  ;;  %v3926_v63 = vshll.u32 %v5712_v41, 16  ;;  %v3932_v2 = vshll.u32 %v8906_v30, 16  ;;  %v3936_v10 = vshrl.u32 %v8906_v30, 16  ;;  %v5715_v40 = vld [vmem:[%s6899_s9 + $0xc0] sm:$0xf]  ;;  %v3906_v4 = vrot.slane %v3905_v32, 4 }
 0x13f   : > { %v8908_v59 = vadd.f32 %v1508_v33, %v1084_v24  ;;  %v1105_v13 = vadd.f32 %v6216_v21, %v9815_v22  ;;  %v6251_v57 = vpop.f32.mrf.mxu0  ;;  %6422 = vmatprep.mubr.msk.bf16.mxu1 %vm685_vm3, %v8760_v46  ;;  %v9817_v24 = vld [vmem:[#allocation21_spill] sm:$0xff]  ;;  %v3920_v43 = vrot.slane %v3918_v38, 5  ;;  %v4440_v17 = vrot.slane %v4438_v49, 4 }
 0x140   : > { %v1096_v45 = vpop.f32.mrf.mxu1  ;;  %v4441_v33 = vrot.slane %v8868_v1, 5  ;;  %v8936_v14 = vsel %vm7229_vm7, %v5782_v62, %v4438_v49  ;;  %v8939_v32 = vld [vmem:[%s6899_s9 + $0xc4] sm:$0xf]  ;;  %v9821_v1 = vcombine.low %v8718_v25, %v8722_v50  ;;  %v8951_v62 = vrot.slane %v3932_v2, 5 }
 0x141   : > { %v8920_v12 = vadd.f32 %v6250_v56, %v1105_v13  ;;  %v1097_v21 = vadd.f32 %v1096_v45, %v9817_v24  ;;  %v1524_v46 = vpop.f32.mrf.mxu0  ;;  %v9819_v56 = vld [vmem:[#allocation24_spill] sm:$0xff]  ;;  %v9820_v45 = vcombine.low %v8706_v47, %v8710_v7  ;;  %v3916_v24 = vrot.slane %v3915_v16, 4  ;;  %v9822_v16 = vld [vmem:[#allocation26_spill] sm:$0xff] }
 0x142   : > { %v6217_v22 = vpop.f32.mrf.mxu1  ;;  %v3947_v47 = vshrl.u32 %v5715_v40, 16  ;;  %v3950_v7 = vshll.u32 %v5715_v40, 16  ;;  %v3911_v25 = vsel %vm6943_vm4, %v3906_v4, %v8870_v23  ;;  %v8960_v50 = vsel %vm7229_vm7, %v4440_v17, %v4441_v33  ;;  %v5767_v40 = vld [vmem:[%s6899_s9 + $0xb4] sm:$0xe] }
 0x143   : > { %9816 = vst [vmem:[#allocation14_spill] sm:$0xff] %v8920_v12  ;;  %v8927_v35 = vadd.f32 %v1521_v18, %v1097_v21  ;;  %v1108_v41 = vadd.f32 %v6217_v22, %v9819_v56  ;;  %v6254_v13 = vpop.f32.mrf.mxu0  ;;  %6457 = vmatmul.mubr.msk.bf16.gmra.mxu0 %vm685_vm3, %v9820_v45  ;;  %v8946_v18 = vld [vmem:[%s6899_s9 + $0xbc] sm:$0x1]  ;;  %v3925_v21 = vrot.slane %v3923_v6, 4  ;;  %v3928_v22 = vrot.slane %v3926_v63, 5 }
 0x144   : > { %v1099_v38 = vpop.f32.mrf.mxu1  ;;  %6460 = vmatprep.mubr.msk.bf16.mxu0 %vm685_vm3, %v9821_v1  ;;  %v3960_v6 = vshrl.u32 %v8939_v32, 16  ;;  %v3942_v23 = vshll.u32 %v8946_v18, 16  ;;  %v4445_v17 = vrot.slane %v8906_v30, 5  ;;  %v9823_v1 = vld [vmem:[#allocation28_spill] sm:$0xff] }
 0x145   : > { %9818 = vst [vmem:[#allocation11_spill] sm:$0xff] %v8927_v35  ;;  %v8948_v56 = vadd.f32 %v6251_v57, %v1108_v41  ;;  %v1100_v45 = vadd.f32 %v1099_v38, %v9822_v16  ;;  %v1537_v49 = vpop.f32.mrf.mxu0  ;;  %v3938_v35 = vrot.slane %v3936_v10, 4  ;;  %v3956_v57 = vshll.u32 %v8939_v32, 16 }
 0x146   : > { %v6220_v12 = vpop.f32.mrf.mxu1  ;;  %6423 = vmatmul.mubr.msk.bf16.gmra.mxu1 %vm685_vm3, %v8762_v61  ;;  %v3921_v61 = vsel %vm6943_vm4, %v3916_v24, %v3920_v43  ;;  %v3929_v33 = vor.u32 %v3928_v22, %v3925_v21  ;;  %v3949_v41 = vrot.slane %v3947_v47, 4  ;;  %v3952_v38 = vrot.slane %v3950_v7, 5 }
 0x147   : > { %v8964_v63 = vadd.f32 %v1524_v46, %v1100_v45  ;;  %v1121_v2 = vadd.f32 %v6220_v12, %v8670_v28  ;;  %v6255_v10 = vpop.f32.mrf.mxu0  ;;  %6426 = vmatprep.mubr.msk.bf16.mxu1 %vm685_vm3, %v8768_v60  ;;  %v9824_v60 = vsel %vm6943_vm4, %v8858_v51, %v8822_v52  ;;  %v3939_v24 = vor.u32 %v3938_v35, %v8951_v62 }
 0x148   : > { %v1112_v4 = vpop.f32.mrf.mxu1  ;;  %v8982_v43 = vcombine.low %v9824_v60, %v3897_v27  ;;  %v8985_v30 = vcombine.low %v3911_v25, %v3921_v61  ;;  %v8989_v22 = vrot.slane %v3956_v57, 5  ;;  %v3962_v47 = vrot.slane %v3960_v6, 4  ;;  %v5717_v27 = vld [vmem:[%s6899_s9 + $0xc8] sm:$0x1] }
 0x149   : > { %v8974_v46 = vadd.f32 %v6254_v13, %v1121_v2  ;;  %v1113_v28 = vadd.f32 %v1112_v4, %v9823_v1  ;;  %v1540_v12 = vpop.f32.mrf.mxu0  ;;  %v5799_v13 = vcombine.low %v8936_v14, %v8960_v50  ;;  %v9825_v52 = vcombine.low %v8788_v3, %v8810_v20  ;;  %v5718_v14 = vld [vmem:[%s6899_s9 + $0xcc] sm:$0xf]  ;;  %v9010_v20 = vld [vmem:[%s6899_s9 + $0xd0] sm:$0xf]  ;;  %v5768_v4 = vld [vmem:[%s6899_s9 + $0xc0] sm:$0xe] }
 0x14a   : > { %v6221_v21 = vpop.f32.mrf.mxu1  ;;  %v8998_v35 = vrot.slane %v3942_v23, 5  ;;  %v5783_v51 = vrot.slane %v5767_v40, 9  ;;  %v9826_v50 = vcombine.low %v8820_v53, %v8850_v39  ;;  %v4448_v57 = vrot.slane %v8946_v18, 5 }
 0x14b   : > { %v8991_v7 = vadd.f32 %v1537_v49, %v1113_v28  ;;  %v1124_v16 = vadd.f32 %v6221_v21, %v8693_v19  ;;  %v6258_v45 = vpop.f32.mrf.mxu0  ;;  %6461 = vmatmul.mubr.msk.bf16.gmra.mxu0 %vm685_vm3, %v9825_v52  ;;  %v9006_v49 = vrot.slane %v3929_v33, 4  ;;  %v4447_v19 = vrot.slane %v4445_v17, 4 }
 0x14c   : > { %v1115_v25 = vpop.f32.mrf.mxu1  ;;  %6464 = vmatprep.mubr.msk.bf16.mxu0 %vm685_vm3, %v9826_v50  ;;  %v3953_v3 = vor.u32 %v3952_v38, %v3949_v41  ;;  %v9015_v23 = vrot.slane %v3939_v24, 4  ;;  %v4452_v53 = vrot.slane %v8939_v32, 5  ;;  %v3963_v33 = vor.u32 %v3962_v47, %v8989_v22 }
 0x14d   : > { %v9012_v6 = vadd.f32 %v6255_v10, %v1124_v16  ;;  %v1116_v2 = vadd.f32 %v1115_v25, %v8725_v26  ;;  %v1553_v61 = vpop.f32.mrf.mxu0  ;;  %v3966_v18 = vshll.u32 %v5717_v27, 16  ;;  %v3971_v40 = vshrl.u32 %v5718_v14, 16  ;;  %v9829_v10 = vld [vmem:[#allocation7_spill] sm:$0xff]  ;;  %v9830_v16 = vld [vmem:[#allocation6_spill] sm:$0xff] }
 0x14e   : > { %v6224_v39 = vpop.f32.mrf.mxu1  ;;  %6427 = vmatmul.mubr.msk.bf16.gmra.mxu1 %vm685_vm3, %v8797_v48  ;;  %v3974_v41 = vshll.u32 %v5718_v14, 16  ;;  %v3980_v28 = vshll.u32 %v9010_v20, 16  ;;  %v3984_v32 = vshrl.u32 %v9010_v20, 16  ;;  %v4446_v48 = vsel %vm7229_vm7, %v5783_v51, %v4445_v17  ;;  %v9831_v17 = vld [vmem:[#allocation9_spill] sm:$0xff] }
 0x14f   : > { %9827 = vst [vmem:[#allocation19_spill] sm:$0xff] %v9012_v6  ;;  %v9022_v38 = vadd.f32 %v1540_v12, %v1116_v2  ;;  %v1137_v1 = vadd.f32 %v6224_v39, %v9829_v10  ;;  %v6259_v26 = vpop.f32.mrf.mxu0  ;;  %6430 = vmatprep.mubr.msk.bf16.mxu1 %vm685_vm3, %v8876_v15  ;;  %v4449_v24 = vsel %vm7229_vm7, %v4447_v19, %v4448_v57  ;;  %v3954_v21 = vrot.slane %v3953_v3, 4 }
 0x150   : > { %v1128_v60 = vpop.f32.mrf.mxu1  ;;  %v5784_v12 = vrot.slane %v5768_v4, 9  ;;  %v4454_v25 = vrot.slane %v4452_v53, 4  ;;  %v4455_v15 = vrot.slane %v5717_v27, 5  ;;  %v3964_v2 = vrot.slane %v3963_v33, 4  ;;  %v5720_v33 = vld [vmem:[%s6899_s9 + $0xd4] sm:$0x1] }
 0x151   : > { %9828 = vst [vmem:[#allocation15_spill] sm:$0xff] %v9022_v38  ;;  %v9033_v47 = vadd.f32 %v6258_v45, %v1137_v1  ;;  %v1129_v52 = vadd.f32 %v1128_v60, %v9830_v16  ;;  %v1556_v14 = vpop.f32.mrf.mxu0  ;;  %v3968_v39 = vrot.slane %v3966_v18, 5  ;;  %v3973_v10 = vrot.slane %v3971_v40, 4  ;;  %v9833_v18 = vld [vmem:[#allocation8_spill] sm:$0xff] }
 0x152   : > { %v6225_v50 = vpop.f32.mrf.mxu1  ;;  %v3976_v38 = vrot.slane %v3974_v41, 5  ;;  %v9832_v45 = vcombine.low %v8890_v58, %v8894_v36  ;;  %v9043_v57 = vrot.slane %v3980_v28, 5  ;;  %v3986_v27 = vrot.slane %v3984_v32, 4 }
 0x153   : > { %v9036_v6 = vadd.f32 %v1553_v61, %v1129_v52  ;;  %v1140_v51 = vadd.f32 %v6225_v50, %v9831_v17  ;;  %v6262_v19 = vpop.f32.mrf.mxu0  ;;  %v3935_v61 = vsel %vm6943_vm4, %v9006_v49, %v8951_v62  ;;  %v3945_v4 = vsel %vm6943_vm4, %v9015_v23, %v8998_v35  ;;  %v5769_v62 = vld [vmem:[%s6899_s9 + $0xcc] sm:$0xe]  ;;  %s9493_s9 = scalar_lea.vmem [#allocation2], %s9473_s8 }
 0x154   : > { %6465 = vmatmul.mubr.msk.bf16.gmra.mxu0 %vm685_vm3, %v9832_v45  ;;  %v1131_v3 = vpop.f32.mrf.mxu1  ;;  %v4459_v58 = vrot.slane %v9010_v20, 5  ;;  %v4456_v1 = vsel %vm7229_vm7, %v4454_v25, %v4455_v15  ;;  %v5800_v35 = vcombine.low %v4446_v48, %v4449_v24  ;;  %v3959_v20 = vsel %vm6943_vm4, %v3954_v21, %v8989_v22  ;;  %v9835_v25 = vld [vmem:[#allocation13_spill] sm:$0xff]  ;;  %s5196_s11 = sshll.u32 %s9493_s9, 4  ;;  %s9599_s11 = int_to_ptr.vmem [resolvable:$true] %s5196_s11 }
 0x155   : > { %6468 = vmatprep.mubr.msk.bf16.mxu0 %vm685_vm3, %v5799_v13  ;;  %v9056_v36 = vadd.f32 %v6259_v26, %v1140_v51  ;;  %v1132_v40 = vadd.f32 %v1131_v3, %v9833_v18  ;;  %v1569_v41 = vpop.f32.mrf.mxu0  ;;  %v4453_v13 = vsel %vm7229_vm7, %v5784_v12, %v4452_v53  ;;  %v3969_v23 = vsel %vm6943_vm4, %v3964_v2, %v3968_v39  ;;  %v9834_v53 = vld [vmem:[#allocation10_spill] sm:$0xff]  ;;  %s6724_s23 = scalar_lea.vmem %s9599_s11, 2048  ;;  %p6731_p1 = scmp.lt.s32.totalorder %s9599_s11, %s6729_s27 }
 0x156   : > { %v6228_v49 = vpop.f32.mrf.mxu1  ;;  %6431 = vmatmul.mubr.msk.bf16.gmra.mxu1 %vm685_vm3, %v8982_v43  ;;  %v3977_v26 = vor.u32 %v3976_v38, %v3973_v10  ;;  %v3987_v12 = vor.u32 %v3986_v27, %v9043_v57  ;;  %v3990_v43 = vshll.u32 %v5720_v33, 16  ;;  %v5801_v24 = vcombine.low %v4453_v13, %v4456_v1  ;;  %p6725_p12 = scmp.ne.s32.totalorder %s9599_s11, %s6724_s23  ;;  %p6732_p2 = scmp.lt.s32.totalorder %s6730_s28, %s6724_s23 }
 0x157   : > { %v9071_v28 = vadd.f32 %v1556_v14, %v1132_v40  ;;  %v1153_v32 = vadd.f32 %v6228_v49, %v9834_v53  ;;  %v6263_v60 = vpop.f32.mrf.mxu0  ;;  %6434 = vmatprep.mubr.msk.bf16.mxu1 %vm685_vm3, %v8985_v30  ;;  %v5785_v16 = vrot.slane %v5769_v62, 9  ;;  %v4461_v52 = vrot.slane %v4459_v58, 4  ;;  %v9836_v30 = vld [vmem:[#allocation16_spill] sm:$0xff] }
 0x158   : > { %v1144_v48 = vpop.f32.mrf.mxu1  ;;  %v4462_v22 = vrot.slane %v5720_v33, 5  ;;  %v5735_v50 = vcombine.low %v3935_v61, %v3945_v4  ;;  %v5736_v2 = vcombine.low %v3959_v20, %v3969_v23  ;;  %v3978_v39 = vrot.slane %v3977_v26, 4  ;;  %v9837_v33 = vld [vmem:[#allocation18_spill] sm:$0xff]  ;;  %v9838_v62 = vld [vmem:[#allocation20_spill] sm:$0xff]  ;;  %v9839_v26 = vld [vmem:[#allocation23_spill] sm:$0xff]  ;;  %p6726_p13 = pnand %p6725_p12, %p6865_p4  ;;  %p6733_p3 = por %p6732_p2, %p6731_p1 }
 0x159   : > { %v9077_v21 = vadd.f32 %v6262_v19, %v1153_v32  ;;  %v1145_v38 = vadd.f32 %v1144_v48, %v9835_v25  ;;  %v1572_v14 = vpop.f32.mrf.mxu0  ;;  %v3988_v45 = vrot.slane %v3987_v12, 4  ;;  %v3992_v27 = vrot.slane %v3990_v43, 5  ;;  %v9840_v43 = vld [vmem:[#allocation25_spill] sm:$0xff] }
 0x15a   : > { %v6229_v15 = vpop.f32.mrf.mxu1  ;;  %v4460_v19 = vsel %vm7229_vm7, %v5785_v16, %v4459_v58  ;;  %v4463_v61 = vsel %vm7229_vm7, %v4461_v52, %v4462_v22  ;;  %v3983_v13 = vsel %vm6943_vm4, %v3978_v39, %v9043_v57  ;;  %p6727_p0 = pneg %p6726_p13 }
 0x15b   : > { %v9080_v10 = vadd.f32 %v1569_v41, %v1145_v38  ;;  %v1156_v17 = vadd.f32 %v6229_v15, %v9836_v30  ;;  %v6266_v51 = vpop.f32.mrf.mxu0  ;;  %v3993_v0 = vsel %vm6943_vm4, %v3988_v45, %v3992_v27 }
 0x15c   : > { %6469 = vmatmul.mubr.msk.bf16.gmra.mxu0 %vm685_vm3, %v5800_v35  ;;  %v1147_v3 = vpop.f32.mrf.mxu1  ;;  %v5802_v35 = vcombine.low %v4460_v19, %v4463_v61  ;;  %v5737_v12 = vcombine.low %v3983_v13, %v3993_v0  ;;  %p6734_p5 = pnand %p6733_p3, %p6727_p0 }
 0x15d   : > { %6472 = vmatprep.mubr.msk.bf16.mxu0 %vm685_vm3, %v5801_v24  ;;  %v9089_v4 = vadd.f32 %v6263_v60, %v1156_v17  ;;  %v1148_v18 = vadd.f32 %v1147_v3, %v9837_v33  ;;  %v1585_v40 = vpop.f32.mrf.mxu0 }
 0x15e   : > { %v6232_v41 = vpop.f32.mrf.mxu1  ;;  %6435 = vmatmul.mubr.msk.bf16.gmra.mxu1 %vm685_vm3, %v5735_v50 }
 0x15f   : > { %v9096_v1 = vadd.f32 %v1572_v14, %v1148_v18  ;;  %v1169_v49 = vadd.f32 %v6232_v41, %v9838_v62  ;;  %v6267_v58 = vpop.f32.mrf.mxu0  ;;  %6438 = vmatprep.mubr.msk.bf16.mxu1 %vm685_vm3, %v5736_v2 }
 0x160   : > { %v1160_v20 = vpop.f32.mrf.mxu1 }
 0x161   : > { %v9102_v23 = vadd.f32 %v6266_v51, %v1169_v49  ;;  %v1161_v53 = vadd.f32 %v1160_v20, %v9839_v26  ;;  %v1588_v32 = vpop.f32.mrf.mxu0 }
 0x162   : > { %v6233_v60 = vpop.f32.mrf.mxu1 }
 0x163   : > { %v9105_v57 = vadd.f32 %v1585_v40, %v1161_v53  ;;  %v1172_v48 = vadd.f32 %v6233_v60, %v9840_v43  ;;  %v6270_v24 = vpop.f32.mrf.mxu0 }
 0x164   : > { %6473 = vmatmul.mubr.msk.bf16.gmra.mxu0 %vm685_vm3, %v5802_v35  ;;  %v1163_v16 = vpop.f32.mrf.mxu1 }
 0x165   : > { %v9109_v52 = vadd.f32 %v6267_v58, %v1172_v48  ;;  %v1164_v22 = vadd.f32 %v1163_v16, %v9841_v31  ;;  %v1601_v25 = vpop.f32.mrf.mxu0 }
 0x166   : > { %v6236_v38 = vpop.f32.mrf.mxu1  ;;  %6439 = vmatmul.mubr.msk.bf16.gmra.mxu1 %vm685_vm3, %v5737_v12 }
 0x167   : > { %v9113_v14 = vadd.f32 %v1588_v32, %v1164_v22  ;;  %v1185_v15 = vadd.f32 %v6236_v38, %v8685_v42  ;;  %v6271_v50 = vpop.f32.mrf.mxu0 }
 0x168   : > { %v1176_v2 = vpop.f32.mrf.mxu1 }
 0x169   : > { %v9116_v39 = vadd.f32 %v6270_v24, %v1185_v15  ;;  %v1177_v30 = vadd.f32 %v1176_v2, %v8712_v44  ;;  %v1604_v17 = vpop.f32.mrf.mxu0 }
 0x16a   : > { %v6237_v51 = vpop.f32.mrf.mxu1 }
 0x16b   : > { %v9119_v45 = vadd.f32 %v1601_v25, %v1177_v30  ;;  %v1188_v27 = vadd.f32 %v6237_v51, %v8727_v8  ;;  %v6310_v3 = vpop.f32.mrf.mxu0  ;;  %v9842_v30 = vld [vmem:[#allocation14_spill] sm:$0xff] }
 0x16c   : > { %v1179_v19 = vpop.f32.mrf.mxu1 }
 0x16d   : > { %v9122_v61 = vadd.f32 %v6271_v50, %v1188_v27  ;;  %v1180_v33 = vadd.f32 %v1179_v19, %v8749_v55  ;;  %v2574_v18 = vpop.f32.mrf.mxu0 }
 0x16e   : > { %v6276_v42 = vpop.f32.mrf.mxu1 }
 0x16f   : > { %v9125_v40 = vadd.f32 %v1604_v17, %v1180_v33  ;;  %v1977_v41 = vadd.f32 %v6276_v42, %v8794_v5  ;;  %v6311_v13 = vpop.f32.mrf.mxu0 }
 0x170   : > { %v1848_v44 = vpop.f32.mrf.mxu1 }
 0x171   : > { %v9128_v62 = vadd.f32 %v6310_v3, %v1977_v41  ;;  %v1975_v49 = vadd.f32 %v1848_v44, %v8801_v37  ;;  %v2577_v58 = vpop.f32.mrf.mxu0  ;;  %v9843_v3 = vld [vmem:[#allocation11_spill] sm:$0xff] }
 0x172   : > { %v6277_v8 = vpop.f32.mrf.mxu1 }
 0x173   : > { %v9131_v0 = vadd.f32 %v2574_v18, %v1975_v49  ;;  %v1978_v35 = vadd.f32 %v6277_v8, %v8827_v54  ;;  %v6314_v20 = vpop.f32.mrf.mxu0 }
 0x174   : > { %v1851_v55 = vpop.f32.mrf.mxu1 }
 0x175   : > { %v9134_v26 = vadd.f32 %v6311_v13, %v1978_v35  ;;  %v1976_v53 = vadd.f32 %v1851_v55, %v8841_v11  ;;  %v2590_v32 = vpop.f32.mrf.mxu0 }
 0x176   : > { %v6280_v5 = vpop.f32.mrf.mxu1 }
 0x177   : > { %v9137_v60 = vadd.f32 %v2577_v58, %v1976_v53  ;;  %v1981_v12 = vadd.f32 %v6280_v5, %v8853_v29  ;;  %v6315_v43 = vpop.f32.mrf.mxu0 }
 0x178   : > { %v1864_v37 = vpop.f32.mrf.mxu1 }
 0x179   : > { %v9140_v48 = vadd.f32 %v6314_v20, %v1981_v12  ;;  %v1979_v24 = vadd.f32 %v1864_v37, %v8860_v9  ;;  %v2593_v16 = vpop.f32.mrf.mxu0 }
 0x17a   : > { %v6281_v54 = vpop.f32.mrf.mxu1 }
 0x17b   : > { %v9143_v31 = vadd.f32 %v2590_v32, %v1979_v24  ;;  %v1982_v22 = vadd.f32 %v6281_v54, %v8885_v34  ;;  %v6318_v25 = vpop.f32.mrf.mxu0  ;;  %v9845_v54 = vld [vmem:[#allocation15_spill] sm:$0xff] }
 0x17c   : > { %v1867_v11 = vpop.f32.mrf.mxu1 }
 0x17d   : > { %v9146_v38 = vadd.f32 %v6315_v43, %v1982_v22  ;;  %v1980_v15 = vadd.f32 %v1867_v11, %v8908_v59  ;;  %v2606_v50 = vpop.f32.mrf.mxu0  ;;  %v9844_v43 = vld [vmem:[#allocation19_spill] sm:$0xff] }
 0x17e   : > { %v6284_v29 = vpop.f32.mrf.mxu1 }
 0x17f   : > { %v9149_v2 = vadd.f32 %v2593_v16, %v1980_v15  ;;  %v1985_v17 = vadd.f32 %v6284_v29, %v9842_v30  ;;  %v6319_v51 = vpop.f32.mrf.mxu0 }
 0x180   : > { %v1880_v9 = vpop.f32.mrf.mxu1 }
 0x181   : > { %v9152_v27 = vadd.f32 %v6318_v25, %v1985_v17  ;;  %v1983_v19 = vadd.f32 %v1880_v9, %v9843_v3  ;;  %v2609_v33 = vpop.f32.mrf.mxu0 }
 0x182   : > { %v6285_v34 = vpop.f32.mrf.mxu1 }
 0x183   : > { %v9155_v18 = vadd.f32 %v2606_v50, %v1983_v19  ;;  %v1986_v42 = vadd.f32 %v6285_v34, %v8948_v56  ;;  %v6322_v41 = vpop.f32.mrf.mxu0 }
 0x184   : > { %v1883_v59 = vpop.f32.mrf.mxu1 }
 0x185   : > { %v9158_v13 = vadd.f32 %v6319_v51, %v1986_v42  ;;  %v1984_v44 = vadd.f32 %v1883_v59, %v8964_v63  ;;  %v2622_v49 = vpop.f32.mrf.mxu0 }
 0x186   : > { %v6288_v58 = vpop.f32.mrf.mxu1 }
 0x187   : > { %v9161_v8 = vadd.f32 %v2609_v33, %v1984_v44  ;;  %v1989_v35 = vadd.f32 %v6288_v58, %v8974_v46  ;;  %v6323_v20 = vpop.f32.mrf.mxu0 }
 0x188   : > { %v1896_v55 = vpop.f32.mrf.mxu1 }
 0x189   : > { %v9164_v53 = vadd.f32 %v6322_v41, %v1989_v35  ;;  %v1987_v32 = vadd.f32 %v1896_v55, %v8991_v7  ;;  %v2625_v5 = vpop.f32.mrf.mxu0 }
 0x18a   : > { %v6289_v56 = vpop.f32.mrf.mxu1 }
 0x18b   : > { %v9167_v12 = vadd.f32 %v2622_v49, %v1987_v32  ;;  %v1990_v37 = vadd.f32 %v6289_v56, %v9844_v43  ;;  %v6326_v24 = vpop.f32.mrf.mxu0 }
 0x18c   : > { %v1899_v63 = vpop.f32.mrf.mxu1 }
 0x18d   : > { %v9170_v16 = vadd.f32 %v6323_v20, %v1990_v37  ;;  %v1988_v22 = vadd.f32 %v1899_v63, %v9845_v54  ;;  %v2638_v25 = vpop.f32.mrf.mxu0 }
 0x18e   : > { %v6292_v46 = vpop.f32.mrf.mxu1 }
 0x18f   : > { %v9173_v11 = vadd.f32 %v2625_v5, %v1988_v22  ;;  %v1993_v15 = vadd.f32 %v6292_v46, %v9033_v47  ;;  %v6327_v50 = vpop.f32.mrf.mxu0 }
 0x190   : > { %v1912_v7 = vpop.f32.mrf.mxu1 }
 0x191   : > { %v9176_v29 = vadd.f32 %v6326_v24, %v1993_v15  ;;  %v1991_v30 = vadd.f32 %v1912_v7, %v9036_v6  ;;  %v2641_v17 = vpop.f32.mrf.mxu0 }
 0x192   : > { %v6293_v51 = vpop.f32.mrf.mxu1 }
 0x193   : > { %v9179_v9 = vadd.f32 %v2638_v25, %v1991_v30  ;;  %v1994_v3 = vadd.f32 %v6293_v51, %v9056_v36  ;;  %v6330_v19 = vpop.f32.mrf.mxu0 }
 0x194   : > { %v1915_v33 = vpop.f32.mrf.mxu1 }
 0x195   : > { %v9182_v34 = vadd.f32 %v6327_v50, %v1994_v3  ;;  %v1992_v42 = vadd.f32 %v1915_v33, %v9071_v28  ;;  %v2654_v41 = vpop.f32.mrf.mxu0 }
 0x196   : > { %v6296_v47 = vpop.f32.mrf.mxu1 }
 0x197   : > { %v9185_v59 = vadd.f32 %v2641_v17, %v1992_v42  ;;  %v1997_v44 = vadd.f32 %v6296_v47, %v9077_v21  ;;  %v6331_v49 = vpop.f32.mrf.mxu0 }
 0x198   : > { %v1928_v6 = vpop.f32.mrf.mxu1 }
 0x199   : > { %v9188_v58 = vadd.f32 %v6330_v19, %v1997_v44  ;;  %v1995_v35 = vadd.f32 %v1928_v6, %v9080_v10  ;;  %v2657_v20 = vpop.f32.mrf.mxu0 }
 0x19a   : > { %v6297_v36 = vpop.f32.mrf.mxu1 }
 0x19b   : > { %v9191_v55 = vadd.f32 %v2654_v41, %v1995_v35  ;;  %v1998_v32 = vadd.f32 %v6297_v36, %v9089_v4  ;;  %v6334_v5 = vpop.f32.mrf.mxu0 }
 0x19c   : > { %v1931_v28 = vpop.f32.mrf.mxu1 }
 0x19d   : > { %v9194_v56 = vadd.f32 %v6331_v49, %v1998_v32  ;;  %v1996_v43 = vadd.f32 %v1931_v28, %v9096_v1  ;;  %v2670_v37 = vpop.f32.mrf.mxu0 }
 0x19e   : > { %v6300_v21 = vpop.f32.mrf.mxu1 }
 0x19f   : > { %v9197_v24 = vadd.f32 %v2657_v20, %v1996_v43  ;;  %v2001_v63 = vadd.f32 %v6300_v21, %v9102_v23  ;;  %v6335_v54 = vpop.f32.mrf.mxu0 }
 0x1a0   : > { %v1944_v10 = vpop.f32.mrf.mxu1 }
 0x1a1   : > { %9846 = vst [vmem:[#allocation5_spill] sm:$0xff] %v9197_v24  ;;  %v9200_v22 = vadd.f32 %v6334_v5, %v2001_v63  ;;  %v1999_v25 = vadd.f32 %v1944_v10, %v9105_v57  ;;  %v2673_v46 = vpop.f32.mrf.mxu0 }
 0x1a2   : > { %v6301_v4 = vpop.f32.mrf.mxu1 }
 0x1a3   : > { %v9203_v15 = vadd.f32 %v2670_v37, %v1999_v25  ;;  %v2002_v50 = vadd.f32 %v6301_v4, %v9109_v52  ;;  %v6338_v7 = vpop.f32.mrf.mxu0 }
 0x1a4   : > { %v1947_v1 = vpop.f32.mrf.mxu1 }
 0x1a5   : > { %v9206_v30 = vadd.f32 %v6335_v54, %v2002_v50  ;;  %v2000_v17 = vadd.f32 %v1947_v1, %v9113_v14  ;;  %v2686_v51 = vpop.f32.mrf.mxu0 }
 0x1a6   : > { %v6304_v23 = vpop.f32.mrf.mxu1 }
 0x1a7   : > { %9847 = vst [vmem:[#allocation17_spill] sm:$0xff] %v9206_v30  ;;  %v9209_v3 = vadd.f32 %v2673_v46, %v2000_v17  ;;  %v2005_v19 = vadd.f32 %v6304_v23, %v9116_v39  ;;  %v6339_v33 = vpop.f32.mrf.mxu0 }
 0x1a8   : > { %v1960_v57 = vpop.f32.mrf.mxu1 }
 0x1a9   : > { %v9212_v42 = vadd.f32 %v6338_v7, %v2005_v19  ;;  %v2003_v41 = vadd.f32 %v1960_v57, %v9119_v45  ;;  %v2689_v47 = vpop.f32.mrf.mxu0 }
 0x1aa   : > { %v6305_v52 = vpop.f32.mrf.mxu1 }
 0x1ab   : > { %v9215_v44 = vadd.f32 %v2686_v51, %v2003_v41  ;;  %v2006_v49 = vadd.f32 %v6305_v52, %v9122_v61  ;;  %v6378_v6 = vpop.f32.mrf.mxu0 }
 0x1ac   : > { %v1963_v14 = vpop.f32.mrf.mxu1 }
 0x1ad   : > { %v9218_v35 = vadd.f32 %v6339_v33, %v2006_v49  ;;  %v2004_v20 = vadd.f32 %v1963_v14, %v9125_v40  ;;  %v3403_v36 = vpop.f32.mrf.mxu0 }
 0x1ae   : > { %v6344_v39 = vpop.f32.mrf.mxu1 }
 0x1af   : > { %v9221_v32 = vadd.f32 %v2689_v47, %v2004_v20  ;;  %v3173_v5 = vadd.f32 %v6344_v39, %v9128_v62  ;;  %v9224_v28 = vpop.f32.mrf.mxu0 }
 0x1b0   : > { %v3044_v45 = vpop.f32.mrf.mxu1 }
 0x1b1   : > { %v9226_v43 = vadd.f32 %v6378_v6, %v3173_v5  ;;  %v3171_v37 = vadd.f32 %v3044_v45, %v9131_v0  ;;  %v9229_v61 = vpop.f32.mrf.mxu0 }
 0x1b2   : > { %v9231_v21 = vpop.f32.mrf.mxu1 }
 0x1b3   : > { %v9233_v63 = vadd.f32 %v3403_v36, %v3171_v37  ;;  %v6382_v40 = vpop.f32.mrf.mxu0 }
 0x1b4   : > { %v9235_v54 = vpop.f32.mrf.mxu1 }
 0x1b5   : > { %v3419_v10 = vpop.f32.mrf.mxu0 }
 0x1b6   : > { %v6348_v25 = vpop.f32.mrf.mxu1 }
 0x1b7   : > { %v3177_v62 = vadd.f32 %v6348_v25, %v9140_v48  ;;  %v9238_v46 = vpop.f32.mrf.mxu0 }
 0x1b8   : > { %v3060_v4 = vpop.f32.mrf.mxu1 }
 0x1b9   : > { %v9240_v50 = vadd.f32 %v6382_v40, %v3177_v62  ;;  %v3175_v0 = vadd.f32 %v3060_v4, %v9143_v31  ;;  %v9243_v7 = vpop.f32.mrf.mxu0 }
 0x1ba   : > { %v9245_v1 = vpop.f32.mrf.mxu1 }
 0x1bb   : > { %v9247_v17 = vadd.f32 %v3419_v10, %v3175_v0  ;;  %v6386_v51 = vpop.f32.mrf.mxu0 }
 0x1bc   : > { %v9249_v23 = vpop.f32.mrf.mxu1 }
 0x1bd   : > { %v3435_v19 = vpop.f32.mrf.mxu0 }
 0x1be   : > { %v6352_v33 = vpop.f32.mrf.mxu1 }
 0x1bf   : > { %v3181_v48 = vadd.f32 %v6352_v33, %v9152_v27  ;;  %v9252_v57 = vpop.f32.mrf.mxu0 }
 0x1c0   : > { %v3076_v41 = vpop.f32.mrf.mxu1 }
 0x1c1   : > { %v9254_v47 = vadd.f32 %v6386_v51, %v3181_v48  ;;  %v3179_v31 = vadd.f32 %v3076_v41, %v9155_v18  ;;  %v9257_v52 = vpop.f32.mrf.mxu0 }
 0x1c2   : > { %v9259_v49 = vpop.f32.mrf.mxu1 }
 0x1c3   : > { %v9261_v6 = vadd.f32 %v3435_v19, %v3179_v31  ;;  %v6390_v14 = vpop.f32.mrf.mxu0 }
 0x1c4   : > { %v9263_v20 = vpop.f32.mrf.mxu1 }
 0x1c5   : > { %v3451_v36 = vpop.f32.mrf.mxu0 }
 0x1c6   : > { %v6356_v39 = vpop.f32.mrf.mxu1 }
 0x1c7   : > { %v3185_v27 = vadd.f32 %v6356_v39, %v9164_v53  ;;  %v9266_v5 = vpop.f32.mrf.mxu0 }
 0x1c8   : > { %v3092_v45 = vpop.f32.mrf.mxu1 }
 0x1c9   : > { %v9268_v37 = vadd.f32 %v6390_v14, %v3185_v27  ;;  %v3183_v18 = vadd.f32 %v3092_v45, %v9167_v12  ;;  %v9271_v40 = vpop.f32.mrf.mxu0 }
 0x1ca   : > { %v9273_v10 = vpop.f32.mrf.mxu1 }
 0x1cb   : > { %v9275_v25 = vadd.f32 %v3451_v36, %v3183_v18  ;;  %v6394_v62 = vpop.f32.mrf.mxu0 }
 0x1cc   : > { %v9277_v4 = vpop.f32.mrf.mxu1 }
 0x1cd   : > { %v3467_v0 = vpop.f32.mrf.mxu0 }
 0x1ce   : > { %v6360_v51 = vpop.f32.mrf.mxu1 }
 0x1cf   : > { %v3189_v53 = vadd.f32 %v6360_v51, %v9176_v29  ;;  %v9280_v19 = vpop.f32.mrf.mxu0 }
 0x1d0   : > { %v3108_v33 = vpop.f32.mrf.mxu1 }
 0x1d1   : > { %v9282_v48 = vadd.f32 %v6394_v62, %v3189_v53  ;;  %v3187_v12 = vadd.f32 %v3108_v33, %v9179_v9  ;;  %v9285_v41 = vpop.f32.mrf.mxu0 }
 0x1d2   : > { %v9287_v31 = vpop.f32.mrf.mxu1 }
 0x1d3   : > { %9848 = vst [vmem:[#allocation22_spill] sm:$0xff] %v9282_v48  ;;  %v9289_v14 = vadd.f32 %v3467_v0, %v3187_v12  ;;  %v6398_v36 = vpop.f32.mrf.mxu0 }
 0x1d4   : > { %v9291_v39 = vpop.f32.mrf.mxu1 }
 0x1d5   : > { %9849 = vst [vmem:[#allocation12_spill] sm:$0xff] %v9289_v14  ;;  %v3483_v27 = vpop.f32.mrf.mxu0 }
 0x1d6   : > { %v6364_v45 = vpop.f32.mrf.mxu1 }
 0x1d7   : > { %v3193_v29 = vadd.f32 %v6364_v45, %v9188_v58  ;;  %v9294_v18 = vpop.f32.mrf.mxu0 }
 0x1d8   : > { %9850 = vst [vmem:[#allocation21_spill] sm:$0xff] %v9294_v18  ;;  %v3124_v51 = vpop.f32.mrf.mxu1 }
 0x1d9   : > { %v9296_v62 = vadd.f32 %v6398_v36, %v3193_v29  ;;  %v3191_v9 = vadd.f32 %v3124_v51, %v9191_v55  ;;  %v9299_v53 = vpop.f32.mrf.mxu0 }
 0x1da   : > { %9852 = vst [vmem:[#allocation26_spill] sm:$0xff] %v9299_v53  ;;  %v9301_v33 = vpop.f32.mrf.mxu1 }
 0x1db   : > { %9851 = vst [vmem:[#allocation24_spill] sm:$0xff] %v9296_v62  ;;  %v9303_v0 = vadd.f32 %v3483_v27, %v3191_v9  ;;  %v6402_v12 = vpop.f32.mrf.mxu0 }
 0x1dc   : > { %v9305_v14 = vpop.f32.mrf.mxu1 }
 0x1dd   : > { %9853 = vst [vmem:[#allocation28_spill] sm:$0xff] %v9303_v0  ;;  %9854 = vst [vmem:[#allocation7_spill] sm:$0xff] %v9305_v14  ;;  %v3499_v48 = vpop.f32.mrf.mxu0 }
 0x1de   : > { %v6368_v30 = vpop.f32.mrf.mxu1 }
 0x1df   : > { %v3197_v58 = vadd.f32 %v6368_v30, %v9200_v22  ;;  %v9308_v45 = vpop.f32.mrf.mxu0 }
 0x1e0   : > { %v3140_v18 = vpop.f32.mrf.mxu1 }
 0x1e1   : > { %v9310_v36 = vadd.f32 %v6402_v12, %v3197_v58  ;;  %v3195_v55 = vadd.f32 %v3140_v18, %v9203_v15  ;;  %v3502_v29 = vpop.f32.mrf.mxu0 }
 0x1e2   : > { %v9313_v51 = vpop.f32.mrf.mxu1 }
 0x1e3   : > { %9855 = vst [vmem:[#allocation6_spill] sm:$0xff] %v9310_v36  ;;  %v9315_v62 = vadd.f32 %v3499_v48, %v3195_v55  ;;  %v6406_v27 = vpop.f32.mrf.mxu0 }
 0x1e4   : > { %v3143_v9 = vpop.f32.mrf.mxu1 }
 0x1e5   : > { %9856 = vst [vmem:[#allocation9_spill] sm:$0xff] %v9315_v62  ;;  %v3196_v0 = vadd.f32 %v3143_v9, %v9209_v3  ;;  %v3515_v53 = vpop.f32.mrf.mxu0 }
 0x1e6   : > { %v6372_v14 = vpop.f32.mrf.mxu1 }
 0x1e7   : > { %v9318_v24 = vadd.f32 %v3502_v29, %v3196_v0  ;;  %v3201_v22 = vadd.f32 %v6372_v14, %v9212_v42  ;;  %v6407_v30 = vpop.f32.mrf.mxu0  ;;  %v3174_v0 = vadd.f32 %v9231_v21, %v9134_v26 }
 0x1e8   : > { %v3156_v12 = vpop.f32.mrf.mxu1 }
 0x1e9   : > { %v9321_v58 = vadd.f32 %v6406_v27, %v3201_v22  ;;  %v3199_v15 = vadd.f32 %v3156_v12, %v9215_v44  ;;  %v3518_v18 = vpop.f32.mrf.mxu0  ;;  %v3172_v44 = vadd.f32 %v9235_v54, %v9137_v60  ;;  %v3533_v21 = vadd.f32 %v9224_v28, %v3174_v0 }
 0x1ea   : > { %v6373_v36 = vpop.f32.mrf.mxu1 }
 0x1eb   : > { %v9324_v48 = vadd.f32 %v3515_v53, %v3199_v15  ;;  %v3202_v55 = vadd.f32 %v6373_v36, %v9218_v35  ;;  %v6446_v62 = vpop.f32.mrf.mxu0  ;;  %v9340_v35 = vld [vmem:[%s9652_s2] ss:$0 sm:$0xff]  ;;  %v3531_v60 = vadd.f32 %v9229_v61, %v3172_v44  ;;  %v3176_v61 = vadd.f32 %v9249_v23, %v9149_v2 }
 0x1ec   : > { %v3159_v3 = vpop.f32.mrf.mxu1 }
 0x1ed   : > { %v9329_v29 = vadd.f32 %v6407_v30, %v3202_v55  ;;  %v3200_v42 = vadd.f32 %v3159_v3, %v9221_v32  ;;  %v4599_v14 = vpop.f32.mrf.mxu0  ;;  %v3178_v55 = vadd.f32 %v9245_v1, %v9146_v38 }
 0x1ee   : > { %v6412_v27 = vpop.f32.mrf.mxu1 }
 0x1ef   : > { %v9334_v9 = vadd.f32 %v3518_v18, %v3200_v42  ;;  %v4258_v53 = vadd.f32 %v6412_v27, %v9226_v43  ;;  %v6447_v22 = vpop.f32.mrf.mxu0 }
 0x1f0   : > { %v4129_v26 = vpop.f32.mrf.mxu1 }
 0x1f1   : > { %v4728_v36 = vadd.f32 %v6446_v62, %v4258_v53  ;;  %v4256_v32 = vadd.f32 %v4129_v26, %v9233_v63  ;;  %v4602_v30 = vpop.f32.mrf.mxu0  ;;  %v3537_v53 = vadd.f32 %v9238_v46, %v3178_v55 }
 0x1f2   : > { %v6413_v12 = vpop.f32.mrf.mxu1 }
 0x1f3   : > { %v9346_v54 = vadd.f32 %v9340_v35, %v4728_v36  ;;  %v4726_v43 = vadd.f32 %v4599_v14, %v4256_v32  ;;  %v4259_v15 = vadd.f32 %v6413_v12, %v3533_v21  ;;  %v6450_v18 = vpop.f32.mrf.mxu0  ;;  %v3535_v32 = vadd.f32 %v9243_v7, %v3176_v61 }
 0x1f4   : > { %v4132_v3 = vpop.f32.mrf.mxu1 }
 0x1f5   : > { %v5822_v42 = vmul.f32 -1.442695, %v9346_v54  ;;  %v9352_v28 = vadd.f32 %v9340_v35, %v4726_v43  ;;  %v4729_v63 = vadd.f32 %v6447_v22, %v4259_v15  ;;  %v4257_v62 = vadd.f32 %v4132_v3, %v3531_v60  ;;  %v4615_v0 = vpop.f32.mrf.mxu0 }
 0x1f6   : > { %v6416_v27 = vpop.f32.mrf.mxu1  ;;  %v3182_v15 = vadd.f32 %v9259_v49, %v9158_v13 }
 0x1f7   : > { %6594 = vpow2.f32 %v5822_v42  ;;  %v5820_v14 = vmul.f32 -1.442695, %v9352_v28  ;;  %v9358_v44 = vadd.f32 %v9340_v35, %v4729_v63  ;;  %v4727_v38 = vadd.f32 %v4602_v30, %v4257_v62  ;;  %v6451_v1 = vpop.f32.mrf.mxu0 }
 0x1f8   : > { %v4262_v26 = vadd.f32 %v6416_v27, %v9240_v50  ;;  %v4145_v21 = vpop.f32.mrf.mxu1 }
 0x1f9   : > { %6596 = vpow2.f32 %v5820_v14  ;;  %v5823_v22 = vmul.f32 -1.442695, %v9358_v44  ;;  %v9364_v36 = vadd.f32 %v9340_v35, %v4727_v38  ;;  %v4260_v2 = vadd.f32 %v4145_v21, %v9247_v17  ;;  %v4618_v23 = vpop.f32.mrf.mxu0 }
 0x1fa   : > { %v4732_v12 = vadd.f32 %v6450_v18, %v4262_v26  ;;  %v6417_v60 = vpop.f32.mrf.mxu1  ;;  %v3541_v14 = vadd.f32 %v9252_v57, %v3182_v15  ;;  %v3180_v38 = vadd.f32 %v9263_v20, %v9161_v8 }
 0x1fb   : > { %6598 = vpow2.f32 %v5823_v22  ;;  %v5821_v30 = vmul.f32 -1.442695, %v9364_v36  ;;  %v4730_v46 = vadd.f32 %v4615_v0, %v4260_v2  ;;  %v4263_v43 = vadd.f32 %v6417_v60, %v3537_v53  ;;  %v6454_v50 = vpop.f32.mrf.mxu0 }
 0x1fc   : > { %v9372_v55 = vadd.f32 %v9340_v35, %v4732_v12  ;;  %v4148_v3 = vpop.f32.mrf.mxu1  ;;  %v3539_v12 = vadd.f32 %v9257_v52, %v3180_v38 }
 0x1fd   : > { %6600 = vpow2.f32 %v5821_v30  ;;  %v9375_v17 = vadd.f32 %v9340_v35, %v4730_v46  ;;  %v4733_v7 = vadd.f32 %v6451_v1, %v4263_v43  ;;  %v4261_v18 = vadd.f32 %v4148_v3, %v3535_v32  ;;  %v4631_v42 = vpop.f32.mrf.mxu0 }
 0x1fe   : > { %v5826_v63 = vmul.f32 -1.442695, %v9372_v55  ;;  %v6420_v62 = vpop.f32.mrf.mxu1  ;;  %v3186_v1 = vadd.f32 %v9273_v10, %v9170_v16  ;;  %v3190_v30 = vadd.f32 %v9287_v31, %v9182_v34 }
 0x1ff   : > { %v5824_v0 = vmul.f32 -1.442695, %v9375_v17  ;;  %v9380_v61 = vadd.f32 %v9340_v35, %v4733_v7  ;;  %v4731_v13 = vadd.f32 %v4618_v23, %v4261_v18  ;;  %v4266_v49 = vadd.f32 %v6420_v62, %v9254_v47  ;;  %v6455_v27 = vpop.f32.mrf.mxu0 }
 0x200   : > { %6602 = vpow2.f32 %v5826_v63  ;;  %v4161_v53 = vpop.f32.mrf.mxu1  ;;  %v3184_v47 = vadd.f32 %v9277_v4, %v9173_v11  ;;  %v3545_v60 = vadd.f32 %v9266_v5, %v3186_v1  ;;  %v3188_v7 = vadd.f32 %v9291_v39, %v9185_v59 }
 0x201   : > { %6604 = vpow2.f32 %v5824_v0  ;;  %v5827_v26 = vmul.f32 -1.442695, %v9380_v61  ;;  %v9390_v21 = vadd.f32 %v9340_v35, %v4731_v13  ;;  %v4736_v22 = vadd.f32 %v6454_v50, %v4266_v49  ;;  %v4634_v2 = vpop.f32.mrf.mxu0 }
 0x202   : > { %v4264_v57 = vadd.f32 %v4161_v53, %v9261_v6  ;;  %v6421_v23 = vpop.f32.mrf.mxu1  ;;  %v3543_v3 = vadd.f32 %v9271_v40, %v3184_v47  ;;  %v9415_v0 = vadd.f32 %v9280_v19, %v3190_v30  ;;  %v9420_v1 = vadd.f32 %v9285_v41, %v3188_v7 }
 0x203   : > { %6606 = vpow2.f32 %v5827_v26  ;;  %v5825_v8 = vmul.f32 -1.442695, %v9390_v21  ;;  %v9397_v16 = vadd.f32 %v9340_v35, %v4736_v22  ;;  %v4267_v20 = vadd.f32 %v6421_v23, %v3541_v14  ;;  %v6458_v10 = vpop.f32.mrf.mxu0 }
 0x204   : > { %v6595_v32 = vpop.eup %6594  ;;  %v4734_v11 = vadd.f32 %v4631_v42, %v4264_v57  ;;  %v4164_v4 = vpop.f32.mrf.mxu1  ;;  %v3194_v57 = vadd.f32 %v9301_v33, %v9194_v56 }
 0x205   : > { %v4895_v6 = vadd.f32 1.0, %v6595_v32  ;;  %6608 = vpow2.f32 %v5825_v8  ;;  %v5830_v46 = vmul.f32 -1.442695, %v9397_v16  ;;  %v4737_v43 = vadd.f32 %v6455_v27, %v4267_v20  ;;  %v4647_v50 = vpop.f32.mrf.mxu0 }
 0x206   : > { %v6597_v15 = vpop.eup %6596  ;;  %v9408_v52 = vadd.f32 %v9340_v35, %v4734_v11  ;;  %v4265_v5 = vadd.f32 %v4164_v4, %v3539_v12  ;;  %v6424_v18 = vpop.f32.mrf.mxu1  ;;  %v9857_v11 = vld [vmem:[#allocation5_spill] sm:$0xff]  ;;  %v9858_v4 = vld [vmem:[#allocation7_spill] sm:$0xff] }
 0x207   : > { %6610 = vrcp.f32 %v4895_v6  ;;  %v4893_v34 = vadd.f32 1.0, %v6597_v15  ;;  %v9411_v31 = vadd.f32 %v9340_v35, %v4737_v43  ;;  %v4270_v42 = vadd.f32 %v6424_v18, %v9268_v37  ;;  %v6459_v63 = vpop.f32.mrf.mxu0 }
 0x208   : > { %v6599_v62 = vpop.eup %6598  ;;  %6612 = vpow2.f32 %v5830_v46  ;;  %v5828_v59 = vmul.f32 -1.442695, %v9408_v52  ;;  %v4735_v40 = vadd.f32 %v4634_v2, %v4265_v5  ;;  %v4177_v39 = vpop.f32.mrf.mxu1 }
 0x209   : > { %6614 = vrcp.f32 %v4893_v34  ;;  %v4896_v13 = vadd.f32 1.0, %v6599_v62  ;;  %v5831_v49 = vmul.f32 -1.442695, %v9411_v31  ;;  %v4740_v27 = vadd.f32 %v6458_v10, %v4270_v42  ;;  %v4650_v14 = vpop.f32.mrf.mxu0  ;;  %v9860_v34 = vld [vmem:[#allocation22_spill] sm:$0xff] }
 0x20a   : > { %v6601_v38 = vpop.eup %6600  ;;  %6616 = vpow2.f32 %v5828_v59  ;;  %v9423_v37 = vadd.f32 %v9340_v35, %v4735_v40  ;;  %v4268_v19 = vadd.f32 %v4177_v39, %v9275_v25  ;;  %v6425_v53 = vpop.f32.mrf.mxu1 }
 0x20b   : > { %6618 = vrcp.f32 %v4896_v13  ;;  %v4894_v26 = vadd.f32 1.0, %v6601_v38  ;;  %v9427_v22 = vadd.f32 %v9340_v35, %v4740_v27  ;;  %v4271_v2 = vadd.f32 %v6425_v53, %v3545_v60  ;;  %v6462_v47 = vpop.f32.mrf.mxu0 }
 0x20c   : > { %6620 = vpow2.f32 %v5831_v49  ;;  %v5829_v41 = vmul.f32 -1.442695, %v9423_v37  ;;  %v4738_v23 = vadd.f32 %v4647_v50, %v4268_v19  ;;  %v4180_v8 = vpop.f32.mrf.mxu1  ;;  %v3192_v60 = vadd.f32 %v9858_v4, %v9857_v11  ;;  %v9861_v49 = vld [vmem:[#allocation21_spill] sm:$0xff] }
 0x20d   : > { %v6603_v20 = vpop.eup %6602  ;;  %6622 = vrcp.f32 %v4894_v26  ;;  %v5834_v25 = vmul.f32 -1.442695, %v9427_v22  ;;  %v4741_v10 = vadd.f32 %v6459_v63, %v4271_v2  ;;  %v4269_v32 = vadd.f32 %v4180_v8, %v3543_v3  ;;  %v4663_v12 = vpop.f32.mrf.mxu0  ;;  %v9859_v3 = vld [vmem:[#allocation17_spill] sm:$0xff]  ;;  %v9863_v8 = vld [vmem:[#allocation26_spill] sm:$0xff] }
 0x20e   : > { %v6605_v30 = vpop.eup %6604  ;;  %v4899_v6 = vadd.f32 1.0, %v6603_v20  ;;  %6624 = vpow2.f32 %v5829_v41  ;;  %v9436_v56 = vadd.f32 %v9340_v35, %v4738_v23  ;;  %v6428_v33 = vpop.f32.mrf.mxu1  ;;  %v3198_v5 = vadd.f32 %v9313_v51, %v9859_v3 }
 0x20f   : > { %v4897_v46 = vadd.f32 1.0, %v6605_v30  ;;  %6626 = vpow2.f32 %v5834_v25  ;;  %v9439_v43 = vadd.f32 %v9340_v35, %v4741_v10  ;;  %v4739_v50 = vadd.f32 %v4650_v14, %v4269_v32  ;;  %v6463_v15 = vpop.f32.mrf.mxu0  ;;  %v9862_v14 = vld [vmem:[#allocation12_spill] sm:$0xff] }
 0x210   : > { %v6607_v7 = vpop.eup %6606  ;;  %6628 = vrcp.f32 %v4899_v6  ;;  %v5832_v18 = vmul.f32 -1.442695, %v9436_v56  ;;  %v4274_v42 = vadd.f32 %v6428_v33, %v9860_v34  ;;  %v4193_v63 = vpop.f32.mrf.mxu1  ;;  %v9450_v27 = vadd.f32 %v9861_v49, %v3194_v57 }
 0x211   : > { %6630 = vrcp.f32 %v4897_v46  ;;  %v4900_v62 = vadd.f32 1.0, %v6607_v7  ;;  %v5835_v59 = vmul.f32 -1.442695, %v9439_v43  ;;  %v9447_v40 = vadd.f32 %v9340_v35, %v4739_v50  ;;  %v4666_v39 = vpop.f32.mrf.mxu0 }
 0x212   : > { %v6609_v13 = vpop.eup %6608  ;;  %6632 = vpow2.f32 %v5832_v18  ;;  %v4744_v51 = vadd.f32 %v6462_v47, %v4274_v42  ;;  %v4272_v38 = vadd.f32 %v4193_v63, %v9862_v14  ;;  %v6429_v19 = vpop.f32.mrf.mxu1  ;;  %v9456_v20 = vadd.f32 %v9863_v8, %v3192_v60 }
 0x213   : > { %6634 = vrcp.f32 %v4900_v62  ;;  %v4898_v53 = vadd.f32 1.0, %v6609_v13  ;;  %v5833_v26 = vmul.f32 -1.442695, %v9447_v40  ;;  %v4275_v2 = vadd.f32 %v6429_v19, %v9415_v0 }
 0x214   : > { %v6466_v41 = vpop.f32.mrf.mxu0  ;;  %v6611_v23 = vpop.eup %6610  ;;  %6636 = vpow2.f32 %v5835_v59  ;;  %v9460_v57 = vadd.f32 %v9340_v35, %v4744_v51  ;;  %v4742_v47 = vadd.f32 %v4663_v12, %v4272_v38  ;;  %v9463_v32 = vadd.f32 %v9308_v45, %v3198_v5 }
 0x215   : > { %v4196_v25 = vpop.f32.mrf.mxu1  ;;  %v6613_v10 = vpop.eup %6612  ;;  %6638 = vrcp.f32 %v4898_v53  ;;  %v4745_v30 = vadd.f32 %v6463_v15, %v4275_v2  ;;  %v4991_v50 = vmul.f32 %v6611_v23, %v9346_v54  ;;  %v9864_v15 = vld [vmem:[#allocation24_spill] sm:$0xff] }
 0x216   : > { %v4273_v0 = vadd.f32 %v4196_v25, %v9420_v1  ;;  %v4679_v11 = vpop.f32.mrf.mxu0  ;;  %v6615_v4 = vpop.eup %6614  ;;  %v4903_v60 = vadd.f32 1.0, %v6613_v10  ;;  %6640 = vpow2.f32 %v5833_v26  ;;  %v5838_v6 = vmul.f32 -1.442695, %v9460_v57 }
 0x217   : > { %v9468_v33 = vadd.f32 %v9340_v35, %v4742_v47  ;;  %v6432_v12 = vpop.f32.mrf.mxu1  ;;  %v6617_v46 = vpop.eup %6616  ;;  %v9476_v45 = vadd.f32 %v9340_v35, %v4745_v30  ;;  %v4989_v18 = vmul.f32 %v6615_v4, %v9352_v28  ;;  %v9865_v28 = vld [vmem:[#allocation28_spill] sm:$0xff] }
 0x218   : > { %v4743_v1 = vadd.f32 %v4666_v39, %v4273_v0  ;;  %v4278_v7 = vadd.f32 %v6432_v12, %v9864_v15  ;;  %v6467_v3 = vpop.f32.mrf.mxu0  ;;  %v6619_v5 = vpop.eup %6618  ;;  %6642 = vrcp.f32 %v4903_v60  ;;  %v4901_v34 = vadd.f32 1.0, %v6617_v46 }
 0x219   : > { %v5836_v42 = vmul.f32 -1.442695, %v9468_v33  ;;  %v4209_v63 = vpop.f32.mrf.mxu1  ;;  %v6621_v62 = vpop.eup %6620  ;;  %v4992_v54 = vmul.f32 %v6619_v5, %v9358_v44  ;;  %6644 = vpow2.f32 %v5838_v6  ;;  %v5839_v59 = vmul.f32 -1.442695, %v9476_v45 }
 0x21a   : > { %v9484_v13 = vadd.f32 %v9340_v35, %v4743_v1  ;;  %v4682_v39 = vpop.f32.mrf.mxu0  ;;  %v6623_v49 = vpop.eup %6622  ;;  %6646 = vrcp.f32 %v4901_v34  ;;  %v4904_v51 = vadd.f32 1.0, %v6621_v62  ;;  %v4748_v14 = vadd.f32 %v6466_v41, %v4278_v7 }
 0x21b   : > { %v4276_v38 = vadd.f32 %v4209_v63, %v9865_v28  ;;  %v6433_v19 = vpop.f32.mrf.mxu1  ;;  %v6625_v53 = vpop.eup %6624  ;;  %v5930_v26 = vpack.c.bf16 %v4992_v54, %v4991_v50  ;;  %v4990_v2 = vmul.f32 %v6623_v49, %v9364_v36  ;;  %6648 = vpow2.f32 %v5836_v42  ;;  %v9866_v42 = vld [vmem:[#allocation6_spill] sm:$0xff]  ;;  %v9867_v28 = vld [vmem:[#allocation9_spill] sm:$0xff] }
 0x21c   : > { %v5837_v44 = vmul.f32 -1.442695, %v9484_v13  ;;  %v6470_v23 = vpop.f32.mrf.mxu0  ;;  %v6627_v8 = vpop.eup %6626  ;;  %6650 = vrcp.f32 %v4904_v51  ;;  %v4902_v47 = vadd.f32 1.0, %v6625_v53  ;;  %v9490_v25 = vadd.f32 %v9340_v35, %v4748_v14 }
 0x21d   : > { %v4746_v10 = vadd.f32 %v4679_v11, %v4276_v38  ;;  %v4212_v41 = vpop.f32.mrf.mxu1  ;;  %v6629_v30 = vpop.eup %6628  ;;  %6002 = vst [vmem:[%s9493_s9 + $0x8] sm:$0xff] %v5930_v26   ;;  %v5925_v0 = vpack.c.bf16 %v4990_v2, %v4989_v18  ;;  %v4907_v36 = vadd.f32 1.0, %v6627_v8  ;;  %6652 = vpow2.f32 %v5839_v59 }
 0x21e   : > { %v4279_v4 = vadd.f32 %v6433_v19, %v9450_v27  ;;  %v4695_v60 = vpop.f32.mrf.mxu0  ;;  %v6631_v6 = vpop.eup %6630  ;;  %v4995_v12 = vmul.f32 %v6629_v30, %v9372_v55  ;;  %6654 = vrcp.f32 %v4902_v47  ;;  %v5842_v46 = vmul.f32 -1.442695, %v9490_v25 }
 0x21f   : > { %v9500_v11 = vadd.f32 %v9340_v35, %v4746_v10  ;;  %v6436_v50 = vpop.f32.mrf.mxu1  ;;  %v6633_v1 = vpop.eup %6632  ;;  %5926 = vst [vmem:[%s9493_s9] sm:$0xff] %v5925_v0   ;;  %v4993_v15 = vmul.f32 %v6631_v6, %v9375_v17  ;;  %6656 = vrcp.f32 %v4907_v36  ;;  %v4277_v5 = vadd.f32 %v4212_v41, %v9456_v20 }
 0x220   : > { %v4749_v7 = vadd.f32 %v6467_v3, %v4279_v4  ;;  %v6471_v27 = vpop.f32.mrf.mxu0  ;;  %v6635_v18 = vpop.eup %6634  ;;  %v4905_v34 = vadd.f32 1.0, %v6633_v1  ;;  %6658 = vpow2.f32 %v5837_v44  ;;  %v4282_v63 = vadd.f32 %v6436_v50, %v9866_v42 }
 0x221   : > { %v5840_v55 = vmul.f32 -1.442695, %v9500_v11  ;;  %v4225_v62 = vpop.f32.mrf.mxu1  ;;  %v6637_v54 = vpop.eup %6636  ;;  %v4996_v59 = vmul.f32 %v6635_v18, %v9380_v61  ;;  %6660 = vpow2.f32 %v5842_v46  ;;  %v4747_v17 = vadd.f32 %v4682_v39, %v4277_v5 }
 0x222   : > { %v9509_v49 = vadd.f32 %v9340_v35, %v4749_v7  ;;  %v4698_v3 = vpop.f32.mrf.mxu0  ;;  %v6639_v51 = vpop.eup %6638  ;;  %6662 = vrcp.f32 %v4905_v34  ;;  %v4908_v20 = vadd.f32 1.0, %v6637_v54  ;;  %v4752_v14 = vadd.f32 %v6470_v23, %v4282_v63 }
 0x223   : > { %v4280_v38 = vadd.f32 %v4225_v62, %v9867_v28  ;;  %v6437_v19 = vpop.f32.mrf.mxu1  ;;  %v6641_v53 = vpop.eup %6640  ;;  %v5940_v26 = vpack.c.bf16 %v4996_v59, %v4995_v12  ;;  %v4994_v2 = vmul.f32 %v6639_v51, %v9390_v21  ;;  %6664 = vpow2.f32 %v5840_v55 }
 0x224   : > { %v5843_v61 = vmul.f32 -1.442695, %v9509_v49  ;;  %6666 = vrcp.f32 %v4908_v20  ;;  %v4906_v44 = vadd.f32 1.0, %v6641_v53  ;;  %v9515_v39 = vadd.f32 %v9340_v35, %v4747_v17  ;;  %v6474_v30 = vpop.f32.mrf.mxu0 }
 0x225   : > { %v9518_v8 = vadd.f32 %v9340_v35, %v4752_v14  ;;  %v4228_v23 = vpop.f32.mrf.mxu1  ;;  %v6643_v47 = vpop.eup %6642  ;;  %6004 = vst [vmem:[%s9493_s9 + $0x18] sm:$0xff] %v5940_v26   ;;  %v5935_v10 = vpack.c.bf16 %v4994_v2, %v4993_v15  ;;  %v4750_v41 = vadd.f32 %v4695_v60, %v4280_v38  ;;  %v4283_v21 = vadd.f32 %v6437_v19, %v9463_v32 }
 0x226   : > { %6668 = vpow2.f32 %v5843_v61  ;;  %v6645_v0 = vpop.eup %6644  ;;  %v5841_v36 = vmul.f32 -1.442695, %v9515_v39  ;;  %v4281_v15 = vadd.f32 %v4228_v23, %v9318_v24  ;;  %v4999_v32 = vmul.f32 %v6643_v47, %v9397_v16 }
 0x227   : > { %6670 = vrcp.f32 %v4906_v44  ;;  %v5846_v4 = vmul.f32 -1.442695, %v9518_v8  ;;  %v6440_v6 = vpop.f32.mrf.mxu1  ;;  %v6647_v12 = vpop.eup %6646  ;;  %6003 = vst [vmem:[%s9493_s9 + $0x10] sm:$0xff] %v5935_v10   ;;  %v4911_v46 = vadd.f32 1.0, %v6645_v0  ;;  %v9526_v50 = vadd.f32 %v9340_v35, %v4750_v41 }
 0x228   : > { %v4753_v1 = vadd.f32 %v6471_v27, %v4283_v21  ;;  %v6649_v60 = vpop.eup %6648  ;;  %v4997_v7 = vmul.f32 %v6647_v12, %v9408_v52  ;;  %6672 = vpow2.f32 %v5841_v36  ;;  %v4286_v5 = vadd.f32 %v6440_v6, %v9321_v58  ;;  %v4711_v27 = vpop.f32.mrf.mxu0 }
 0x229   : > { %v4241_v18 = vpop.f32.mrf.mxu1  ;;  %v6651_v34 = vpop.eup %6650  ;;  %6674 = vrcp.f32 %v4911_v46  ;;  %v4909_v55 = vadd.f32 1.0, %v6649_v60  ;;  %v5844_v42 = vmul.f32 -1.442695, %v9526_v50  ;;  %v4751_v16 = vadd.f32 %v4698_v3, %v4281_v15 }
 0x22a   : > { %v9534_v63 = vadd.f32 %v9340_v35, %v4753_v1  ;;  %v6653_v62 = vpop.eup %6652  ;;  %v5000_v24 = vmul.f32 %v6651_v34, %v9411_v31  ;;  %6676 = vpow2.f32 %v5846_v4  ;;  %v4756_v54 = vadd.f32 %v6474_v30, %v4286_v5  ;;  %v6475_v53 = vpop.f32.mrf.mxu0 }
 0x22b   : > { %v6441_v52 = vpop.f32.mrf.mxu1  ;;  %v6655_v59 = vpop.eup %6654  ;;  %6678 = vrcp.f32 %v4909_v55  ;;  %v4912_v58 = vadd.f32 1.0, %v6653_v62  ;;  %v4284_v51 = vadd.f32 %v4241_v18, %v9324_v48  ;;  %v9541_v38 = vadd.f32 %v9340_v35, %v4751_v16 }
 0x22c   : > { %v5847_v17 = vmul.f32 -1.442695, %v9534_v63  ;;  %v6657_v20 = vpop.eup %6656  ;;  %v5950_v14 = vpack.c.bf16 %v5000_v24, %v4999_v32  ;;  %v4998_v28 = vmul.f32 %v6655_v59, %v9423_v37  ;;  %6680 = vpow2.f32 %v5844_v42  ;;  %v4714_v12 = vpop.f32.mrf.mxu0 }
 0x22d   : > { %v6659_v31 = vpop.eup %6658  ;;  %6682 = vrcp.f32 %v4912_v58  ;;  %v9544_v3 = vadd.f32 %v9340_v35, %v4756_v54  ;;  %v4754_v19 = vadd.f32 %v4711_v27, %v4284_v51  ;;  %v4244_v26 = vpop.f32.mrf.mxu1  ;;  %v5845_v37 = vmul.f32 -1.442695, %v9541_v38 }
 0x22e   : > { %v6661_v2 = vpop.eup %6660  ;;  %6006 = vst [vmem:[%s9493_s9 + $0x28] sm:$0xff] %v5950_v14   ;;  %v5945_v48 = vpack.c.bf16 %v4998_v28, %v4997_v7  ;;  %v4910_v61 = vadd.f32 1.0, %v6659_v31  ;;  %6684 = vpow2.f32 %v5847_v17  ;;  %v4287_v10 = vadd.f32 %v6441_v52, %v9329_v29 }
 0x22f   : > { %v6663_v44 = vpop.eup %6662  ;;  %v4915_v23 = vadd.f32 1.0, %v6661_v2  ;;  %v9549_v47 = vadd.f32 %v9340_v35, %v4754_v19  ;;  %v5850_v21 = vmul.f32 -1.442695, %v9544_v3  ;;  %v4285_v30 = vadd.f32 %v4244_v26, %v9334_v9 }
 0x230   : > { %v6665_v41 = vpop.eup %6664  ;;  %6005 = vst [vmem:[%s9493_s9 + $0x20] sm:$0xff] %v5945_v48   ;;  %6686 = vrcp.f32 %v4910_v61  ;;  %v5003_v36 = vmul.f32 %v6657_v20, %v9427_v22  ;;  %v4757_v6 = vadd.f32 %v6475_v53, %v4287_v10  ;;  %v5001_v32 = vmul.f32 %v6663_v44, %v9436_v56 }
 0x231   : > { %v6667_v0 = vpop.eup %6666  ;;  %6688 = vrcp.f32 %v4915_v23  ;;  %v4913_v4 = vadd.f32 1.0, %v6665_v41  ;;  %v5848_v29 = vmul.f32 -1.442695, %v9549_v47  ;;  %v4755_v15 = vadd.f32 %v4714_v12, %v4285_v30 }
 0x232   : > { %v5004_v1 = vmul.f32 %v6667_v0, %v9439_v43  ;;  %6690 = vpow2.f32 %v5845_v37  ;;  %v9560_v7 = vadd.f32 %v9340_v35, %v4757_v6 }
 0x233   : > { %v6669_v46 = vpop.eup %6668  ;;  %6692 = vrcp.f32 %v4913_v4  ;;  %v9564_v43 = vadd.f32 %v9340_v35, %v4755_v15 }
 0x234   : > { %v6671_v60 = vpop.eup %6670  ;;  %v4916_v9 = vadd.f32 1.0, %v6669_v46  ;;  %v5960_v22 = vpack.c.bf16 %v5004_v1, %v5003_v36  ;;  %6694 = vpow2.f32 %v5850_v21  ;;  %v5851_v34 = vmul.f32 -1.442695, %v9560_v7 }
 0x235   : > { %v5002_v5 = vmul.f32 %v6671_v60, %v9447_v40  ;;  %v6673_v18 = vpop.eup %6672  ;;  %v5849_v27 = vmul.f32 -1.442695, %v9564_v43 }
 0x236   : > { %6696 = vrcp.f32 %v4916_v9  ;;  %v6675_v55 = vpop.eup %6674  ;;  %6008 = vst [vmem:[%s9493_s9 + $0x38] sm:$0xff] %v5960_v22   ;;  %v4914_v42 = vadd.f32 1.0, %v6673_v18 }
 0x237   : > { %v5955_v56 = vpack.c.bf16 %v5002_v5, %v5001_v32  ;;  %6698 = vpow2.f32 %v5848_v29  ;;  %v6677_v62 = vpop.eup %6676  ;;  %v5007_v52 = vmul.f32 %v6675_v55, %v9460_v57 }
 0x238   : > { %6700 = vpow2.f32 %v5851_v34  ;;  %v6679_v24 = vpop.eup %6678  ;;  %v4919_v40 = vadd.f32 1.0, %v6677_v62 }
 0x239   : > { %6007 = vst [vmem:[%s9493_s9 + $0x30] sm:$0xff] %v5955_v56   ;;  %6702 = vrcp.f32 %v4914_v42  ;;  %v6681_v16 = vpop.eup %6680  ;;  %v5005_v28 = vmul.f32 %v6679_v24, %v9468_v33 }
 0x23a   : > { %6704 = vpow2.f32 %v5849_v27  ;;  %v6683_v35 = vpop.eup %6682  ;;  %v4917_v58 = vadd.f32 1.0, %v6681_v16 }
 0x23b   : > { %v6685_v54 = vpop.eup %6684  ;;  %v5008_v59 = vmul.f32 %v6683_v35, %v9476_v45  ;;  %6706 = vrcp.f32 %v4919_v40 }
 0x23c   : > { %v4920_v17 = vadd.f32 1.0, %v6685_v54 }
 0x23d   : > { %v6687_v51 = vpop.eup %6686  ;;  %v5970_v20 = vpack.c.bf16 %v5008_v59, %v5007_v52 }
 0x23e   : > { %v6689_v14 = vpop.eup %6688  ;;  %v5006_v31 = vmul.f32 %v6687_v51, %v9484_v13  ;;  %6708 = vrcp.f32 %v4920_v17 }
 0x23f   : > { %v6691_v19 = vpop.eup %6690  ;;  %6010 = vst [vmem:[%s9493_s9 + $0x48] sm:$0xff] %v5970_v20   ;;  %6710 = vrcp.f32 %v4917_v58  ;;  %v5011_v37 = vmul.f32 %v6689_v14, %v9490_v25 }
 0x240   : > { %v6693_v53 = vpop.eup %6692  ;;  %v5965_v26 = vpack.c.bf16 %v5006_v31, %v5005_v28  ;;  %v4918_v57 = vadd.f32 1.0, %v6691_v19 }
 0x241   : > { %v6695_v2 = vpop.eup %6694  ;;  %v5009_v30 = vmul.f32 %v6693_v53, %v9500_v11 }
 0x242   : > { %6009 = vst [vmem:[%s9493_s9 + $0x40] sm:$0xff] %v5965_v26   ;;  %6712 = vrcp.f32 %v4918_v57  ;;  %v4923_v48 = vadd.f32 1.0, %v6695_v2 }
 0x243   : > { %v6697_v45 = vpop.eup %6696 }
 0x244   : > { %v6699_v61 = vpop.eup %6698  ;;  %v5012_v33 = vmul.f32 %v6697_v45, %v9509_v49  ;;  %6714 = vrcp.f32 %v4923_v48 }
 0x245   : > { %v6701_v44 = vpop.eup %6700  ;;  %v4921_v13 = vadd.f32 1.0, %v6699_v61 }
 0x246   : > { %v6703_v23 = vpop.eup %6702  ;;  %v5980_v10 = vpack.c.bf16 %v5012_v33, %v5011_v37  ;;  %v4924_v41 = vadd.f32 1.0, %v6701_v44 }
 0x247   : > { %v6705_v21 = vpop.eup %6704  ;;  %v5010_v0 = vmul.f32 %v6703_v23, %v9515_v39  ;;  %6716 = vrcp.f32 %v4921_v13 }
 0x248   : > { %6012 = vst [vmem:[%s9493_s9 + $0x58] sm:$0xff] %v5980_v10   ;;  %6718 = vrcp.f32 %v4924_v41  ;;  %v4922_v36 = vadd.f32 1.0, %v6705_v21  ;;  %v6707_v4 = vpop.eup %6706 }
 0x249   : > { %v5975_v25 = vpack.c.bf16 %v5010_v0, %v5009_v30  ;;  %v5015_v6 = vmul.f32 %v6707_v4, %v9518_v8 }
 0x24a   : > { %6720 = vrcp.f32 %v4922_v36 }
 0x24b   : > { %6011 = vst [vmem:[%s9493_s9 + $0x50] sm:$0xff] %v5975_v25   ;;  %v6709_v49 = vpop.eup %6708 }
 0x24c   : > { %v5016_v12 = vmul.f32 %v6709_v49, %v9534_v63  ;;  %v6711_v11 = vpop.eup %6710 }
 0x24d   : > { %v5013_v1 = vmul.f32 %v6711_v11, %v9526_v50 }
 0x24e   : > { %v5990_v46 = vpack.c.bf16 %v5016_v12, %v5015_v6 }
 0x24f   : > { %v6713_v39 = vpop.eup %6712 }
 0x250   : > { %6014 = vst [vmem:[%s9493_s9 + $0x68] sm:$0xff] %v5990_v46   ;;  %v5014_v29 = vmul.f32 %v6713_v39, %v9541_v38 }
 0x251   : > { %v6715_v15 = vpop.eup %6714 }
 0x252   : > { %v5985_v60 = vpack.c.bf16 %v5014_v29, %v5013_v1  ;;  %v5019_v8 = vmul.f32 %v6715_v15, %v9544_v3 }
 0x254   : > { %v6717_v32 = vpop.eup %6716  ;;  %6013 = vst [vmem:[%s9493_s9 + $0x60] sm:$0xff] %v5985_v60  }
 0x255   : > { %v6719_v9 = vpop.eup %6718  ;;  %v5017_v50 = vmul.f32 %v6717_v32, %v9549_v47 }
 0x256   : > { %v5020_v63 = vmul.f32 %v6719_v9, %v9560_v7 }
 0x257   : > { %v6721_v22 = vpop.eup %6720 }
 0x258   : > { %v6000_v5 = vpack.c.bf16 %v5020_v63, %v5019_v8  ;;  %v5018_v38 = vmul.f32 %v6721_v22, %v9564_v43 }
 0x25a   : > { %6016 = vst [vmem:[%s9493_s9 + $0x78] sm:$0xff] %v6000_v5   ;;  %v5995_v3 = vpack.c.bf16 %v5018_v38, %v5017_v50 }
 0x25c   : > { %6015 = vst [vmem:[%s9493_s9 + $0x70] sm:$0xff] %v5995_v3  }
 0x25d   : > { %6737 = shalt.err (!%p6734_p5)
}
 0x25e   : > { %s6738_s29 = scalar_lea.hbm %s9597_s21, 2048  ;;  %s6742_s5 = scalar_lea.hbm %s9653_s3, 4096 }
 0x25f   : > { %p6739_p6 = scmp.ne.s32.totalorder %s9597_s21, %s6738_s29  ;;  %p6743_p10 = scmp.lt.s32.totalorder %s9597_s21, %s9653_s3 }
 0x260   : > { %p6744_p11 = scmp.lt.s32.totalorder %s6742_s5, %s6738_s29 }
 0x261   : > { %p6740_p7 = pnand %p6739_p6, %p6865_p4 }
 0x262   : > { %p6745_p12 = por %p6744_p11, %p6743_p10 }
 0x263   : > { %p6741_p9 = pneg %p6740_p7 }
 0x265   : > { %p6746_p13 = pnand %p6745_p12, %p6741_p9 }
 0x267   : > { %6749 = shalt.err (!%p6746_p13)
}
 0x268   : > { %s6803_s8 = smov 64   ;;  %s6804_s9 = smov 4  }
 0x269   : > { %6489 = dma.vmem_to_hbm [thread:$0]  (%p6865_p4), %s9599_s11, 2048, %s9597_s21, %s9605_s15, %s6803_s8, %s6803_s8, %s6804_s9  }
 0x26a PF: > { %p6495_p0 = scmp.ge.s32.totalorder %s6800_s17, 2  ;;  %s5211_s10 = sand.u32 1, %s6780_s12  }
 0x26b   : > { %s5212_s18 = scalar_lea.sflag [#allocation3], %s5211_s10 }
 0x26c   : > { %p6492_p1 = pnand %p6495_p0, %p6872_p8 }
 0x26e   : > { %p6493_p2 = pneg %p6492_p1 }
 0x270   : > { %6775 = dma.done.wait (%p6493_p2), %s5212_s18, 2048  }
 0x271   : > { %6777 = vsyncadd (%p6493_p2), %s5212_s18, 4294965248  ;;  %s16_s17 = sadd.s32 1, %s6800_s17   ;;  %s9868_s12 = smov %s6784_s13 }
 0x272   : > { %p13_p3 = scmp.ge.s32.totalorder %s16_s17, 4   ;;  %s9869_s13 = smov %s6788_s14 }
 0x273   : > { %s9870_s14 = smov %s6878_s25  ;;  %s9871_s15 = smov %s6796_s16 }
 0x274   : > { %s9872_s16 = smov %s9874_s20  ;;  %15 = sbr.rel (!%p13_p3) target bundleno = 4 (0x4), region = 77 }
 0x279   :  { %5217 = vsyncpa [#allocation3], 1 }
 0x27a   :  { %5219 = vsyncpa [#allocation3 + $0x1], 1 }

</bundles_post_ra>
